<compile_context>
chip_gen: v7x
topology: tpu7x:2x2x1
jax: 0.10.0
libtpu: 0.0.40
codegen_flags: <defaults>
</compile_context>

<pallas_src>
import functools
import math

import jax
import jax.numpy as jnp
from jax.experimental import pallas as pl
from jax.experimental.pallas import tpu as pltpu


# ----------------------------------------------------------------------------
# tiling helper
# ----------------------------------------------------------------------------
def _pick_tile(dim, target, align):
    """Largest t <= target with dim % t == 0 and t % align == 0, else full dim."""
    if dim <= target:
        return dim
    t = (target // align) * align
    while t >= align:
        if dim % t == 0:
            return t
        t -= align
    return dim


def _erf(x):
    """Abramowitz & Stegun 7.1.26 erf approximation (|err| <= 1.5e-7).

    Uses only exp (EUP) + mul/add/div/select (VPU), which all lower on Mosaic,
    and matches PyTorch's exact-erf GELU far below bf16 noise.
    """
    a1, a2, a3, a4, a5 = 0.254829592, -0.284496736, 1.421413741, -1.453152027, 1.061405429
    p = 0.3275911
    sgn = jnp.where(x >= 0.0, 1.0, -1.0)
    ax = jnp.abs(x)
    t = 1.0 / (1.0 + p * ax)
    poly = ((((a5 * t + a4) * t + a3) * t + a2) * t + a1) * t
    return sgn * (1.0 - poly * jnp.exp(-ax * ax))


# ----------------------------------------------------------------------------
# Fused weight-resident matmul:  o = epilogue(prologue(a) @ b + bias)
#   prologue : LayerNorm over the K axis of A (feature-projection pre-norm)
#   epilogue : exact-erf GELU, or residual-add + LayerNorm
# ----------------------------------------------------------------------------
def matmul_fused(a, b, bias, *, residual=None, ln_gamma=None, ln_beta=None,
                 prenorm_gamma=None, prenorm_beta=None, activation=None,
                 eps=1e-5, out_dtype=jnp.float32, tm_target=512):
    M, K = a.shape
    K2, N = b.shape
    assert K == K2
    assert b.dtype == jnp.bfloat16, "weights must be stored bf16 (done once at init)"
    has_res = residual is not None
    has_ln = ln_gamma is not None
    has_pre = prenorm_gamma is not None

    out_itemsize = jnp.dtype(out_dtype).itemsize
    a_itemsize = jnp.dtype(a.dtype).itemsize

    def footprint(tm_):
        f = 2 * tm_ * K * a_itemsize            # A tiles (double-buffered)
        f += 2 * K * N * 2                      # resident bf16 weight (2 bufs; constant
        #                                         index -> never re-DMA'd.  TODO(synk):
        #                                         pipeline_mode=pl.Buffered(1) would halve this)
        f += 2 * tm_ * N * out_itemsize         # output tiles
        f += 2 * tm_ * N * 4 * (1 if has_res else 0)
        f += 2 * N * 4 * (1 + (2 if has_ln else 0)) + 2 * K * 4 * (2 if has_pre else 0)
        return f

    # M-tile: big (>=512 keeps arithmetic intensity above the HBM ridge once the
    # weight is resident), shrunk only if the VMEM footprint would exceed ~40 MiB.
    tm = _pick_tile(M, tm_target, 8)
    while (footprint(tm) > (40 << 20) and tm % 2 == 0 and tm > 8
           and (tm // 2) % 8 == 0 and M % (tm // 2) == 0):
        tm //= 2

    bias2 = bias.reshape(1, N).astype(jnp.float32)
    grid = (M // tm,)

    in_specs = [pl.BlockSpec((tm, K), lambda i: (i, 0)),
                pl.BlockSpec((K, N), lambda i: (0, 0)),     # weight: constant block index
                pl.BlockSpec((1, N), lambda i: (0, 0))]
    operands = [a, b, bias2]
    if has_pre:
        in_specs += [pl.BlockSpec((1, K), lambda i: (0, 0)),
                     pl.BlockSpec((1, K), lambda i: (0, 0))]
        operands += [prenorm_gamma.reshape(1, K).astype(jnp.float32),
                     prenorm_beta.reshape(1, K).astype(jnp.float32)]
    if has_res:
        in_specs.append(pl.BlockSpec((tm, N), lambda i: (i, 0)))
        operands.append(residual)
    if has_ln:
        in_specs += [pl.BlockSpec((1, N), lambda i: (0, 0)),
                     pl.BlockSpec((1, N), lambda i: (0, 0))]
        operands += [ln_gamma.reshape(1, N).astype(jnp.float32),
                     ln_beta.reshape(1, N).astype(jnp.float32)]

    def kernel(*refs):
        a_ref, b_ref, bias_ref = refs[0], refs[1], refs[2]
        pos = 3
        pg_ref = pb_ref = res_ref = g_ref = bt_ref = None
        if has_pre:
            pg_ref, pb_ref = refs[pos], refs[pos + 1]
            pos += 2
        if has_res:
            res_ref = refs[pos]
            pos += 1
        if has_ln:
            g_ref, bt_ref = refs[pos], refs[pos + 1]
            pos += 2
        o_ref = refs[pos]

        x = a_ref[...]
        if has_pre:
            # pre-LayerNorm prologue (full K row is resident: tk == K)
            xf = x.astype(jnp.float32)
            mu = jnp.mean(xf, axis=-1, keepdims=True)
            var = jnp.mean((xf - mu) * (xf - mu), axis=-1, keepdims=True)
            xf = (xf - mu) * jax.lax.rsqrt(var + eps) * pg_ref[...] + pb_ref[...]
            a_op = xf.astype(jnp.bfloat16)
        else:
            a_op = x if x.dtype == jnp.bfloat16 else x.astype(jnp.bfloat16)

        # single full-K MXU matmul, f32 accumulation, epilogue in f32
        y = jnp.dot(a_op, b_ref[...], preferred_element_type=jnp.float32) + bias_ref[...]
        if activation == "gelu":
            y = 0.5 * y * (1.0 + _erf(y * 0.7071067811865476))
        if has_res:
            y = y + res_ref[...].astype(jnp.float32)
        if has_ln:
            mu = jnp.mean(y, axis=-1, keepdims=True)
            var = jnp.mean((y - mu) * (y - mu), axis=-1, keepdims=True)
            y = (y - mu) * jax.lax.rsqrt(var + eps) * g_ref[...] + bt_ref[...]
        o_ref[...] = y.astype(o_ref.dtype)

    cost = pl.CostEstimate(
        flops=2 * M * N * K,
        transcendentals=(M * N if activation == "gelu" else 0),
        bytes_accessed=(M * K * a_itemsize + K * N * 2 + M * N * out_itemsize
                        + (M * N * 4 if has_res else 0)),
    )
    vmem_limit = int(min(max(footprint(tm) + (4 << 20), 32 << 20), 48 << 20))

    return pl.pallas_call(
        kernel,
        out_shape=jax.ShapeDtypeStruct((M, N), out_dtype),
        grid=grid,
        in_specs=in_specs,
        out_specs=pl.BlockSpec((tm, N), lambda i: (i, 0)),
        compiler_params=pltpu.CompilerParams(
            dimension_semantics=("parallel",),
            vmem_limit_bytes=vmem_limit),
        cost_estimate=cost,
    )(*operands)


# ----------------------------------------------------------------------------
# Flash-style attention: online softmax over a KV grid axis, heads packed
# per block; 1/sqrt(Dh) folded into the kernel.
# ----------------------------------------------------------------------------
def _flash_attn_kernel(q_ref, k_ref, v_ref, o_ref, m_sc, l_sc, acc_sc, *, scale):
    kv = pl.program_id(2)

    @pl.when(kv == 0)
    def _():
        m_sc[...] = jnp.full(m_sc.shape, -jnp.inf, dtype=m_sc.dtype)
        l_sc[...] = jnp.zeros_like(l_sc)
        acc_sc[...] = jnp.zeros_like(acc_sc)

    # scale applied in-kernel on the f32 score tile (VALU slack; no wrapper pass)
    s = jnp.einsum("bqd,bkd->bqk", q_ref[...], k_ref[...],
                   preferred_element_type=jnp.float32) * scale
    m_prev = m_sc[...]
    m_new = jnp.maximum(m_prev, jnp.max(s, axis=-1, keepdims=True))
    alpha = jnp.exp(m_prev - m_new)
    p = jnp.exp(s - m_new)
    l_sc[...] = alpha * l_sc[...] + jnp.sum(p, axis=-1, keepdims=True)
    acc_sc[...] = alpha * acc_sc[...] + jnp.einsum(
        "bqk,bkd->bqd", p.astype(v_ref.dtype), v_ref[...],
        preferred_element_type=jnp.float32)
    m_sc[...] = m_new

    @pl.when(kv == pl.num_programs(2) - 1)
    def _():
        o_ref[...] = (acc_sc[...] * pl.reciprocal(l_sc[...], approx=True)
                      ).astype(o_ref.dtype)


def flash_attention(q, k, v, *, out_dtype=jnp.bfloat16):
    """q, k, v: (B*H, T, Dh) bf16 -> softmax(q k^T / sqrt(Dh)) v."""
    BH, T, Dh = q.shape
    scale = 1.0 / math.sqrt(Dh)

    hb = _pick_tile(BH, 8, 1)        # heads packed per block
    tq = _pick_tile(T, 512, 8)       # large q tile -> fewer K/V re-streams
    tkv = _pick_tile(T, 512, 8)
    grid = (BH // hb, T // tq, T // tkv)

    # TODO(synk): pack 2 heads along the lane axis (2*Dh = 128) so the o/acc
    # stores are unmasked lane-dense vst; Dh < 128 currently uses masked stores.
    q_spec = pl.BlockSpec((hb, tq, Dh), lambda b, qi, ki: (b, qi, 0))
    kv_spec = pl.BlockSpec((hb, tkv, Dh), lambda b, qi, ki: (b, ki, 0))
    o_spec = pl.BlockSpec((hb, tq, Dh), lambda b, qi, ki: (b, qi, 0))

    out_itemsize = jnp.dtype(out_dtype).itemsize
    n_q_passes = T // tq
    cost = pl.CostEstimate(
        flops=4 * BH * T * T * Dh,
        transcendentals=BH * T * T,
        bytes_accessed=BH * T * Dh * (2 + 2 * 2 * n_q_passes + out_itemsize),
    )
    need = (2 * hb * tq * Dh * 2 + 2 * 2 * hb * tkv * Dh * 2
            + 2 * hb * tq * Dh * out_itemsize + hb * tq * (Dh + 2) * 4)
    vmem_limit = int(min(max(need + (4 << 20), 32 << 20), 48 << 20))

    return pl.pallas_call(
        functools.partial(_flash_attn_kernel, scale=scale),
        out_shape=jax.ShapeDtypeStruct((BH, T, Dh), out_dtype),
        grid=grid,
        in_specs=[q_spec, kv_spec, kv_spec],
        out_specs=o_spec,
        scratch_shapes=[pltpu.VMEM((hb, tq, 1), jnp.float32),
                        pltpu.VMEM((hb, tq, 1), jnp.float32),
                        pltpu.VMEM((hb, tq, Dh), jnp.float32)],
        compiler_params=pltpu.CompilerParams(
            dimension_semantics=("parallel", "parallel", "arbitrary"),
            vmem_limit_bytes=vmem_limit),
        cost_estimate=cost,
    )(q, k, v)


# ----------------------------------------------------------------------------
# Conv feature extractor (channels-last, bf16 strided-slice im2col, fused GELU)
# ----------------------------------------------------------------------------
def conv1d_gelu(x_blc, wmat, bias, ktaps, stride):
    """x_blc: (B, L, Cin) bf16; wmat: (K*Cin, Cout) bf16 -> (B, T, Cout) bf16."""
    B, L, Cin = x_blc.shape
    Cout = wmat.shape[1]
    T = (L - ktaps) // stride + 1
    # im2col via K strided slices in bf16: no gather, no HBM transposes.
    cols = [jax.lax.slice(x_blc, (0, kk, 0),
                          (B, kk + (T - 1) * stride + 1, Cin),
                          (1, stride, 1)) for kk in range(ktaps)]
    patches = jnp.concatenate(cols, axis=-1).reshape(B * T, ktaps * Cin)
    y = matmul_fused(patches, wmat, bias, activation="gelu",
                     out_dtype=jnp.bfloat16)                     # bias+GELU fused
    return y.reshape(B, T, Cout)                                 # stays channels-last
    # TODO(synk): a manual-DMA Pallas conv (K taps as the reduction grid axis)
    # would avoid materializing the im2col matrix in HBM entirely.


# ----------------------------------------------------------------------------
# HuBERT forward (mirrors BaseHuBERT: embedding -> backbone)
# ----------------------------------------------------------------------------
def backbone_forward(params, x):
    """HuBERTEncoder: fused pre-LN + feature projection, post-norm transformer layers."""
    B, T, C = x.shape
    D = params["proj_w"].shape[1]
    H = params["num_heads"]
    Dh = D // H

    # feature-projection pre-LayerNorm fused into the projection matmul (A-prologue)
    h = matmul_fused(x.reshape(B * T, C), params["proj_w"], params["proj_b"],
                     prenorm_gamma=params["proj_ln_g"],
                     prenorm_beta=params["proj_ln_b"],
                     out_dtype=jnp.float32)                          # (B*T, D) f32

    for lp in params["layers"]:
        # fused QKV projection: one matmul against (D, 3D), bf16 output
        qkv = matmul_fused(h, lp["wqkv"], lp["bqkv"], out_dtype=jnp.bfloat16)
        # TODO(synk): read q/k/v straight from the (B*T, 3D) buffer inside the
        # attention kernel (column-offset BlockSpecs) to kill this transpose;
        # it is done in bf16 here (half the previous f32 traffic).
        qkv = (qkv.reshape(B, T, 3, H, Dh)
                   .transpose(2, 0, 3, 1, 4)
                   .reshape(3, B * H, T, Dh))
        attn = flash_attention(qkv[0], qkv[1], qkv[2], out_dtype=jnp.bfloat16)
        attn = (attn.reshape(B, H, T, Dh)
                    .transpose(0, 2, 1, 3)
                    .reshape(B * T, D))                              # bf16
        # output projection with fused bias + residual-add + LayerNorm (post-norm)
        h = matmul_fused(attn, lp["wo"], lp["bo"], residual=h,
                         ln_gamma=lp["ln1_g"], ln_beta=lp["ln1_b"],
                         out_dtype=jnp.float32)
        # FFN: up-proj with fused bias+GELU (bf16 out), down-proj with fused residual+LN
        ff = matmul_fused(h, lp["w1"], lp["b1"], activation="gelu",
                          out_dtype=jnp.bfloat16)
        h = matmul_fused(ff, lp["w2"], lp["b2"], residual=h,
                         ln_gamma=lp["ln2_g"], ln_beta=lp["ln2_b"],
                         out_dtype=jnp.float32)

    return h.reshape(B, T, D)


def hubert_forward(params, waveform):
    """BaseHuBERT.forward: (B, in_channels, length) -> (B, num_frames, embedding_dim)."""
    x = jnp.transpose(waveform, (0, 2, 1)).astype(jnp.bfloat16)   # NCL -> NLC, bf16 once
    for (wmat, b, ktaps, stride) in params["embedding"]["convs"]:
        x = conv1d_gelu(x, wmat, b, ktaps, stride)                # (B, T, Cout) bf16
    return backbone_forward(params["backbone"], x)


# ----------------------------------------------------------------------------
# Deterministic synthetic parameter init (tiny HuBERT-like config).
# Weights are stored bf16 (and conv weights pre-reshaped) once, here.
# ----------------------------------------------------------------------------
def init_params(key, conv_layers, embed_dim, num_heads, ffn_dim, num_layers):
    def nrm(k, shape, scale=0.02):
        return scale * jax.random.normal(k, shape, dtype=jnp.float32)

    def nrm_bf(k, shape):
        return nrm(k, shape).astype(jnp.bfloat16)

    keys = iter(jax.random.split(key, 256))

    convs = []
    for (cin, cout, kern, stride) in conv_layers:
        w = nrm(next(keys), (cout, cin, kern))
        wmat = jnp.transpose(w, (2, 1, 0)).reshape(kern * cin, cout).astype(jnp.bfloat16)
        convs.append((wmat, jnp.zeros((cout,), jnp.float32), kern, stride))

    conv_dim = conv_layers[-1][1]
    backbone = {
        "num_heads": num_heads,
        "proj_ln_g": jnp.ones((conv_dim,), jnp.float32),
        "proj_ln_b": jnp.zeros((conv_dim,), jnp.float32),
        "proj_w": nrm_bf(next(keys), (conv_dim, embed_dim)),
        "proj_b": jnp.zeros((embed_dim,), jnp.float32),
        "layers": [],
    }
    for _ in range(num_layers):
        lp = {
            "wqkv": nrm_bf(next(keys), (embed_dim, 3 * embed_dim)),
            "bqkv": jnp.zeros((3 * embed_dim,), jnp.float32),
            "wo": nrm_bf(next(keys), (embed_dim, embed_dim)),
            "bo": jnp.zeros((embed_dim,), jnp.float32),
            "ln1_g": jnp.ones((embed_dim,), jnp.float32),
            "ln1_b": jnp.zeros((embed_dim,), jnp.float32),
            "w1": nrm_bf(next(keys), (embed_dim, ffn_dim)),
            "b1": jnp.zeros((ffn_dim,), jnp.float32),
            "w2": nrm_bf(next(keys), (ffn_dim, embed_dim)),
            "b2": jnp.zeros((embed_dim,), jnp.float32),
            "ln2_g": jnp.ones((embed_dim,), jnp.float32),
            "ln2_b": jnp.zeros((embed_dim,), jnp.float32),
        }
        backbone["layers"].append(lp)

    return {"embedding": {"convs": convs}, "backbone": backbone}


# TODO(synk): weight_norm_/remove_weight_norm_ and build_from_pretrained
# (checkpoint download / IO) have no Pallas equivalent and do not affect forward.

if __name__ == "__main__":
    # tiny config: in_channels=1, length=80
    # conv stack: (1->16, k=8, s=4) then (16->32, k=4, s=2)  => num_frames = 8
    B, C_IN, L = 2, 1, 80
    CONV_LAYERS = [(1, 16, 8, 4), (16, 32, 4, 2)]
    EMBED_DIM, NUM_HEADS, FFN_DIM, NUM_LAYERS = 32, 4, 64, 2
    NUM_FRAMES = 8

    key = jax.random.PRNGKey(0)
    k_in, k_par = jax.random.split(key)
    waveform = jax.random.normal(k_in, (B, C_IN, L), dtype=jnp.float32)
    params = init_params(k_par, CONV_LAYERS, EMBED_DIM, NUM_HEADS, FFN_DIM, NUM_LAYERS)

    fwd = jax.jit(lambda wav: hubert_forward(params, wav))
    out = jax.block_until_ready(fwd(waveform))

    assert out.shape == (B, NUM_FRAMES, EMBED_DIM), out.shape
    assert out.dtype == jnp.float32
    assert bool(jnp.all(jnp.isfinite(out)))
    print("KERNEL_OK")
</pallas_src>

<mosaic_0001>
module attributes {stable_mosaic.version = 11 : i64} {
  func.func @kernel(%arg0: i32, %arg1: memref<38x8xbf16, #tpu.memory_space<vmem>>, %arg2: memref<8x16xbf16, #tpu.memory_space<vmem>>, %arg3: memref<1x16xf32, #tpu.memory_space<vmem>>, %arg4: memref<38x16xbf16, #tpu.memory_space<vmem>>) attributes {dimension_semantics = [#tpu.dimension_semantics<parallel>], iteration_bounds = array<i64: 1>, scalar_prefetch = 0 : i64, scratch_operands = 0 : i64, tpu.core_type = #tpu.core_type<tc>, window_params = [{transform_indices = @transform_0, window_bounds = array<i64: 38, 8>}, {pipeline_mode = #tpu.pipeline_mode<synchronous>, transform_indices = @transform_1, window_bounds = array<i64: 8, 16>}, {pipeline_mode = #tpu.pipeline_mode<synchronous>, transform_indices = @transform_2, window_bounds = array<i64: 1, 16>}, {transform_indices = @transform_3, window_bounds = array<i64: 38, 16>}]} {
    %c0 = arith.constant 0 : index
    %c0_0 = arith.constant 0 : index
    %0 = vector.load %arg1[%c0, %c0_0] : memref<38x8xbf16, #tpu.memory_space<vmem>>, vector<38x8xbf16>
    %c0_1 = arith.constant 0 : index
    %c0_2 = arith.constant 0 : index
    %1 = vector.load %arg2[%c0_1, %c0_2] : memref<8x16xbf16, #tpu.memory_space<vmem>>, vector<8x16xbf16>
    %cst = arith.constant dense<0.000000e+00> : vector<38x16xf32>
    %2 = tpu.matmul %0, %1, %cst {dimension_numbers = #tpu.dot_dimension_numbers<[1], [0], [0], [1], [0, 0, 1, 1], [], []>} : vector<38x8xbf16>, vector<8x16xbf16>, vector<38x16xf32> -> vector<38x16xf32>
    %c0_3 = arith.constant 0 : index
    %c0_4 = arith.constant 0 : index
    %3 = vector.load %arg3[%c0_3, %c0_4] : memref<1x16xf32, #tpu.memory_space<vmem>>, vector<1x16xf32>
    %4 = vector.broadcast %3 : vector<1x16xf32> to vector<38x16xf32>
    %5 = arith.addf %2, %4 : vector<38x16xf32>
    %cst_5 = arith.constant 5.000000e-01 : f32
    %6 = vector.broadcast %cst_5 : f32 to vector<38x16xf32>
    %7 = arith.mulf %6, %5 : vector<38x16xf32>
    %cst_6 = arith.constant 0.707106769 : f32
    %8 = vector.broadcast %cst_6 : f32 to vector<38x16xf32>
    %9 = arith.mulf %5, %8 : vector<38x16xf32>
    %cst_7 = arith.constant 0.000000e+00 : f32
    %10 = vector.broadcast %cst_7 : f32 to vector<38x16xf32>
    %11 = arith.cmpf oge, %9, %10 : vector<38x16xf32>
    %cst_8 = arith.constant 1.000000e+00 : f32
    %cst_9 = arith.constant -1.000000e+00 : f32
    %12 = vector.broadcast %cst_8 : f32 to vector<38x16xf32>
    %13 = vector.broadcast %cst_9 : f32 to vector<38x16xf32>
    %14 = arith.select %11, %12, %13 : vector<38x16xi1>, vector<38x16xf32>
    %15 = math.absf %9 : vector<38x16xf32>
    %cst_10 = arith.constant 0.327591091 : f32
    %16 = vector.broadcast %cst_10 : f32 to vector<38x16xf32>
    %17 = arith.mulf %16, %15 : vector<38x16xf32>
    %cst_11 = arith.constant 1.000000e+00 : f32
    %18 = vector.broadcast %cst_11 : f32 to vector<38x16xf32>
    %19 = arith.addf %18, %17 : vector<38x16xf32>
    %cst_12 = arith.constant 1.000000e+00 : f32
    %20 = vector.broadcast %cst_12 : f32 to vector<38x16xf32>
    %21 = arith.divf %20, %19 : vector<38x16xf32>
    %cst_13 = arith.constant 1.06140542 : f32
    %22 = vector.broadcast %cst_13 : f32 to vector<38x16xf32>
    %23 = arith.mulf %22, %21 : vector<38x16xf32>
    %cst_14 = arith.constant -1.45315206 : f32
    %24 = vector.broadcast %cst_14 : f32 to vector<38x16xf32>
    %25 = arith.addf %23, %24 : vector<38x16xf32>
    %26 = arith.mulf %25, %21 : vector<38x16xf32>
    %cst_15 = arith.constant 1.42141378 : f32
    %27 = vector.broadcast %cst_15 : f32 to vector<38x16xf32>
    %28 = arith.addf %26, %27 : vector<38x16xf32>
    %29 = arith.mulf %28, %21 : vector<38x16xf32>
    %cst_16 = arith.constant -0.284496725 : f32
    %30 = vector.broadcast %cst_16 : f32 to vector<38x16xf32>
    %31 = arith.addf %29, %30 : vector<38x16xf32>
    %32 = arith.mulf %31, %21 : vector<38x16xf32>
    %cst_17 = arith.constant 0.254829586 : f32
    %33 = vector.broadcast %cst_17 : f32 to vector<38x16xf32>
    %34 = arith.addf %32, %33 : vector<38x16xf32>
    %35 = arith.mulf %34, %21 : vector<38x16xf32>
    %cst_18 = arith.constant 0.000000e+00 : f32
    %36 = vector.broadcast %cst_18 : f32 to vector<38x16xf32>
    %37 = arith.subf %36, %15 : vector<38x16xf32>
    %38 = arith.mulf %37, %15 : vector<38x16xf32>
    %39 = math.exp %38 : vector<38x16xf32>
    %40 = arith.mulf %35, %39 : vector<38x16xf32>
    %cst_19 = arith.constant 1.000000e+00 : f32
    %41 = vector.broadcast %cst_19 : f32 to vector<38x16xf32>
    %42 = arith.subf %41, %40 : vector<38x16xf32>
    %43 = arith.mulf %14, %42 : vector<38x16xf32>
    %cst_20 = arith.constant 1.000000e+00 : f32
    %44 = vector.broadcast %cst_20 : f32 to vector<38x16xf32>
    %45 = arith.addf %44, %43 : vector<38x16xf32>
    %46 = arith.mulf %7, %45 : vector<38x16xf32>
    %47 = arith.truncf %46 : vector<38x16xf32> to vector<38x16xbf16>
    %c0_21 = arith.constant 0 : index
    %c0_22 = arith.constant 0 : index
    %48 = vector.load %arg4[%c0_21, %c0_22] : memref<38x16xbf16, #tpu.memory_space<vmem>>, vector<38x16xbf16>
    tpu.vector_store %arg4[%c0_21, %c0_22], %47 {strides = array<i32>} : memref<38x16xbf16, #tpu.memory_space<vmem>>, vector<38x16xbf16>,
    return
  }
  func.func @transform_0(%arg0: i32) -> (i32, i32) {
    %c0_i32 = arith.constant 0 : i32
    %c0_i32_0 = arith.constant 0 : i32
    return %arg0, %c0_i32 : i32, i32
  }
  func.func @transform_1(%arg0: i32) -> (i32, i32) {
    %c0_i32 = arith.constant 0 : i32
    %c0_i32_0 = arith.constant 0 : i32
    %c0_i32_1 = arith.constant 0 : i32
    return %c0_i32, %c0_i32_0 : i32, i32
  }
  func.func @transform_2(%arg0: i32) -> (i32, i32) {
    %c0_i32 = arith.constant 0 : i32
    %c0_i32_0 = arith.constant 0 : i32
    %c0_i32_1 = arith.constant 0 : i32
    return %c0_i32, %c0_i32_0 : i32, i32
  }
  func.func @transform_3(%arg0: i32) -> (i32, i32) {
    %c0_i32 = arith.constant 0 : i32
    %c0_i32_0 = arith.constant 0 : i32
    return %arg0, %c0_i32 : i32, i32
  }
}

module attributes {stable_mosaic.version = 11 : i64} {
  func.func @kernel(%arg0: i32, %arg1: memref<16x32xbf16, #tpu.memory_space<vmem>>, %arg2: memref<32x32xbf16, #tpu.memory_space<vmem>>, %arg3: memref<1x32xf32, #tpu.memory_space<vmem>>, %arg4: memref<1x32xf32, #tpu.memory_space<vmem>>, %arg5: memref<1x32xf32, #tpu.memory_space<vmem>>, %arg6: memref<16x32xf32, #tpu.memory_space<vmem>>) attributes {dimension_semantics = [#tpu.dimension_semantics<parallel>], iteration_bounds = array<i64: 1>, scalar_prefetch = 0 : i64, scratch_operands = 0 : i64, tpu.core_type = #tpu.core_type<tc>, window_params = [{transform_indices = @transform_0, window_bounds = array<i64: 16, 32>}, {pipeline_mode = #tpu.pipeline_mode<synchronous>, transform_indices = @transform_1, window_bounds = array<i64: 32, 32>}, {pipeline_mode = #tpu.pipeline_mode<synchronous>, transform_indices = @transform_2, window_bounds = array<i64: 1, 32>}, {pipeline_mode = #tpu.pipeline_mode<synchronous>, transform_indices = @transform_3, window_bounds = array<i64: 1, 32>}, {pipeline_mode = #tpu.pipeline_mode<synchronous>, transform_indices = @transform_4, window_bounds = array<i64: 1, 32>}, {transform_indices = @transform_5, window_bounds = array<i64: 16, 32>}]} {
    %c0 = arith.constant 0 : index
    %c0_0 = arith.constant 0 : index
    %0 = vector.load %arg1[%c0, %c0_0] : memref<16x32xbf16, #tpu.memory_space<vmem>>, vector<16x32xbf16>
    %1 = arith.extf %0 : vector<16x32xbf16> to vector<16x32xf32>
    %cst = arith.constant dense<0.000000e+00> : vector<16xf32>
    %2 = vector.multi_reduction <add>, %1, %cst [1] : vector<16x32xf32> to vector<16xf32>
    %3 = vector.shape_cast %2 : vector<16xf32> to vector<16x1xf32>
    %cst_1 = arith.constant 3.200000e+01 : f32
    %4 = vector.broadcast %cst_1 : f32 to vector<16x1xf32>
    %5 = arith.divf %3, %4 : vector<16x1xf32>
    %6 = vector.broadcast %5 : vector<16x1xf32> to vector<16x32xf32>
    %7 = arith.subf %1, %6 : vector<16x32xf32>
    %8 = vector.broadcast %5 : vector<16x1xf32> to vector<16x32xf32>
    %9 = arith.subf %1, %8 : vector<16x32xf32>
    %10 = arith.mulf %7, %9 : vector<16x32xf32>
    %cst_2 = arith.constant dense<0.000000e+00> : vector<16xf32>
    %11 = vector.multi_reduction <add>, %10, %cst_2 [1] : vector<16x32xf32> to vector<16xf32>
    %12 = vector.shape_cast %11 : vector<16xf32> to vector<16x1xf32>
    %cst_3 = arith.constant 3.200000e+01 : f32
    %13 = vector.broadcast %cst_3 : f32 to vector<16x1xf32>
    %14 = arith.divf %12, %13 : vector<16x1xf32>
    %15 = vector.broadcast %5 : vector<16x1xf32> to vector<16x32xf32>
    %16 = arith.subf %1, %15 : vector<16x32xf32>
    %cst_4 = arith.constant 9.99999974E-6 : f32
    %17 = vector.broadcast %cst_4 : f32 to vector<16x1xf32>
    %18 = arith.addf %14, %17 : vector<16x1xf32>
    %19 = math.rsqrt %18 : vector<16x1xf32>
    %20 = vector.broadcast %19 : vector<16x1xf32> to vector<16x32xf32>
    %21 = arith.mulf %16, %20 : vector<16x32xf32>
    %c0_5 = arith.constant 0 : index
    %c0_6 = arith.constant 0 : index
    %22 = vector.load %arg4[%c0_5, %c0_6] : memref<1x32xf32, #tpu.memory_space<vmem>>, vector<1x32xf32>
    %23 = vector.broadcast %22 : vector<1x32xf32> to vector<16x32xf32>
    %24 = arith.mulf %21, %23 : vector<16x32xf32>
    %c0_7 = arith.constant 0 : index
    %c0_8 = arith.constant 0 : index
    %25 = vector.load %arg5[%c0_7, %c0_8] : memref<1x32xf32, #tpu.memory_space<vmem>>, vector<1x32xf32>
    %26 = vector.broadcast %25 : vector<1x32xf32> to vector<16x32xf32>
    %27 = arith.addf %24, %26 : vector<16x32xf32>
    %28 = arith.truncf %27 : vector<16x32xf32> to vector<16x32xbf16>
    %c0_9 = arith.constant 0 : index
    %c0_10 = arith.constant 0 : index
    %29 = vector.load %arg2[%c0_9, %c0_10] : memref<32x32xbf16, #tpu.memory_space<vmem>>, vector<32x32xbf16>
    %cst_11 = arith.constant dense<0.000000e+00> : vector<16x32xf32>
    %30 = tpu.matmul %28, %29, %cst_11 {dimension_numbers = #tpu.dot_dimension_numbers<[1], [0], [0], [1], [0, 0, 1, 1], [], []>} : vector<16x32xbf16>, vector<32x32xbf16>, vector<16x32xf32> -> vector<16x32xf32>
    %c0_12 = arith.constant 0 : index
    %c0_13 = arith.constant 0 : index
    %31 = vector.load %arg3[%c0_12, %c0_13] : memref<1x32xf32, #tpu.memory_space<vmem>>, vector<1x32xf32>
    %32 = vector.broadcast %31 : vector<1x32xf32> to vector<16x32xf32>
    %33 = arith.addf %30, %32 : vector<16x32xf32>
    %c0_14 = arith.constant 0 : index
    %c0_15 = arith.constant 0 : index
    %34 = vector.load %arg6[%c0_14, %c0_15] : memref<16x32xf32, #tpu.memory_space<vmem>>, vector<16x32xf32>
    tpu.vector_store %arg6[%c0_14, %c0_15], %33 {strides = array<i32>} : memref<16x32xf32, #tpu.memory_space<vmem>>, vector<16x32xf32>,
    return
  }
  func.func @transform_0(%arg0: i32) -> (i32, i32) {
    %c0_i32 = arith.constant 0 : i32
    %c0_i32_0 = arith.constant 0 : i32
    return %arg0, %c0_i32 : i32, i32
  }
  func.func @transform_1(%arg0: i32) -> (i32, i32) {
    %c0_i32 = arith.constant 0 : i32
    %c0_i32_0 = arith.constant 0 : i32
    %c0_i32_1 = arith.constant 0 : i32
    return %c0_i32, %c0_i32_0 : i32, i32
  }
  func.func @transform_2(%arg0: i32) -> (i32, i32) {
    %c0_i32 = arith.constant 0 : i32
    %c0_i32_0 = arith.constant 0 : i32
    %c0_i32_1 = arith.constant 0 : i32
    return %c0_i32, %c0_i32_0 : i32, i32
  }
  func.func @transform_3(%arg0: i32) -> (i32, i32) {
    %c0_i32 = arith.constant 0 : i32
    %c0_i32_0 = arith.constant 0 : i32
    %c0_i32_1 = arith.constant 0 : i32
    return %c0_i32, %c0_i32_0 : i32, i32
  }
  func.func @transform_4(%arg0: i32) -> (i32, i32) {
    %c0_i32 = arith.constant 0 : i32
    %c0_i32_0 = arith.constant 0 : i32
    %c0_i32_1 = arith.constant 0 : i32
    return %c0_i32, %c0_i32_0 : i32, i32
  }
  func.func @transform_5(%arg0: i32) -> (i32, i32) {
    %c0_i32 = arith.constant 0 : i32
    %c0_i32_0 = arith.constant 0 : i32
    return %arg0, %c0_i32 : i32, i32
  }
}

module attributes {stable_mosaic.version = 11 : i64} {
  func.func @kernel(%arg0: i32, %arg1: memref<16x64xbf16, #tpu.memory_space<vmem>>, %arg2: memref<64x32xbf16, #tpu.memory_space<vmem>>, %arg3: memref<1x32xf32, #tpu.memory_space<vmem>>, %arg4: memref<16x32xbf16, #tpu.memory_space<vmem>>) attributes {dimension_semantics = [#tpu.dimension_semantics<parallel>], iteration_bounds = array<i64: 1>, scalar_prefetch = 0 : i64, scratch_operands = 0 : i64, tpu.core_type = #tpu.core_type<tc>, window_params = [{transform_indices = @transform_0, window_bounds = array<i64: 16, 64>}, {pipeline_mode = #tpu.pipeline_mode<synchronous>, transform_indices = @transform_1, window_bounds = array<i64: 64, 32>}, {pipeline_mode = #tpu.pipeline_mode<synchronous>, transform_indices = @transform_2, window_bounds = array<i64: 1, 32>}, {transform_indices = @transform_3, window_bounds = array<i64: 16, 32>}]} {
    %c0 = arith.constant 0 : index
    %c0_0 = arith.constant 0 : index
    %0 = vector.load %arg1[%c0, %c0_0] : memref<16x64xbf16, #tpu.memory_space<vmem>>, vector<16x64xbf16>
    %c0_1 = arith.constant 0 : index
    %c0_2 = arith.constant 0 : index
    %1 = vector.load %arg2[%c0_1, %c0_2] : memref<64x32xbf16, #tpu.memory_space<vmem>>, vector<64x32xbf16>
    %cst = arith.constant dense<0.000000e+00> : vector<16x32xf32>
    %2 = tpu.matmul %0, %1, %cst {dimension_numbers = #tpu.dot_dimension_numbers<[1], [0], [0], [1], [0, 0, 1, 1], [], []>} : vector<16x64xbf16>, vector<64x32xbf16>, vector<16x32xf32> -> vector<16x32xf32>
    %c0_3 = arith.constant 0 : index
    %c0_4 = arith.constant 0 : index
    %3 = vector.load %arg3[%c0_3, %c0_4] : memref<1x32xf32, #tpu.memory_space<vmem>>, vector<1x32xf32>
    %4 = vector.broadcast %3 : vector<1x32xf32> to vector<16x32xf32>
    %5 = arith.addf %2, %4 : vector<16x32xf32>
    %cst_5 = arith.constant 5.000000e-01 : f32
    %6 = vector.broadcast %cst_5 : f32 to vector<16x32xf32>
    %7 = arith.mulf %6, %5 : vector<16x32xf32>
    %cst_6 = arith.constant 0.707106769 : f32
    %8 = vector.broadcast %cst_6 : f32 to vector<16x32xf32>
    %9 = arith.mulf %5, %8 : vector<16x32xf32>
    %cst_7 = arith.constant 0.000000e+00 : f32
    %10 = vector.broadcast %cst_7 : f32 to vector<16x32xf32>
    %11 = arith.cmpf oge, %9, %10 : vector<16x32xf32>
    %cst_8 = arith.constant 1.000000e+00 : f32
    %cst_9 = arith.constant -1.000000e+00 : f32
    %12 = vector.broadcast %cst_8 : f32 to vector<16x32xf32>
    %13 = vector.broadcast %cst_9 : f32 to vector<16x32xf32>
    %14 = arith.select %11, %12, %13 : vector<16x32xi1>, vector<16x32xf32>
    %15 = math.absf %9 : vector<16x32xf32>
    %cst_10 = arith.constant 0.327591091 : f32
    %16 = vector.broadcast %cst_10 : f32 to vector<16x32xf32>
    %17 = arith.mulf %16, %15 : vector<16x32xf32>
    %cst_11 = arith.constant 1.000000e+00 : f32
    %18 = vector.broadcast %cst_11 : f32 to vector<16x32xf32>
    %19 = arith.addf %18, %17 : vector<16x32xf32>
    %cst_12 = arith.constant 1.000000e+00 : f32
    %20 = vector.broadcast %cst_12 : f32 to vector<16x32xf32>
    %21 = arith.divf %20, %19 : vector<16x32xf32>
    %cst_13 = arith.constant 1.06140542 : f32
    %22 = vector.broadcast %cst_13 : f32 to vector<16x32xf32>
    %23 = arith.mulf %22, %21 : vector<16x32xf32>
    %cst_14 = arith.constant -1.45315206 : f32
    %24 = vector.broadcast %cst_14 : f32 to vector<16x32xf32>
    %25 = arith.addf %23, %24 : vector<16x32xf32>
    %26 = arith.mulf %25, %21 : vector<16x32xf32>
    %cst_15 = arith.constant 1.42141378 : f32
    %27 = vector.broadcast %cst_15 : f32 to vector<16x32xf32>
    %28 = arith.addf %26, %27 : vector<16x32xf32>
    %29 = arith.mulf %28, %21 : vector<16x32xf32>
    %cst_16 = arith.constant -0.284496725 : f32
    %30 = vector.broadcast %cst_16 : f32 to vector<16x32xf32>
    %31 = arith.addf %29, %30 : vector<16x32xf32>
    %32 = arith.mulf %31, %21 : vector<16x32xf32>
    %cst_17 = arith.constant 0.254829586 : f32
    %33 = vector.broadcast %cst_17 : f32 to vector<16x32xf32>
    %34 = arith.addf %32, %33 : vector<16x32xf32>
    %35 = arith.mulf %34, %21 : vector<16x32xf32>
    %cst_18 = arith.constant 0.000000e+00 : f32
    %36 = vector.broadcast %cst_18 : f32 to vector<16x32xf32>
    %37 = arith.subf %36, %15 : vector<16x32xf32>
    %38 = arith.mulf %37, %15 : vector<16x32xf32>
    %39 = math.exp %38 : vector<16x32xf32>
    %40 = arith.mulf %35, %39 : vector<16x32xf32>
    %cst_19 = arith.constant 1.000000e+00 : f32
    %41 = vector.broadcast %cst_19 : f32 to vector<16x32xf32>
    %42 = arith.subf %41, %40 : vector<16x32xf32>
    %43 = arith.mulf %14, %42 : vector<16x32xf32>
    %cst_20 = arith.constant 1.000000e+00 : f32
    %44 = vector.broadcast %cst_20 : f32 to vector<16x32xf32>
    %45 = arith.addf %44, %43 : vector<16x32xf32>
    %46 = arith.mulf %7, %45 : vector<16x32xf32>
    %47 = arith.truncf %46 : vector<16x32xf32> to vector<16x32xbf16>
    %c0_21 = arith.constant 0 : index
    %c0_22 = arith.constant 0 : index
    %48 = vector.load %arg4[%c0_21, %c0_22] : memref<16x32xbf16, #tpu.memory_space<vmem>>, vector<16x32xbf16>
    tpu.vector_store %arg4[%c0_21, %c0_22], %47 {strides = array<i32>} : memref<16x32xbf16, #tpu.memory_space<vmem>>, vector<16x32xbf16>,
    return
  }
  func.func @transform_0(%arg0: i32) -> (i32, i32) {
    %c0_i32 = arith.constant 0 : i32
    %c0_i32_0 = arith.constant 0 : i32
    return %arg0, %c0_i32 : i32, i32
  }
  func.func @transform_1(%arg0: i32) -> (i32, i32) {
    %c0_i32 = arith.constant 0 : i32
    %c0_i32_0 = arith.constant 0 : i32
    %c0_i32_1 = arith.constant 0 : i32
    return %c0_i32, %c0_i32_0 : i32, i32
  }
  func.func @transform_2(%arg0: i32) -> (i32, i32) {
    %c0_i32 = arith.constant 0 : i32
    %c0_i32_0 = arith.constant 0 : i32
    %c0_i32_1 = arith.constant 0 : i32
    return %c0_i32, %c0_i32_0 : i32, i32
  }
  func.func @transform_3(%arg0: i32) -> (i32, i32) {
    %c0_i32 = arith.constant 0 : i32
    %c0_i32_0 = arith.constant 0 : i32
    return %arg0, %c0_i32 : i32, i32
  }
}

module attributes {stable_mosaic.version = 11 : i64} {
  func.func @kernel(%arg0: i32, %arg1: memref<16x32xf32, #tpu.memory_space<vmem>>, %arg2: memref<32x96xbf16, #tpu.memory_space<vmem>>, %arg3: memref<1x96xf32, #tpu.memory_space<vmem>>, %arg4: memref<16x96xbf16, #tpu.memory_space<vmem>>) attributes {dimension_semantics = [#tpu.dimension_semantics<parallel>], iteration_bounds = array<i64: 1>, scalar_prefetch = 0 : i64, scratch_operands = 0 : i64, tpu.core_type = #tpu.core_type<tc>, window_params = [{transform_indices = @transform_0, window_bounds = array<i64: 16, 32>}, {pipeline_mode = #tpu.pipeline_mode<synchronous>, transform_indices = @transform_1, window_bounds = array<i64: 32, 96>}, {pipeline_mode = #tpu.pipeline_mode<synchronous>, transform_indices = @transform_2, window_bounds = array<i64: 1, 96>}, {transform_indices = @transform_3, window_bounds = array<i64: 16, 96>}]} {
    %c0 = arith.constant 0 : index
    %c0_0 = arith.constant 0 : index
    %0 = vector.load %arg1[%c0, %c0_0] : memref<16x32xf32, #tpu.memory_space<vmem>>, vector<16x32xf32>
    %1 = arith.truncf %0 : vector<16x32xf32> to vector<16x32xbf16>
    %c0_1 = arith.constant 0 : index
    %c0_2 = arith.constant 0 : index
    %2 = vector.load %arg2[%c0_1, %c0_2] : memref<32x96xbf16, #tpu.memory_space<vmem>>, vector<32x96xbf16>
    %cst = arith.constant dense<0.000000e+00> : vector<16x96xf32>
    %3 = tpu.matmul %1, %2, %cst {dimension_numbers = #tpu.dot_dimension_numbers<[1], [0], [0], [1], [0, 0, 1, 1], [], []>} : vector<16x32xbf16>, vector<32x96xbf16>, vector<16x96xf32> -> vector<16x96xf32>
    %c0_3 = arith.constant 0 : index
    %c0_4 = arith.constant 0 : index
    %4 = vector.load %arg3[%c0_3, %c0_4] : memref<1x96xf32, #tpu.memory_space<vmem>>, vector<1x96xf32>
    %5 = vector.broadcast %4 : vector<1x96xf32> to vector<16x96xf32>
    %6 = arith.addf %3, %5 : vector<16x96xf32>
    %7 = arith.truncf %6 : vector<16x96xf32> to vector<16x96xbf16>
    %c0_5 = arith.constant 0 : index
    %c0_6 = arith.constant 0 : index
    %8 = vector.load %arg4[%c0_5, %c0_6] : memref<16x96xbf16, #tpu.memory_space<vmem>>, vector<16x96xbf16>
    tpu.vector_store %arg4[%c0_5, %c0_6], %7 {strides = array<i32>} : memref<16x96xbf16, #tpu.memory_space<vmem>>, vector<16x96xbf16>,
    return
  }
  func.func @transform_0(%arg0: i32) -> (i32, i32) {
    %c0_i32 = arith.constant 0 : i32
    %c0_i32_0 = arith.constant 0 : i32
    return %arg0, %c0_i32 : i32, i32
  }
  func.func @transform_1(%arg0: i32) -> (i32, i32) {
    %c0_i32 = arith.constant 0 : i32
    %c0_i32_0 = arith.constant 0 : i32
    %c0_i32_1 = arith.constant 0 : i32
    return %c0_i32, %c0_i32_0 : i32, i32
  }
  func.func @transform_2(%arg0: i32) -> (i32, i32) {
    %c0_i32 = arith.constant 0 : i32
    %c0_i32_0 = arith.constant 0 : i32
    %c0_i32_1 = arith.constant 0 : i32
    return %c0_i32, %c0_i32_0 : i32, i32
  }
  func.func @transform_3(%arg0: i32) -> (i32, i32) {
    %c0_i32 = arith.constant 0 : i32
    %c0_i32_0 = arith.constant 0 : i32
    return %arg0, %c0_i32 : i32, i32
  }
}

module attributes {stable_mosaic.version = 11 : i64} {
  func.func @_flash_attn_kernel(%arg0: i32, %arg1: i32, %arg2: i32, %arg3: memref<8x8x8xbf16, #tpu.memory_space<vmem>>, %arg4: memref<8x8x8xbf16, #tpu.memory_space<vmem>>, %arg5: memref<8x8x8xbf16, #tpu.memory_space<vmem>>, %arg6: memref<8x8x8xbf16, #tpu.memory_space<vmem>>, %arg7: memref<8x8x1xf32, #tpu.memory_space<vmem>>, %arg8: memref<8x8x1xf32, #tpu.memory_space<vmem>>, %arg9: memref<8x8x8xf32, #tpu.memory_space<vmem>>) attributes {dimension_semantics = [#tpu.dimension_semantics<parallel>, #tpu.dimension_semantics<parallel>, #tpu.dimension_semantics<arbitrary>], iteration_bounds = array<i64: 1, 1, 1>, scalar_prefetch = 0 : i64, scratch_operands = 3 : i64, tpu.core_type = #tpu.core_type<tc>, window_params = [{transform_indices = @transform_0, window_bounds = array<i64: 8, 8, 8>}, {transform_indices = @transform_1, window_bounds = array<i64: 8, 8, 8>}, {transform_indices = @transform_2, window_bounds = array<i64: 8, 8, 8>}, {transform_indices = @transform_3, window_bounds = array<i64: 8, 8, 8>}]} {
    %c0_i32 = arith.constant 0 : i32
    %0 = arith.cmpi eq, %arg2, %c0_i32 : i32
    %1 = arith.extui %0 : i1 to i32
    %c0_i32_0 = arith.constant 0 : i32
    %2 = arith.cmpi ne, %1, %c0_i32_0 : i32
    scf.if %2 {
      %cst_33 = arith.constant 0xFF800000 : f32
      %35 = vector.broadcast %cst_33 : f32 to vector<8x8x1xf32>
      %c0_34 = arith.constant 0 : index
      %c0_35 = arith.constant 0 : index
      %c0_36 = arith.constant 0 : index
      %36 = vector.load %arg7[%c0_34, %c0_35, %c0_36] : memref<8x8x1xf32, #tpu.memory_space<vmem>>, vector<8x8x1xf32>
      tpu.vector_store %arg7[%c0_34, %c0_35, %c0_36], %35 {strides = array<i32>} : memref<8x8x1xf32, #tpu.memory_space<vmem>>, vector<8x8x1xf32>,
      %cst_37 = arith.constant 0.000000e+00 : f32
      %37 = vector.broadcast %cst_37 : f32 to vector<8x8x1xf32>
      %c0_38 = arith.constant 0 : index
      %c0_39 = arith.constant 0 : index
      %c0_40 = arith.constant 0 : index
      %38 = vector.load %arg8[%c0_38, %c0_39, %c0_40] : memref<8x8x1xf32, #tpu.memory_space<vmem>>, vector<8x8x1xf32>
      tpu.vector_store %arg8[%c0_38, %c0_39, %c0_40], %37 {strides = array<i32>} : memref<8x8x1xf32, #tpu.memory_space<vmem>>, vector<8x8x1xf32>,
      %cst_41 = arith.constant 0.000000e+00 : f32
      %39 = vector.broadcast %cst_41 : f32 to vector<8x8x8xf32>
      %c0_42 = arith.constant 0 : index
      %c0_43 = arith.constant 0 : index
      %c0_44 = arith.constant 0 : index
      %40 = vector.load %arg9[%c0_42, %c0_43, %c0_44] : memref<8x8x8xf32, #tpu.memory_space<vmem>>, vector<8x8x8xf32>
      tpu.vector_store %arg9[%c0_42, %c0_43, %c0_44], %39 {strides = array<i32>} : memref<8x8x8xf32, #tpu.memory_space<vmem>>, vector<8x8x8xf32>,
    } else {
    }
    %c0 = arith.constant 0 : index
    %c0_1 = arith.constant 0 : index
    %c0_2 = arith.constant 0 : index
    %3 = vector.load %arg3[%c0, %c0_1, %c0_2] : memref<8x8x8xbf16, #tpu.memory_space<vmem>>, vector<8x8x8xbf16>
    %c0_3 = arith.constant 0 : index
    %c0_4 = arith.constant 0 : index
    %c0_5 = arith.constant 0 : index
    %4 = vector.load %arg4[%c0_3, %c0_4, %c0_5] : memref<8x8x8xbf16, #tpu.memory_space<vmem>>, vector<8x8x8xbf16>
    "tpu.trace_start"() <{level = 10 : i32, message = "bqd,bkd->bqk"}> : () -> ()
    %cst = arith.constant dense<0.000000e+00> : vector<8x8x8xf32>
    %5 = tpu.matmul %3, %4, %cst {dimension_numbers = #tpu.dot_dimension_numbers<[2], [2], [1], [1], [0, 0, 0, 1, 1, 1], [0], [0]>} : vector<8x8x8xbf16>, vector<8x8x8xbf16>, vector<8x8x8xf32> -> vector<8x8x8xf32>
    "tpu.trace_stop"() : () -> ()
    %cst_6 = arith.constant 0.353553385 : f32
    %6 = vector.broadcast %cst_6 : f32 to vector<8x8x8xf32>
    %7 = arith.mulf %5, %6 : vector<8x8x8xf32>
    %c0_7 = arith.constant 0 : index
    %c0_8 = arith.constant 0 : index
    %c0_9 = arith.constant 0 : index
    %8 = vector.load %arg7[%c0_7, %c0_8, %c0_9] : memref<8x8x1xf32, #tpu.memory_space<vmem>>, vector<8x8x1xf32>
    %cst_10 = arith.constant dense<0xFF800000> : vector<8x8xf32>
    %9 = vector.multi_reduction <maximumf>, %7, %cst_10 [2] : vector<8x8x8xf32> to vector<8x8xf32>
    %10 = vector.shape_cast %9 : vector<8x8xf32> to vector<8x8x1xf32>
    %11 = arith.maximumf %8, %10 : vector<8x8x1xf32>
    %12 = arith.subf %8, %11 : vector<8x8x1xf32>
    %13 = math.exp %12 : vector<8x8x1xf32>
    %14 = vector.broadcast %11 : vector<8x8x1xf32> to vector<8x8x8xf32>
    %15 = arith.subf %7, %14 : vector<8x8x8xf32>
    %16 = math.exp %15 : vector<8x8x8xf32>
    %c0_11 = arith.constant 0 : index
    %c0_12 = arith.constant 0 : index
    %c0_13 = arith.constant 0 : index
    %17 = vector.load %arg8[%c0_11, %c0_12, %c0_13] : memref<8x8x1xf32, #tpu.memory_space<vmem>>, vector<8x8x1xf32>
    %18 = arith.mulf %13, %17 : vector<8x8x1xf32>
    %cst_14 = arith.constant dense<0.000000e+00> : vector<8x8xf32>
    %19 = vector.multi_reduction <add>, %16, %cst_14 [2] : vector<8x8x8xf32> to vector<8x8xf32>
    %20 = vector.shape_cast %19 : vector<8x8xf32> to vector<8x8x1xf32>
    %21 = arith.addf %18, %20 : vector<8x8x1xf32>
    %c0_15 = arith.constant 0 : index
    %c0_16 = arith.constant 0 : index
    %c0_17 = arith.constant 0 : index
    %22 = vector.load %arg8[%c0_15, %c0_16, %c0_17] : memref<8x8x1xf32, #tpu.memory_space<vmem>>, vector<8x8x1xf32>
    tpu.vector_store %arg8[%c0_15, %c0_16, %c0_17], %21 {strides = array<i32>} : memref<8x8x1xf32, #tpu.memory_space<vmem>>, vector<8x8x1xf32>,
    %c0_18 = arith.constant 0 : index
    %c0_19 = arith.constant 0 : index
    %c0_20 = arith.constant 0 : index
    %23 = vector.load %arg9[%c0_18, %c0_19, %c0_20] : memref<8x8x8xf32, #tpu.memory_space<vmem>>, vector<8x8x8xf32>
    %24 = vector.broadcast %13 : vector<8x8x1xf32> to vector<8x8x8xf32>
    %25 = arith.mulf %24, %23 : vector<8x8x8xf32>
    %26 = arith.truncf %16 : vector<8x8x8xf32> to vector<8x8x8xbf16>
    %c0_21 = arith.constant 0 : index
    %c0_22 = arith.constant 0 : index
    %c0_23 = arith.constant 0 : index
    %27 = vector.load %arg5[%c0_21, %c0_22, %c0_23] : memref<8x8x8xbf16, #tpu.memory_space<vmem>>, vector<8x8x8xbf16>
    "tpu.trace_start"() <{level = 10 : i32, message = "bqk,bkd->bqd"}> : () -> ()
    %cst_24 = arith.constant dense<0.000000e+00> : vector<8x8x8xf32>
    %28 = tpu.matmul %26, %27, %cst_24 {dimension_numbers = #tpu.dot_dimension_numbers<[2], [1], [1], [2], [0, 0, 0, 1, 1, 2], [0], [0]>} : vector<8x8x8xbf16>, vector<8x8x8xbf16>, vector<8x8x8xf32> -> vector<8x8x8xf32>
    "tpu.trace_stop"() : () -> ()
    %29 = arith.addf %25, %28 : vector<8x8x8xf32>
    %c0_25 = arith.constant 0 : index
    %c0_26 = arith.constant 0 : index
    %c0_27 = arith.constant 0 : index
    %30 = vector.load %arg9[%c0_25, %c0_26, %c0_27] : memref<8x8x8xf32, #tpu.memory_space<vmem>>, vector<8x8x8xf32>
    tpu.vector_store %arg9[%c0_25, %c0_26, %c0_27], %29 {strides = array<i32>} : memref<8x8x8xf32, #tpu.memory_space<vmem>>, vector<8x8x8xf32>,
    %c0_28 = arith.constant 0 : index
    %c0_29 = arith.constant 0 : index
    %c0_30 = arith.constant 0 : index
    %31 = vector.load %arg7[%c0_28, %c0_29, %c0_30] : memref<8x8x1xf32, #tpu.memory_space<vmem>>, vector<8x8x1xf32>
    tpu.vector_store %arg7[%c0_28, %c0_29, %c0_30], %11 {strides = array<i32>} : memref<8x8x1xf32, #tpu.memory_space<vmem>>, vector<8x8x1xf32>,
    %c0_i32_31 = arith.constant 0 : i32
    %32 = arith.cmpi eq, %arg2, %c0_i32_31 : i32
    %33 = arith.extui %32 : i1 to i32
    %c0_i32_32 = arith.constant 0 : i32
    %34 = arith.cmpi ne, %33, %c0_i32_32 : i32
    scf.if %34 {
      %c0_33 = arith.constant 0 : index
      %c0_34 = arith.constant 0 : index
      %c0_35 = arith.constant 0 : index
      %35 = vector.load %arg9[%c0_33, %c0_34, %c0_35] : memref<8x8x8xf32, #tpu.memory_space<vmem>>, vector<8x8x8xf32>
      %c0_36 = arith.constant 0 : index
      %c0_37 = arith.constant 0 : index
      %c0_38 = arith.constant 0 : index
      %36 = vector.load %arg8[%c0_36, %c0_37, %c0_38] : memref<8x8x1xf32, #tpu.memory_space<vmem>>, vector<8x8x1xf32>
      %37 = tpu.reciprocal %36 {approx = true} : vector<8x8x1xf32> -> vector<8x8x1xf32>
      %38 = vector.broadcast %37 : vector<8x8x1xf32> to vector<8x8x8xf32>
      %39 = arith.mulf %35, %38 : vector<8x8x8xf32>
      %40 = arith.truncf %39 : vector<8x8x8xf32> to vector<8x8x8xbf16>
      %c0_39 = arith.constant 0 : index
      %c0_40 = arith.constant 0 : index
      %c0_41 = arith.constant 0 : index
      %41 = vector.load %arg6[%c0_39, %c0_40, %c0_41] : memref<8x8x8xbf16, #tpu.memory_space<vmem>>, vector<8x8x8xbf16>
      tpu.vector_store %arg6[%c0_39, %c0_40, %c0_41], %40 {strides = array<i32>} : memref<8x8x8xbf16, #tpu.memory_space<vmem>>, vector<8x8x8xbf16>,
    } else {
    }
    return
  }
  func.func @transform_0(%arg0: i32, %arg1: i32, %arg2: i32) -> (i32, i32, i32) {
    %c0_i32 = arith.constant 0 : i32
    %c0_i32_0 = arith.constant 0 : i32
    return %arg0, %arg1, %c0_i32 : i32, i32, i32
  }
  func.func @transform_1(%arg0: i32, %arg1: i32, %arg2: i32) -> (i32, i32, i32) {
    %c0_i32 = arith.constant 0 : i32
    %c0_i32_0 = arith.constant 0 : i32
    return %arg0, %arg2, %c0_i32 : i32, i32, i32
  }
  func.func @transform_2(%arg0: i32, %arg1: i32, %arg2: i32) -> (i32, i32, i32) {
    %c0_i32 = arith.constant 0 : i32
    %c0_i32_0 = arith.constant 0 : i32
    return %arg0, %arg2, %c0_i32 : i32, i32, i32
  }
  func.func @transform_3(%arg0: i32, %arg1: i32, %arg2: i32) -> (i32, i32, i32) {
    %c0_i32 = arith.constant 0 : i32
    %c0_i32_0 = arith.constant 0 : i32
    return %arg0, %arg1, %c0_i32 : i32, i32, i32
  }
}

module attributes {stable_mosaic.version = 11 : i64} {
  func.func @kernel(%arg0: i32, %arg1: memref<16x64xbf16, #tpu.memory_space<vmem>>, %arg2: memref<64x32xbf16, #tpu.memory_space<vmem>>, %arg3: memref<1x32xf32, #tpu.memory_space<vmem>>, %arg4: memref<16x32xf32, #tpu.memory_space<vmem>>, %arg5: memref<1x32xf32, #tpu.memory_space<vmem>>, %arg6: memref<1x32xf32, #tpu.memory_space<vmem>>, %arg7: memref<16x32xf32, #tpu.memory_space<vmem>>) attributes {dimension_semantics = [#tpu.dimension_semantics<parallel>], iteration_bounds = array<i64: 1>, scalar_prefetch = 0 : i64, scratch_operands = 0 : i64, tpu.core_type = #tpu.core_type<tc>, window_params = [{transform_indices = @transform_0, window_bounds = array<i64: 16, 64>}, {pipeline_mode = #tpu.pipeline_mode<synchronous>, transform_indices = @transform_1, window_bounds = array<i64: 64, 32>}, {pipeline_mode = #tpu.pipeline_mode<synchronous>, transform_indices = @transform_2, window_bounds = array<i64: 1, 32>}, {transform_indices = @transform_3, window_bounds = array<i64: 16, 32>}, {pipeline_mode = #tpu.pipeline_mode<synchronous>, transform_indices = @transform_4, window_bounds = array<i64: 1, 32>}, {pipeline_mode = #tpu.pipeline_mode<synchronous>, transform_indices = @transform_5, window_bounds = array<i64: 1, 32>}, {transform_indices = @transform_6, window_bounds = array<i64: 16, 32>}]} {
    %c0 = arith.constant 0 : index
    %c0_0 = arith.constant 0 : index
    %0 = vector.load %arg1[%c0, %c0_0] : memref<16x64xbf16, #tpu.memory_space<vmem>>, vector<16x64xbf16>
    %c0_1 = arith.constant 0 : index
    %c0_2 = arith.constant 0 : index
    %1 = vector.load %arg2[%c0_1, %c0_2] : memref<64x32xbf16, #tpu.memory_space<vmem>>, vector<64x32xbf16>
    %cst = arith.constant dense<0.000000e+00> : vector<16x32xf32>
    %2 = tpu.matmul %0, %1, %cst {dimension_numbers = #tpu.dot_dimension_numbers<[1], [0], [0], [1], [0, 0, 1, 1], [], []>} : vector<16x64xbf16>, vector<64x32xbf16>, vector<16x32xf32> -> vector<16x32xf32>
    %c0_3 = arith.constant 0 : index
    %c0_4 = arith.constant 0 : index
    %3 = vector.load %arg3[%c0_3, %c0_4] : memref<1x32xf32, #tpu.memory_space<vmem>>, vector<1x32xf32>
    %4 = vector.broadcast %3 : vector<1x32xf32> to vector<16x32xf32>
    %5 = arith.addf %2, %4 : vector<16x32xf32>
    %c0_5 = arith.constant 0 : index
    %c0_6 = arith.constant 0 : index
    %6 = vector.load %arg4[%c0_5, %c0_6] : memref<16x32xf32, #tpu.memory_space<vmem>>, vector<16x32xf32>
    %7 = arith.addf %5, %6 : vector<16x32xf32>
    %cst_7 = arith.constant dense<0.000000e+00> : vector<16xf32>
    %8 = vector.multi_reduction <add>, %7, %cst_7 [1] : vector<16x32xf32> to vector<16xf32>
    %9 = vector.shape_cast %8 : vector<16xf32> to vector<16x1xf32>
    %cst_8 = arith.constant 3.200000e+01 : f32
    %10 = vector.broadcast %cst_8 : f32 to vector<16x1xf32>
    %11 = arith.divf %9, %10 : vector<16x1xf32>
    %12 = vector.broadcast %11 : vector<16x1xf32> to vector<16x32xf32>
    %13 = arith.subf %7, %12 : vector<16x32xf32>
    %14 = vector.broadcast %11 : vector<16x1xf32> to vector<16x32xf32>
    %15 = arith.subf %7, %14 : vector<16x32xf32>
    %16 = arith.mulf %13, %15 : vector<16x32xf32>
    %cst_9 = arith.constant dense<0.000000e+00> : vector<16xf32>
    %17 = vector.multi_reduction <add>, %16, %cst_9 [1] : vector<16x32xf32> to vector<16xf32>
    %18 = vector.shape_cast %17 : vector<16xf32> to vector<16x1xf32>
    %cst_10 = arith.constant 3.200000e+01 : f32
    %19 = vector.broadcast %cst_10 : f32 to vector<16x1xf32>
    %20 = arith.divf %18, %19 : vector<16x1xf32>
    %21 = vector.broadcast %11 : vector<16x1xf32> to vector<16x32xf32>
    %22 = arith.subf %7, %21 : vector<16x32xf32>
    %cst_11 = arith.constant 9.99999974E-6 : f32
    %23 = vector.broadcast %cst_11 : f32 to vector<16x1xf32>
    %24 = arith.addf %20, %23 : vector<16x1xf32>
    %25 = math.rsqrt %24 : vector<16x1xf32>
    %26 = vector.broadcast %25 : vector<16x1xf32> to vector<16x32xf32>
    %27 = arith.mulf %22, %26 : vector<16x32xf32>
    %c0_12 = arith.constant 0 : index
    %c0_13 = arith.constant 0 : index
    %28 = vector.load %arg5[%c0_12, %c0_13] : memref<1x32xf32, #tpu.memory_space<vmem>>, vector<1x32xf32>
    %29 = vector.broadcast %28 : vector<1x32xf32> to vector<16x32xf32>
    %30 = arith.mulf %27, %29 : vector<16x32xf32>
    %c0_14 = arith.constant 0 : index
    %c0_15 = arith.constant 0 : index
    %31 = vector.load %arg6[%c0_14, %c0_15] : memref<1x32xf32, #tpu.memory_space<vmem>>, vector<1x32xf32>
    %32 = vector.broadcast %31 : vector<1x32xf32> to vector<16x32xf32>
    %33 = arith.addf %30, %32 : vector<16x32xf32>
    %c0_16 = arith.constant 0 : index
    %c0_17 = arith.constant 0 : index
    %34 = vector.load %arg7[%c0_16, %c0_17] : memref<16x32xf32, #tpu.memory_space<vmem>>, vector<16x32xf32>
    tpu.vector_store %arg7[%c0_16, %c0_17], %33 {strides = array<i32>} : memref<16x32xf32, #tpu.memory_space<vmem>>, vector<16x32xf32>,
    return
  }
  func.func @transform_0(%arg0: i32) -> (i32, i32) {
    %c0_i32 = arith.constant 0 : i32
    %c0_i32_0 = arith.constant 0 : i32
    return %arg0, %c0_i32 : i32, i32
  }
  func.func @transform_1(%arg0: i32) -> (i32, i32) {
    %c0_i32 = arith.constant 0 : i32
    %c0_i32_0 = arith.constant 0 : i32
    %c0_i32_1 = arith.constant 0 : i32
    return %c0_i32, %c0_i32_0 : i32, i32
  }
  func.func @transform_2(%arg0: i32) -> (i32, i32) {
    %c0_i32 = arith.constant 0 : i32
    %c0_i32_0 = arith.constant 0 : i32
    %c0_i32_1 = arith.constant 0 : i32
    return %c0_i32, %c0_i32_0 : i32, i32
  }
  func.func @transform_3(%arg0: i32) -> (i32, i32) {
    %c0_i32 = arith.constant 0 : i32
    %c0_i32_0 = arith.constant 0 : i32
    return %arg0, %c0_i32 : i32, i32
  }
  func.func @transform_4(%arg0: i32) -> (i32, i32) {
    %c0_i32 = arith.constant 0 : i32
    %c0_i32_0 = arith.constant 0 : i32
    %c0_i32_1 = arith.constant 0 : i32
    return %c0_i32, %c0_i32_0 : i32, i32
  }
  func.func @transform_5(%arg0: i32) -> (i32, i32) {
    %c0_i32 = arith.constant 0 : i32
    %c0_i32_0 = arith.constant 0 : i32
    %c0_i32_1 = arith.constant 0 : i32
    return %c0_i32, %c0_i32_0 : i32, i32
  }
  func.func @transform_6(%arg0: i32) -> (i32, i32) {
    %c0_i32 = arith.constant 0 : i32
    %c0_i32_0 = arith.constant 0 : i32
    return %arg0, %c0_i32 : i32, i32
  }
}

module attributes {stable_mosaic.version = 11 : i64} {
  func.func @kernel(%arg0: i32, %arg1: memref<16x32xbf16, #tpu.memory_space<vmem>>, %arg2: memref<32x32xbf16, #tpu.memory_space<vmem>>, %arg3: memref<1x32xf32, #tpu.memory_space<vmem>>, %arg4: memref<16x32xf32, #tpu.memory_space<vmem>>, %arg5: memref<1x32xf32, #tpu.memory_space<vmem>>, %arg6: memref<1x32xf32, #tpu.memory_space<vmem>>, %arg7: memref<16x32xf32, #tpu.memory_space<vmem>>) attributes {dimension_semantics = [#tpu.dimension_semantics<parallel>], iteration_bounds = array<i64: 1>, scalar_prefetch = 0 : i64, scratch_operands = 0 : i64, tpu.core_type = #tpu.core_type<tc>, window_params = [{transform_indices = @transform_0, window_bounds = array<i64: 16, 32>}, {pipeline_mode = #tpu.pipeline_mode<synchronous>, transform_indices = @transform_1, window_bounds = array<i64: 32, 32>}, {pipeline_mode = #tpu.pipeline_mode<synchronous>, transform_indices = @transform_2, window_bounds = array<i64: 1, 32>}, {transform_indices = @transform_3, window_bounds = array<i64: 16, 32>}, {pipeline_mode = #tpu.pipeline_mode<synchronous>, transform_indices = @transform_4, window_bounds = array<i64: 1, 32>}, {pipeline_mode = #tpu.pipeline_mode<synchronous>, transform_indices = @transform_5, window_bounds = array<i64: 1, 32>}, {transform_indices = @transform_6, window_bounds = array<i64: 16, 32>}]} {
    %c0 = arith.constant 0 : index
    %c0_0 = arith.constant 0 : index
    %0 = vector.load %arg1[%c0, %c0_0] : memref<16x32xbf16, #tpu.memory_space<vmem>>, vector<16x32xbf16>
    %c0_1 = arith.constant 0 : index
    %c0_2 = arith.constant 0 : index
    %1 = vector.load %arg2[%c0_1, %c0_2] : memref<32x32xbf16, #tpu.memory_space<vmem>>, vector<32x32xbf16>
    %cst = arith.constant dense<0.000000e+00> : vector<16x32xf32>
    %2 = tpu.matmul %0, %1, %cst {dimension_numbers = #tpu.dot_dimension_numbers<[1], [0], [0], [1], [0, 0, 1, 1], [], []>} : vector<16x32xbf16>, vector<32x32xbf16>, vector<16x32xf32> -> vector<16x32xf32>
    %c0_3 = arith.constant 0 : index
    %c0_4 = arith.constant 0 : index
    %3 = vector.load %arg3[%c0_3, %c0_4] : memref<1x32xf32, #tpu.memory_space<vmem>>, vector<1x32xf32>
    %4 = vector.broadcast %3 : vector<1x32xf32> to vector<16x32xf32>
    %5 = arith.addf %2, %4 : vector<16x32xf32>
    %c0_5 = arith.constant 0 : index
    %c0_6 = arith.constant 0 : index
    %6 = vector.load %arg4[%c0_5, %c0_6] : memref<16x32xf32, #tpu.memory_space<vmem>>, vector<16x32xf32>
    %7 = arith.addf %5, %6 : vector<16x32xf32>
    %cst_7 = arith.constant dense<0.000000e+00> : vector<16xf32>
    %8 = vector.multi_reduction <add>, %7, %cst_7 [1] : vector<16x32xf32> to vector<16xf32>
    %9 = vector.shape_cast %8 : vector<16xf32> to vector<16x1xf32>
    %cst_8 = arith.constant 3.200000e+01 : f32
    %10 = vector.broadcast %cst_8 : f32 to vector<16x1xf32>
    %11 = arith.divf %9, %10 : vector<16x1xf32>
    %12 = vector.broadcast %11 : vector<16x1xf32> to vector<16x32xf32>
    %13 = arith.subf %7, %12 : vector<16x32xf32>
    %14 = vector.broadcast %11 : vector<16x1xf32> to vector<16x32xf32>
    %15 = arith.subf %7, %14 : vector<16x32xf32>
    %16 = arith.mulf %13, %15 : vector<16x32xf32>
    %cst_9 = arith.constant dense<0.000000e+00> : vector<16xf32>
    %17 = vector.multi_reduction <add>, %16, %cst_9 [1] : vector<16x32xf32> to vector<16xf32>
    %18 = vector.shape_cast %17 : vector<16xf32> to vector<16x1xf32>
    %cst_10 = arith.constant 3.200000e+01 : f32
    %19 = vector.broadcast %cst_10 : f32 to vector<16x1xf32>
    %20 = arith.divf %18, %19 : vector<16x1xf32>
    %21 = vector.broadcast %11 : vector<16x1xf32> to vector<16x32xf32>
    %22 = arith.subf %7, %21 : vector<16x32xf32>
    %cst_11 = arith.constant 9.99999974E-6 : f32
    %23 = vector.broadcast %cst_11 : f32 to vector<16x1xf32>
    %24 = arith.addf %20, %23 : vector<16x1xf32>
    %25 = math.rsqrt %24 : vector<16x1xf32>
    %26 = vector.broadcast %25 : vector<16x1xf32> to vector<16x32xf32>
    %27 = arith.mulf %22, %26 : vector<16x32xf32>
    %c0_12 = arith.constant 0 : index
    %c0_13 = arith.constant 0 : index
    %28 = vector.load %arg5[%c0_12, %c0_13] : memref<1x32xf32, #tpu.memory_space<vmem>>, vector<1x32xf32>
    %29 = vector.broadcast %28 : vector<1x32xf32> to vector<16x32xf32>
    %30 = arith.mulf %27, %29 : vector<16x32xf32>
    %c0_14 = arith.constant 0 : index
    %c0_15 = arith.constant 0 : index
    %31 = vector.load %arg6[%c0_14, %c0_15] : memref<1x32xf32, #tpu.memory_space<vmem>>, vector<1x32xf32>
    %32 = vector.broadcast %31 : vector<1x32xf32> to vector<16x32xf32>
    %33 = arith.addf %30, %32 : vector<16x32xf32>
    %c0_16 = arith.constant 0 : index
    %c0_17 = arith.constant 0 : index
    %34 = vector.load %arg7[%c0_16, %c0_17] : memref<16x32xf32, #tpu.memory_space<vmem>>, vector<16x32xf32>
    tpu.vector_store %arg7[%c0_16, %c0_17], %33 {strides = array<i32>} : memref<16x32xf32, #tpu.memory_space<vmem>>, vector<16x32xf32>,
    return
  }
  func.func @transform_0(%arg0: i32) -> (i32, i32) {
    %c0_i32 = arith.constant 0 : i32
    %c0_i32_0 = arith.constant 0 : i32
    return %arg0, %c0_i32 : i32, i32
  }
  func.func @transform_1(%arg0: i32) -> (i32, i32) {
    %c0_i32 = arith.constant 0 : i32
    %c0_i32_0 = arith.constant 0 : i32
    %c0_i32_1 = arith.constant 0 : i32
    return %c0_i32, %c0_i32_0 : i32, i32
  }
  func.func @transform_2(%arg0: i32) -> (i32, i32) {
    %c0_i32 = arith.constant 0 : i32
    %c0_i32_0 = arith.constant 0 : i32
    %c0_i32_1 = arith.constant 0 : i32
    return %c0_i32, %c0_i32_0 : i32, i32
  }
  func.func @transform_3(%arg0: i32) -> (i32, i32) {
    %c0_i32 = arith.constant 0 : i32
    %c0_i32_0 = arith.constant 0 : i32
    return %arg0, %c0_i32 : i32, i32
  }
  func.func @transform_4(%arg0: i32) -> (i32, i32) {
    %c0_i32 = arith.constant 0 : i32
    %c0_i32_0 = arith.constant 0 : i32
    %c0_i32_1 = arith.constant 0 : i32
    return %c0_i32, %c0_i32_0 : i32, i32
  }
  func.func @transform_5(%arg0: i32) -> (i32, i32) {
    %c0_i32 = arith.constant 0 : i32
    %c0_i32_0 = arith.constant 0 : i32
    %c0_i32_1 = arith.constant 0 : i32
    return %c0_i32, %c0_i32_0 : i32, i32
  }
  func.func @transform_6(%arg0: i32) -> (i32, i32) {
    %c0_i32 = arith.constant 0 : i32
    %c0_i32_0 = arith.constant 0 : i32
    return %arg0, %c0_i32 : i32, i32
  }
}

module attributes {stable_mosaic.version = 11 : i64} {
  func.func @kernel(%arg0: i32, %arg1: memref<16x32xf32, #tpu.memory_space<vmem>>, %arg2: memref<32x64xbf16, #tpu.memory_space<vmem>>, %arg3: memref<1x64xf32, #tpu.memory_space<vmem>>, %arg4: memref<16x64xbf16, #tpu.memory_space<vmem>>) attributes {dimension_semantics = [#tpu.dimension_semantics<parallel>], iteration_bounds = array<i64: 1>, scalar_prefetch = 0 : i64, scratch_operands = 0 : i64, tpu.core_type = #tpu.core_type<tc>, window_params = [{transform_indices = @transform_0, window_bounds = array<i64: 16, 32>}, {pipeline_mode = #tpu.pipeline_mode<synchronous>, transform_indices = @transform_1, window_bounds = array<i64: 32, 64>}, {pipeline_mode = #tpu.pipeline_mode<synchronous>, transform_indices = @transform_2, window_bounds = array<i64: 1, 64>}, {transform_indices = @transform_3, window_bounds = array<i64: 16, 64>}]} {
    %c0 = arith.constant 0 : index
    %c0_0 = arith.constant 0 : index
    %0 = vector.load %arg1[%c0, %c0_0] : memref<16x32xf32, #tpu.memory_space<vmem>>, vector<16x32xf32>
    %1 = arith.truncf %0 : vector<16x32xf32> to vector<16x32xbf16>
    %c0_1 = arith.constant 0 : index
    %c0_2 = arith.constant 0 : index
    %2 = vector.load %arg2[%c0_1, %c0_2] : memref<32x64xbf16, #tpu.memory_space<vmem>>, vector<32x64xbf16>
    %cst = arith.constant dense<0.000000e+00> : vector<16x64xf32>
    %3 = tpu.matmul %1, %2, %cst {dimension_numbers = #tpu.dot_dimension_numbers<[1], [0], [0], [1], [0, 0, 1, 1], [], []>} : vector<16x32xbf16>, vector<32x64xbf16>, vector<16x64xf32> -> vector<16x64xf32>
    %c0_3 = arith.constant 0 : index
    %c0_4 = arith.constant 0 : index
    %4 = vector.load %arg3[%c0_3, %c0_4] : memref<1x64xf32, #tpu.memory_space<vmem>>, vector<1x64xf32>
    %5 = vector.broadcast %4 : vector<1x64xf32> to vector<16x64xf32>
    %6 = arith.addf %3, %5 : vector<16x64xf32>
    %cst_5 = arith.constant 5.000000e-01 : f32
    %7 = vector.broadcast %cst_5 : f32 to vector<16x64xf32>
    %8 = arith.mulf %7, %6 : vector<16x64xf32>
    %cst_6 = arith.constant 0.707106769 : f32
    %9 = vector.broadcast %cst_6 : f32 to vector<16x64xf32>
    %10 = arith.mulf %6, %9 : vector<16x64xf32>
    %cst_7 = arith.constant 0.000000e+00 : f32
    %11 = vector.broadcast %cst_7 : f32 to vector<16x64xf32>
    %12 = arith.cmpf oge, %10, %11 : vector<16x64xf32>
    %cst_8 = arith.constant 1.000000e+00 : f32
    %cst_9 = arith.constant -1.000000e+00 : f32
    %13 = vector.broadcast %cst_8 : f32 to vector<16x64xf32>
    %14 = vector.broadcast %cst_9 : f32 to vector<16x64xf32>
    %15 = arith.select %12, %13, %14 : vector<16x64xi1>, vector<16x64xf32>
    %16 = math.absf %10 : vector<16x64xf32>
    %cst_10 = arith.constant 0.327591091 : f32
    %17 = vector.broadcast %cst_10 : f32 to vector<16x64xf32>
    %18 = arith.mulf %17, %16 : vector<16x64xf32>
    %cst_11 = arith.constant 1.000000e+00 : f32
    %19 = vector.broadcast %cst_11 : f32 to vector<16x64xf32>
    %20 = arith.addf %19, %18 : vector<16x64xf32>
    %cst_12 = arith.constant 1.000000e+00 : f32
    %21 = vector.broadcast %cst_12 : f32 to vector<16x64xf32>
    %22 = arith.divf %21, %20 : vector<16x64xf32>
    %cst_13 = arith.constant 1.06140542 : f32
    %23 = vector.broadcast %cst_13 : f32 to vector<16x64xf32>
    %24 = arith.mulf %23, %22 : vector<16x64xf32>
    %cst_14 = arith.constant -1.45315206 : f32
    %25 = vector.broadcast %cst_14 : f32 to vector<16x64xf32>
    %26 = arith.addf %24, %25 : vector<16x64xf32>
    %27 = arith.mulf %26, %22 : vector<16x64xf32>
    %cst_15 = arith.constant 1.42141378 : f32
    %28 = vector.broadcast %cst_15 : f32 to vector<16x64xf32>
    %29 = arith.addf %27, %28 : vector<16x64xf32>
    %30 = arith.mulf %29, %22 : vector<16x64xf32>
    %cst_16 = arith.constant -0.284496725 : f32
    %31 = vector.broadcast %cst_16 : f32 to vector<16x64xf32>
    %32 = arith.addf %30, %31 : vector<16x64xf32>
    %33 = arith.mulf %32, %22 : vector<16x64xf32>
    %cst_17 = arith.constant 0.254829586 : f32
    %34 = vector.broadcast %cst_17 : f32 to vector<16x64xf32>
    %35 = arith.addf %33, %34 : vector<16x64xf32>
    %36 = arith.mulf %35, %22 : vector<16x64xf32>
    %cst_18 = arith.constant 0.000000e+00 : f32
    %37 = vector.broadcast %cst_18 : f32 to vector<16x64xf32>
    %38 = arith.subf %37, %16 : vector<16x64xf32>
    %39 = arith.mulf %38, %16 : vector<16x64xf32>
    %40 = math.exp %39 : vector<16x64xf32>
    %41 = arith.mulf %36, %40 : vector<16x64xf32>
    %cst_19 = arith.constant 1.000000e+00 : f32
    %42 = vector.broadcast %cst_19 : f32 to vector<16x64xf32>
    %43 = arith.subf %42, %41 : vector<16x64xf32>
    %44 = arith.mulf %15, %43 : vector<16x64xf32>
    %cst_20 = arith.constant 1.000000e+00 : f32
    %45 = vector.broadcast %cst_20 : f32 to vector<16x64xf32>
    %46 = arith.addf %45, %44 : vector<16x64xf32>
    %47 = arith.mulf %8, %46 : vector<16x64xf32>
    %48 = arith.truncf %47 : vector<16x64xf32> to vector<16x64xbf16>
    %c0_21 = arith.constant 0 : index
    %c0_22 = arith.constant 0 : index
    %49 = vector.load %arg4[%c0_21, %c0_22] : memref<16x64xbf16, #tpu.memory_space<vmem>>, vector<16x64xbf16>
    tpu.vector_store %arg4[%c0_21, %c0_22], %48 {strides = array<i32>} : memref<16x64xbf16, #tpu.memory_space<vmem>>, vector<16x64xbf16>,
    return
  }
  func.func @transform_0(%arg0: i32) -> (i32, i32) {
    %c0_i32 = arith.constant 0 : i32
    %c0_i32_0 = arith.constant 0 : i32
    return %arg0, %c0_i32 : i32, i32
  }
  func.func @transform_1(%arg0: i32) -> (i32, i32) {
    %c0_i32 = arith.constant 0 : i32
    %c0_i32_0 = arith.constant 0 : i32
    %c0_i32_1 = arith.constant 0 : i32
    return %c0_i32, %c0_i32_0 : i32, i32
  }
  func.func @transform_2(%arg0: i32) -> (i32, i32) {
    %c0_i32 = arith.constant 0 : i32
    %c0_i32_0 = arith.constant 0 : i32
    %c0_i32_1 = arith.constant 0 : i32
    return %c0_i32, %c0_i32_0 : i32, i32
  }
  func.func @transform_3(%arg0: i32) -> (i32, i32) {
    %c0_i32 = arith.constant 0 : i32
    %c0_i32_0 = arith.constant 0 : i32
    return %arg0, %c0_i32 : i32, i32
  }
}

module attributes {stable_mosaic.version = 11 : i64} {
  func.func @kernel(%arg0: i32, %arg1: memref<16x64xbf16, #tpu.memory_space<vmem>>, %arg2: memref<64x32xbf16, #tpu.memory_space<vmem>>, %arg3: memref<1x32xf32, #tpu.memory_space<vmem>>, %arg4: memref<16x32xf32, #tpu.memory_space<vmem>>, %arg5: memref<1x32xf32, #tpu.memory_space<vmem>>, %arg6: memref<1x32xf32, #tpu.memory_space<vmem>>, %arg7: memref<16x32xf32, #tpu.memory_space<vmem>>) attributes {dimension_semantics = [#tpu.dimension_semantics<parallel>], iteration_bounds = array<i64: 1>, scalar_prefetch = 0 : i64, scratch_operands = 0 : i64, tpu.core_type = #tpu.core_type<tc>, window_params = [{transform_indices = @transform_0, window_bounds = array<i64: 16, 64>}, {pipeline_mode = #tpu.pipeline_mode<synchronous>, transform_indices = @transform_1, window_bounds = array<i64: 64, 32>}, {pipeline_mode = #tpu.pipeline_mode<synchronous>, transform_indices = @transform_2, window_bounds = array<i64: 1, 32>}, {transform_indices = @transform_3, window_bounds = array<i64: 16, 32>}, {pipeline_mode = #tpu.pipeline_mode<synchronous>, transform_indices = @transform_4, window_bounds = array<i64: 1, 32>}, {pipeline_mode = #tpu.pipeline_mode<synchronous>, transform_indices = @transform_5, window_bounds = array<i64: 1, 32>}, {transform_indices = @transform_6, window_bounds = array<i64: 16, 32>}]} {
    %c0 = arith.constant 0 : index
    %c0_0 = arith.constant 0 : index
    %0 = vector.load %arg1[%c0, %c0_0] : memref<16x64xbf16, #tpu.memory_space<vmem>>, vector<16x64xbf16>
    %c0_1 = arith.constant 0 : index
    %c0_2 = arith.constant 0 : index
    %1 = vector.load %arg2[%c0_1, %c0_2] : memref<64x32xbf16, #tpu.memory_space<vmem>>, vector<64x32xbf16>
    %cst = arith.constant dense<0.000000e+00> : vector<16x32xf32>
    %2 = tpu.matmul %0, %1, %cst {dimension_numbers = #tpu.dot_dimension_numbers<[1], [0], [0], [1], [0, 0, 1, 1], [], []>} : vector<16x64xbf16>, vector<64x32xbf16>, vector<16x32xf32> -> vector<16x32xf32>
    %c0_3 = arith.constant 0 : index
    %c0_4 = arith.constant 0 : index
    %3 = vector.load %arg3[%c0_3, %c0_4] : memref<1x32xf32, #tpu.memory_space<vmem>>, vector<1x32xf32>
    %4 = vector.broadcast %3 : vector<1x32xf32> to vector<16x32xf32>
    %5 = arith.addf %2, %4 : vector<16x32xf32>
    %c0_5 = arith.constant 0 : index
    %c0_6 = arith.constant 0 : index
    %6 = vector.load %arg4[%c0_5, %c0_6] : memref<16x32xf32, #tpu.memory_space<vmem>>, vector<16x32xf32>
    %7 = arith.addf %5, %6 : vector<16x32xf32>
    %cst_7 = arith.constant dense<0.000000e+00> : vector<16xf32>
    %8 = vector.multi_reduction <add>, %7, %cst_7 [1] : vector<16x32xf32> to vector<16xf32>
    %9 = vector.shape_cast %8 : vector<16xf32> to vector<16x1xf32>
    %cst_8 = arith.constant 3.200000e+01 : f32
    %10 = vector.broadcast %cst_8 : f32 to vector<16x1xf32>
    %11 = arith.divf %9, %10 : vector<16x1xf32>
    %12 = vector.broadcast %11 : vector<16x1xf32> to vector<16x32xf32>
    %13 = arith.subf %7, %12 : vector<16x32xf32>
    %14 = vector.broadcast %11 : vector<16x1xf32> to vector<16x32xf32>
    %15 = arith.subf %7, %14 : vector<16x32xf32>
    %16 = arith.mulf %13, %15 : vector<16x32xf32>
    %cst_9 = arith.constant dense<0.000000e+00> : vector<16xf32>
    %17 = vector.multi_reduction <add>, %16, %cst_9 [1] : vector<16x32xf32> to vector<16xf32>
    %18 = vector.shape_cast %17 : vector<16xf32> to vector<16x1xf32>
    %cst_10 = arith.constant 3.200000e+01 : f32
    %19 = vector.broadcast %cst_10 : f32 to vector<16x1xf32>
    %20 = arith.divf %18, %19 : vector<16x1xf32>
    %21 = vector.broadcast %11 : vector<16x1xf32> to vector<16x32xf32>
    %22 = arith.subf %7, %21 : vector<16x32xf32>
    %cst_11 = arith.constant 9.99999974E-6 : f32
    %23 = vector.broadcast %cst_11 : f32 to vector<16x1xf32>
    %24 = arith.addf %20, %23 : vector<16x1xf32>
    %25 = math.rsqrt %24 : vector<16x1xf32>
    %26 = vector.broadcast %25 : vector<16x1xf32> to vector<16x32xf32>
    %27 = arith.mulf %22, %26 : vector<16x32xf32>
    %c0_12 = arith.constant 0 : index
    %c0_13 = arith.constant 0 : index
    %28 = vector.load %arg5[%c0_12, %c0_13] : memref<1x32xf32, #tpu.memory_space<vmem>>, vector<1x32xf32>
    %29 = vector.broadcast %28 : vector<1x32xf32> to vector<16x32xf32>
    %30 = arith.mulf %27, %29 : vector<16x32xf32>
    %c0_14 = arith.constant 0 : index
    %c0_15 = arith.constant 0 : index
    %31 = vector.load %arg6[%c0_14, %c0_15] : memref<1x32xf32, #tpu.memory_space<vmem>>, vector<1x32xf32>
    %32 = vector.broadcast %31 : vector<1x32xf32> to vector<16x32xf32>
    %33 = arith.addf %30, %32 : vector<16x32xf32>
    %c0_16 = arith.constant 0 : index
    %c0_17 = arith.constant 0 : index
    %34 = vector.load %arg7[%c0_16, %c0_17] : memref<16x32xf32, #tpu.memory_space<vmem>>, vector<16x32xf32>
    tpu.vector_store %arg7[%c0_16, %c0_17], %33 {strides = array<i32>} : memref<16x32xf32, #tpu.memory_space<vmem>>, vector<16x32xf32>,
    return
  }
  func.func @transform_0(%arg0: i32) -> (i32, i32) {
    %c0_i32 = arith.constant 0 : i32
    %c0_i32_0 = arith.constant 0 : i32
    return %arg0, %c0_i32 : i32, i32
  }
  func.func @transform_1(%arg0: i32) -> (i32, i32) {
    %c0_i32 = arith.constant 0 : i32
    %c0_i32_0 = arith.constant 0 : i32
    %c0_i32_1 = arith.constant 0 : i32
    return %c0_i32, %c0_i32_0 : i32, i32
  }
  func.func @transform_2(%arg0: i32) -> (i32, i32) {
    %c0_i32 = arith.constant 0 : i32
    %c0_i32_0 = arith.constant 0 : i32
    %c0_i32_1 = arith.constant 0 : i32
    return %c0_i32, %c0_i32_0 : i32, i32
  }
  func.func @transform_3(%arg0: i32) -> (i32, i32) {
    %c0_i32 = arith.constant 0 : i32
    %c0_i32_0 = arith.constant 0 : i32
    return %arg0, %c0_i32 : i32, i32
  }
  func.func @transform_4(%arg0: i32) -> (i32, i32) {
    %c0_i32 = arith.constant 0 : i32
    %c0_i32_0 = arith.constant 0 : i32
    %c0_i32_1 = arith.constant 0 : i32
    return %c0_i32, %c0_i32_0 : i32, i32
  }
  func.func @transform_5(%arg0: i32) -> (i32, i32) {
    %c0_i32 = arith.constant 0 : i32
    %c0_i32_0 = arith.constant 0 : i32
    %c0_i32_1 = arith.constant 0 : i32
    return %c0_i32, %c0_i32_0 : i32, i32
  }
  func.func @transform_6(%arg0: i32) -> (i32, i32) {
    %c0_i32 = arith.constant 0 : i32
    %c0_i32_0 = arith.constant 0 : i32
    return %arg0, %c0_i32 : i32, i32
  }
}

</mosaic_0001>

<bundles_post_ra>
// kernel: _lambda_.13
= control target key start
LH: loop header
LB: loop body
LE: loop exit
PB: predicated region body
PF: predicated region fallthrough
CT: control target
= control target key end

     0   :  { %vm51_vm0 = vcmask 1043456   ;;  %v341_v0 = vmov 0.0   ;;  %vm342_vm1 = vmmov 0   ;;  %vm41_vm2 = vcmask 64512   ;;  %s454_s1 = inlined_call_operand.vmem [shape: bf16[8,16], index: 1, kind: input, shape index: {}]   ;;  %s455_s0 = inlined_call_operand.vmem [shape: bf16[38,8], index: 0, kind: input, shape index: {}]   ;;  %s456_s2 = inlined_call_operand.vmem [shape: f32[1,16], index: 2, kind: input, shape index: {}]   ;;  %s457_s3 = inlined_call_operand.vmem [shape: bf16[38,16], index: 3, kind: output, shape index: {}]  }
   0x1   :  { %299 = vmatprep.subr.bf16.mxu0 %v341_v0  ;;  %313 = vmatprep.subr.bf16.mxu1 %v341_v0  ;;  %v20_v1 = vld [vmem:[%s454_s1] sm:$0xf]  ;;  %v319_v4 = vld [vmem:[%s455_s0 + $0x8] sm:$0xff]   ;;  %v320_v5 = vld [vmem:[%s455_s0 + $0x10] ss:$0 sps:$4 sm:$0x77]  }
   0x2   :  { %v53_v2 = vsel %vm51_vm0, %v20_v1, 0  ;;  %301 = vmatprep.mubr.msk.bf16.mxu0 %vm342_vm1, %v341_v0  ;;  %305 = vmatprep.mubr.msk.bf16.mxu1 %vm342_vm1, %v341_v0  ;;  %v318_v3 = vld [vmem:[%s455_s0] sm:$0xff]   ;;  %vm267_vm7 = vcmask 125952   ;;  %vm272_vm9 = vcmask 124928  }
   0x3   :  { %300 = vmatpush3.bf16.msra.mxu0 %v53_v2  ;;  %314 = vmatpush3.bf16.msra.mxu1 %v53_v2  ;;  %v278_v6 = vld [vmem:[%s456_s2] ss:$0 sm:$0xff] }
   0x6   :  { %302 = vmatmul.mubr.msk.bf16.vlgmr.msra.gmra.mrb[0].mxu0 %vm41_vm2, %v318_v3  ;;  %306 = vmatmul.mubr.msk.bf16.vlgmr.msra.gmra.mrb[0].mxu1 %vm41_vm2, %v319_v4 }
   0x7   :  { %309 = vmatprep.mubr.msk.bf16.mxu1 %vm342_vm1, %v341_v0 }
   0xe   :  { %310 = vmatmul.mubr.msk.bf16.gmra.mrb[4].mxu1 %vm41_vm2, %v320_v5 }
  0xd9   :  { %v89_v7 = vpop.f32.mrb[0].mxu0  ;;  %v97_v8 = vpop.f32.mrb[0].mxu1 }
  0xda   :  { %v379_v9 = vadd.f32 %v278_v6, %v89_v7  ;;  %v381_v10 = vadd.f32 %v278_v6, %v97_v8  ;;  %v303_v11 = vpop.f32.mrb[1].mxu0  ;;  %v307_v12 = vpop.f32.mrb[1].mxu1 }
  0xdb   :  { %v92_v13 = vpop.f32.mrb[2].mxu0  ;;  %v100_v14 = vpop.f32.mrb[2].mxu1 }
  0xdc   :  { %v384_v15 = vmul.f32 0.70710677, %v379_v9  ;;  %v387_v16 = vmul.f32 0.70710677, %v381_v10  ;;  %v389_v17 = vadd.f32 %v278_v6, %v92_v13  ;;  %v391_v18 = vadd.f32 %v278_v6, %v100_v14  ;;  %v308_v19 = vpop.f32.mrb[3].mxu1  ;;  %v304_v20 = vpop.f32.mrb[3].mxu0 }
  0xde   :  { %v131_v21 = vand.u32 2147483647, %v384_v15  ;;  %v133_v22 = vand.u32 2147483647, %v387_v16  ;;  %v396_v23 = vmul.f32 0.70710677, %v389_v17 }
  0xdf   :  { %v400_v27 = vmul.f32 0.70710677, %v391_v18  ;;  %vm121_vm3 = vcmp.ge.f32.partialorder %v384_v15, 0.0  ;;  %vm123_vm4 = vcmp.ge.f32.partialorder %v387_v16, 0.0 }
  0xe0   :  { %v136_v24 = vmul.f32 0.3275911, %v131_v21  ;;  %v138_v25 = vmul.f32 0.3275911, %v133_v22  ;;  %v132_v26 = vand.u32 2147483647, %v396_v23 }
  0xe1   :  { %v105_v30 = vpop.f32.mrb[4].mxu1  ;;  %v134_v35 = vand.u32 2147483647, %v400_v27  ;;  %v201_v41 = vsub.f32 0.0, %v131_v21  ;;  %v203_v43 = vsub.f32 0.0, %v133_v22  ;;  %vm122_vm5 = vcmp.ge.f32.partialorder %v396_v23, 0.0 }
  0xe2   :  { %v141_v28 = vadd.f32 1.0, %v136_v24  ;;  %v143_v29 = vadd.f32 1.0, %v138_v25  ;;  %v137_v31 = vmul.f32 0.3275911, %v132_v26  ;;  %v311_v32 = vpop.f32.mrb[5].mxu1  ;;  %v403_v37 = vadd.f32 %v278_v6, %v105_v30 }
  0xe3   :  { %v108_v33 = vpop.f32.mrb[6].mxu1  ;;  %v139_v38 = vmul.f32 0.3275911, %v134_v35  ;;  %v202_v45 = vsub.f32 0.0, %v132_v26  ;;  %v206_v47 = vmul.f32 %v201_v41, %v131_v21  ;;  %v208_v51 = vmul.f32 %v203_v43, %v133_v22 }
  0xe4   :  { %321 = vrcp.f32 %v141_v28  ;;  %v142_v34 = vadd.f32 1.0, %v137_v31  ;;  %v312_v36 = vpop.f32.mrb[7].mxu1  ;;  %v406_v39 = vmul.f32 0.70710677, %v403_v37  ;;  %v204_v55 = vsub.f32 0.0, %v134_v35 }
  0xe5   :  { %323 = vrcp.f32 %v143_v29  ;;  %v144_v40 = vadd.f32 1.0, %v139_v38  ;;  %v207_v54 = vmul.f32 %v202_v45, %v132_v26  ;;  %v211_v57 = vmul.f32 1.442695, %v206_v47 }
  0xe6   :  { %325 = vrcp.f32 %v142_v34  ;;  %v135_v42 = vand.u32 2147483647, %v406_v39  ;;  %v215_v60 = vmul.f32 1.442695, %v208_v51  ;;  %v209_v3 = vmul.f32 %v204_v55, %v134_v35 }
  0xe7   :  { %327 = vrcp.f32 %v144_v40  ;;  %v213_v2 = vmul.f32 1.442695, %v207_v54  ;;  %vm124_vm6 = vcmp.ge.f32.partialorder %v400_v27, 0.0  ;;  %vm125_vm8 = vcmp.ge.f32.partialorder %v406_v39, 0.0 }
  0xe8   :  { %v140_v44 = vmul.f32 0.3275911, %v135_v42  ;;  %v205_v6 = vsub.f32 0.0, %v135_v42  ;;  %v217_v19 = vmul.f32 1.442695, %v209_v3 }
  0xea   :  { %v145_v48 = vadd.f32 1.0, %v140_v44  ;;  %v210_v24 = vmul.f32 %v205_v6, %v135_v42 }
  0xec   :  { %329 = vrcp.f32 %v145_v48  ;;  %v219_v36 = vmul.f32 1.442695, %v210_v24 }
  0xed   :  { %331 = vpow2.f32 %v211_v57  ;;  %v343_v57 = vmov -1.0  }
  0xee   :  { %v322_v46 = vpop.eup %321  ;;  %333 = vpow2.f32 %v215_v60 }
  0xef   :  { %v324_v49 = vpop.eup %323  ;;  %v156_v50 = vmul.f32 1.0614054, %v322_v46  ;;  %335 = vpow2.f32 %v213_v2 }
  0xf0   :  { %v158_v52 = vmul.f32 1.0614054, %v324_v49  ;;  %v326_v56 = vpop.eup %325  ;;  %337 = vpow2.f32 %v217_v19 }
  0xf1   :  { %v161_v53 = vadd.f32 -1.4531521, %v156_v50  ;;  %v157_v61 = vmul.f32 1.0614054, %v326_v56  ;;  %v409_v63 = vpop.eup %327  ;;  %339 = vpow2.f32 %v219_v36 }
  0xf2   :  { %v163_v58 = vadd.f32 -1.4531521, %v158_v52  ;;  %v159_v5 = vmul.f32 1.0614054, %v409_v63 }
  0xf3   :  { %v166_v59 = vmul.f32 %v322_v46, %v161_v53  ;;  %v162_v1 = vadd.f32 -1.4531521, %v157_v61 }
  0xf4   :  { %v168_v62 = vmul.f32 %v324_v49, %v163_v58  ;;  %v164_v12 = vadd.f32 -1.4531521, %v159_v5  ;;  %v128_v58 = vsel %vm123_vm4, 1.0, %v343_v57 }
  0xf5   :  { %v171_v0 = vadd.f32 1.4214138, %v166_v59  ;;  %v167_v8 = vmul.f32 %v326_v56, %v162_v1 }
  0xf6   :  { %v173_v4 = vadd.f32 1.4214138, %v168_v62  ;;  %v412_v20 = vpop.eup %329  ;;  %v169_v22 = vmul.f32 %v409_v63, %v164_v12 }
  0xf7   :  { %v176_v7 = vmul.f32 %v322_v46, %v171_v0  ;;  %v172_v14 = vadd.f32 1.4214138, %v167_v8  ;;  %v160_v28 = vmul.f32 1.0614054, %v412_v20  ;;  %v332_v43 = vpop.eup %331  ;;  %v111_v0 = vmul.f32 0.5, %v379_v9 }
  0xf8   :  { %v178_v11 = vmul.f32 %v324_v49, %v173_v4  ;;  %v174_v30 = vadd.f32 1.4214138, %v169_v22  ;;  %v334_v45 = vpop.eup %333  ;;  %v113_v4 = vmul.f32 0.5, %v381_v10 }
  0xf9   :  { %v181_v13 = vadd.f32 -0.28449672, %v176_v7  ;;  %v177_v26 = vmul.f32 %v326_v56, %v172_v14  ;;  %v165_v33 = vadd.f32 -1.4531521, %v160_v28  ;;  %v336_v55 = vpop.eup %335  ;;  %v127_v7 = vsel %vm122_vm5, 1.0, %v343_v57 }
  0xfa   :  { %v183_v21 = vadd.f32 -0.28449672, %v178_v11  ;;  %v179_v35 = vmul.f32 %v409_v63, %v174_v30  ;;  %v338_v2 = vpop.eup %337 }
  0xfb   :  { %v186_v25 = vmul.f32 %v322_v46, %v181_v13  ;;  %v182_v32 = vadd.f32 -0.28449672, %v177_v26  ;;  %v170_v41 = vmul.f32 %v412_v20, %v165_v33  ;;  %v112_v13 = vmul.f32 0.5, %v389_v17  ;;  %v340_v22 = vpop.eup %339 }
  0xfc   :  { %v188_v29 = vmul.f32 %v324_v49, %v183_v21  ;;  %v184_v44 = vadd.f32 -0.28449672, %v179_v35  ;;  %v129_v21 = vsel %vm124_vm6, 1.0, %v343_v57  ;;  %v114_v17 = vmul.f32 0.5, %v391_v18 }
  0xfd   :  { %v191_v31 = vadd.f32 0.2548296, %v186_v25  ;;  %v187_v40 = vmul.f32 %v326_v56, %v182_v32  ;;  %v175_v50 = vadd.f32 1.4214138, %v170_v41  ;;  %v115_v33 = vmul.f32 0.5, %v403_v37 }
  0xfe   :  { %v193_v34 = vadd.f32 0.2548296, %v188_v29  ;;  %v189_v52 = vmul.f32 %v409_v63, %v184_v44 }
  0xff   :  { %v196_v38 = vmul.f32 %v322_v46, %v191_v31  ;;  %v192_v48 = vadd.f32 0.2548296, %v187_v40  ;;  %v180_v54 = vmul.f32 %v412_v20, %v175_v50  ;;  %v130_v31 = vsel %vm125_vm8, 1.0, %v343_v57 }
 0x100   :  { %v198_v42 = vmul.f32 %v324_v49, %v193_v34  ;;  %v126_v49 = vsel %vm121_vm3, 1.0, %v343_v57  ;;  %v194_v60 = vadd.f32 0.2548296, %v189_v52 }
 0x101   :  { %v221_v47 = vmul.f32 %v332_v43, %v196_v38  ;;  %v197_v46 = vmul.f32 %v326_v56, %v192_v48  ;;  %v185_v62 = vadd.f32 -0.28449672, %v180_v54 }
 0x102   :  { %v223_v51 = vmul.f32 %v334_v45, %v198_v42  ;;  %v199_v56 = vmul.f32 %v409_v63, %v194_v60 }
 0x103   :  { %v226_v53 = vsub.f32 1.0, %v221_v47  ;;  %v222_v16 = vmul.f32 %v336_v55, %v197_v46  ;;  %v190_v15 = vmul.f32 %v412_v20, %v185_v62 }
 0x104   :  { %v228_v59 = vsub.f32 1.0, %v223_v51  ;;  %v224_v8 = vmul.f32 %v338_v2, %v199_v56 }
 0x105   :  { %v231_v61 = vmul.f32 %v226_v53, %v126_v49  ;;  %v227_v5 = vsub.f32 1.0, %v222_v16  ;;  %v195_v12 = vadd.f32 0.2548296, %v190_v15 }
 0x106   :  { %v233_v1 = vmul.f32 %v228_v59, %v128_v58  ;;  %v229_v63 = vsub.f32 1.0, %v224_v8 }
 0x107   :  { %v236_v3 = vadd.f32 1.0, %v231_v61  ;;  %v232_v11 = vmul.f32 %v227_v5, %v127_v7  ;;  %v200_v10 = vmul.f32 %v412_v20, %v195_v12 }
 0x108   :  { %v238_v6 = vadd.f32 1.0, %v233_v1  ;;  %v234_v25 = vmul.f32 %v229_v63, %v129_v21 }
 0x109   :  { %v241_v23 = vmul.f32 %v236_v3, %v111_v0  ;;  %v237_v19 = vadd.f32 1.0, %v232_v11  ;;  %v225_v26 = vmul.f32 %v340_v22, %v200_v10 }
 0x10a   :  { %v243_v9 = vmul.f32 %v238_v6, %v113_v4  ;;  %v239_v20 = vadd.f32 1.0, %v234_v25 }
 0x10b   :  { %v290_v14 = vpack.c.bf16 %v241_v23, %v241_v23  ;;  %v242_v27 = vmul.f32 %v237_v19, %v112_v13  ;;  %v230_v29 = vsub.f32 1.0, %v225_v26 }
 0x10c   :  { %v292_v24 = vpack.c.bf16 %v243_v9, %v243_v9  ;;  %v244_v30 = vmul.f32 %v239_v20, %v114_v17 }
 0x10d   :  { %268 = vst.msk [vmem:[%s457_s3] sm:$0xf] %vm267_vm7, %v290_v14  ;;  %v291_v28 = vpack.c.bf16 %v242_v27, %v242_v27  ;;  %v235_v32 = vmul.f32 %v230_v29, %v130_v31 }
 0x10e   :  { %270 = vst.msk [vmem:[%s457_s3 + $0x8] sm:$0xf] %vm267_vm7, %v292_v24  ;;  %v293_v39 = vpack.c.bf16 %v244_v30, %v244_v30 }
 0x10f   :  { %269 = vst.msk [vmem:[%s457_s3 + $0x4] sm:$0xf] %vm267_vm7, %v291_v28  ;;  %v240_v34 = vadd.f32 1.0, %v235_v32 }
 0x110   :  { %271 = vst.msk [vmem:[%s457_s3 + $0xc] sm:$0xf] %vm267_vm7, %v293_v39 }
 0x111   :  { %v245_v18 = vmul.f32 %v240_v34, %v115_v33 }
 0x113   :  { %v294_v35 = vpack.c.bf16 %v245_v18, %v245_v18 }
 0x115   :  { %273 = vst.msk [vmem:[%s457_s3 + $0x10] sm:$0x7] %vm272_vm9, %v294_v35 }

// kernel: _lambda_.15
= control target key start
LH: loop header
LB: loop body
LE: loop exit
PB: predicated region body
PF: predicated region fallthrough
CT: control target
= control target key end

     0   :  { %vm25_vm0 = vcmask 261120   ;;  %v174_v16 = vmov 0.0   ;;  %vm175_vm1 = vmmov 0   ;;  %s237_s0 = inlined_call_operand.vmem [shape: bf16[16,32], index: 0, kind: input, shape index: {}]   ;;  %s238_s1 = inlined_call_operand.vmem [shape: bf16[32,32], index: 1, kind: input, shape index: {}]   ;;  %s239_s3 = inlined_call_operand.vmem [shape: f32[1,32], index: 3, kind: input, shape index: {}]   ;;  %s240_s4 = inlined_call_operand.vmem [shape: f32[1,32], index: 4, kind: input, shape index: {}, may-alias: {2,4}]   ;;  %s241_s2 = inlined_call_operand.vmem [shape: f32[1,32], index: 2, kind: input, shape index: {}, may-alias: {2,4}]   ;;  %s242_s5 = inlined_call_operand.vmem [shape: f32[16,32], index: 5, kind: output, shape index: {}]  }
   0x1   :  { %v152_v0 = vld [vmem:[%s237_s0] sm:$0xff]   ;;  %158 = vmatprep.subr.bf16.mxu0 %v174_v16  ;;  %v169_v17 = vld [vmem:[%s238_s1 + $0x8] sm:$0xff]   ;;  %162 = vmatprep.mubr.msk.bf16.mxu0 %vm175_vm1, %v174_v16 }
   0x2   :  { %v153_v1 = vunpack.c.l.bf16 %v152_v0  ;;  %v154_v2 = vunpack.c.h.bf16 %v152_v0  ;;  %v168_v15 = vld [vmem:[%s238_s1] sm:$0xff]  }
   0x3   :  { %159 = vmatpush3.bf16.msra.mxu0 %v168_v15  ;;  %v145_v26 = vld [vmem:[%s239_s3] ss:$0 sm:$0xff] }
   0x4   :  { %v26_v3 = vsel %vm25_vm0, %v153_v1, 0.0  ;;  %v29_v4 = vsel %vm25_vm0, %v154_v2, 0.0  ;;  %160 = vmatprep.subr.bf16.mxu0 %v174_v16  ;;  %v146_v30 = vld [vmem:[%s240_s4] ss:$0 sm:$0xff] }
   0x5   :  { %27 = vadd.xlane.f32.xlu0 %v26_v3  ;;  %v147_v35 = vld [vmem:[%s241_s2] ss:$0 sm:$0xff] }
   0x7   :  { %161 = vmatpush3.bf16.msra.mxu0 %v169_v17 }
   0x9   :  { %30 = vadd.xlane.f32.xlu0 %v29_v4 }
  0x92   :  { %v28_v5 = vpop.xlane.xlu0 %27 }
  0x93   :  { %v33_v6 = vmul.f32 0.03125, %v28_v5 }
  0x95   :  { %v35_v7 = vsub.f32 %v153_v1, %v33_v6 }
  0x96   :  { %v31_v8 = vpop.xlane.xlu0 %30 }
  0x97   :  { %v34_v9 = vmul.f32 0.03125, %v31_v8  ;;  %v37_v10 = vmul.f32 %v35_v7, %v35_v7 }
  0x99   :  { %v36_v11 = vsub.f32 %v154_v2, %v34_v9  ;;  %v39_v12 = vsel %vm25_vm0, %v37_v10, 0.0 }
  0x9a   :  { %40 = vadd.xlane.f32.xlu1 %v39_v12 }
  0x9b   :  { %v38_v13 = vmul.f32 %v36_v11, %v36_v11 }
  0x9d   :  { %v42_v14 = vsel %vm25_vm0, %v38_v13, 0.0 }
  0x9e   :  { %43 = vadd.xlane.f32.xlu1 %v42_v14 }
 0x127   :  { %v41_v18 = vpop.xlane.xlu1 %40 }
 0x128   :  { %v45_v19 = vmul.f32 0.03125, %v41_v18 }
 0x12a   :  { %v47_v20 = vadd.f32 1e-05, %v45_v19 }
 0x12b   :  { %v44_v21 = vpop.xlane.xlu1 %43 }
 0x12c   :  { %170 = vrsqrt.f32 %v47_v20  ;;  %v46_v22 = vmul.f32 0.03125, %v44_v21 }
 0x12e   :  { %v48_v23 = vadd.f32 1e-05, %v46_v22 }
 0x130   :  { %172 = vrsqrt.f32 %v48_v23 }
 0x136   :  { %v171_v24 = vpop.eup %170 }
 0x137   :  { %v51_v25 = vmul.f32 %v171_v24, %v35_v7 }
 0x139   :  { %v60_v29 = vmul.f32 %v145_v26, %v51_v25 }
 0x13a   :  { %v173_v27 = vpop.eup %172 }
 0x13b   :  { %v52_v28 = vmul.f32 %v173_v27, %v36_v11  ;;  %v69_v32 = vadd.f32 %v146_v30, %v60_v29 }
 0x13d   :  { %v61_v31 = vmul.f32 %v145_v26, %v52_v28 }
 0x13f   :  { %v70_v33 = vadd.f32 %v146_v30, %v61_v31 }
 0x141   :  { %v71_v34 = vpack.c.bf16 %v70_v33, %v69_v32 }
 0x143   :  { %163 = vmatmul.mubr.msk.bf16.vlgmr.msra.gmra.mrb[0].mxu0 %vm25_vm0, %v71_v34 }
 0x216   :  { %v132_v36 = vpop.f32.mrb[0].mxu0 }
 0x217   :  { %v133_v37 = vadd.f32 %v147_v35, %v132_v36  ;;  %v164_v38 = vpop.f32.mrb[1].mxu0 }
 0x218   :  { %v135_v39 = vpop.f32.mrb[2].mxu0 }
 0x219   :  { %139 = vst.msk [vmem:[%s242_s5] sm:$0xff] %vm25_vm0, %v133_v37  ;;  %v136_v40 = vadd.f32 %v147_v35, %v135_v39  ;;  %v165_v41 = vpop.f32.mrb[3].mxu0 }
 0x21b   :  { %140 = vst.msk [vmem:[%s242_s5 + $0x8] sm:$0xff] %vm25_vm0, %v136_v40 }

// kernel: _lambda_.16
= control target key start
LH: loop header
LB: loop body
LE: loop exit
PB: predicated region body
PF: predicated region fallthrough
CT: control target
= control target key end

     0   :  { %v124_v0 = vmov 0.0   ;;  %vm125_vm0 = vmmov 0   ;;  %vm41_vm1 = vcmask 261120   ;;  %vm94_vm2 = vcmask 781312   ;;  %s167_s1 = inlined_call_operand.vmem [shape: bf16[32,96], index: 1, kind: input, shape index: {}]   ;;  %s168_s0 = inlined_call_operand.vmem [shape: f32[16,32], index: 0, kind: input, shape index: {}]   ;;  %s169_s2 = inlined_call_operand.vmem [shape: f32[1,96], index: 2, kind: input, shape index: {}]   ;;  %s170_s3 = inlined_call_operand.vmem [shape: bf16[16,96], index: 3, kind: output, shape index: {}]  }
   0x1   :  { %112 = vmatprep.subr.bf16.mxu0 %v124_v0  ;;  %v122_v1 = vld [vmem:[%s167_s1] sm:$0xff]   ;;  %116 = vmatprep.mubr.msk.bf16.mxu0 %vm125_vm0, %v124_v0  ;;  %v123_v2 = vld [vmem:[%s167_s1 + $0x8] sm:$0xff]  }
   0x2   :  { %113 = vmatpush3.bf16.msra.mxu0 %v122_v1  ;;  %v15_v3 = vld [vmem:[%s168_s0] sm:$0xff]  ;;  %v16_v4 = vld [vmem:[%s168_s0 + $0x8] sm:$0xff] }
   0x3   :  { %114 = vmatprep.subr.bf16.mxu0 %v124_v0  ;;  %v17_v5 = vpack.c.bf16 %v16_v4, %v15_v3  ;;  %v101_v6 = vld [vmem:[%s169_s2] ss:$0 sm:$0xff] }
   0x6   :  { %115 = vmatpush3.bf16.msra.mxu0 %v123_v2 }
   0x9   :  { %117 = vmatmul.mubr.msk.bf16.vlgmr.msra.gmra.mrb[0].mxu0 %vm41_vm1, %v17_v5 }
  0xdc   :  { %v79_v7 = vpop.f32.mrb[0].mxu0 }
  0xdd   :  { %v80_v8 = vadd.f32 %v101_v6, %v79_v7  ;;  %v118_v9 = vpop.f32.mrb[1].mxu0 }
  0xde   :  { %v82_v10 = vpop.f32.mrb[2].mxu0 }
  0xdf   :  { %v107_v11 = vpack.c.bf16 %v80_v8, %v80_v8  ;;  %v83_v12 = vadd.f32 %v101_v6, %v82_v10  ;;  %v119_v13 = vpop.f32.mrb[3].mxu0 }
  0xe1   :  { %95 = vst.msk [vmem:[%s170_s3] sm:$0xf] %vm94_vm2, %v107_v11  ;;  %v108_v14 = vpack.c.bf16 %v83_v12, %v83_v12 }
  0xe3   :  { %96 = vst.msk [vmem:[%s170_s3 + $0x4] sm:$0xf] %vm94_vm2, %v108_v14 }

// kernel: _lambda_.14
= control target key start
LH: loop header
LB: loop body
LE: loop exit
PB: predicated region body
PF: predicated region fallthrough
CT: control target
= control target key end

     0   :  { %v219_v0 = vmov 0.0   ;;  %vm220_vm0 = vmmov 0   ;;  %vm61_vm1 = vcmask 523264   ;;  %v221_v51 = vmov -1.0   ;;  %s266_s1 = inlined_call_operand.vmem [shape: bf16[64,32], index: 1, kind: input, shape index: {}]   ;;  %s267_s0 = inlined_call_operand.vmem [shape: bf16[16,64], index: 0, kind: input, shape index: {}]   ;;  %s268_s2 = inlined_call_operand.vmem [shape: f32[1,32], index: 2, kind: input, shape index: {}]   ;;  %s269_s3 = inlined_call_operand.vmem [shape: bf16[16,32], index: 3, kind: output, shape index: {}]  }
   0x1   :  { %191 = vmatprep.subr.bf16.mxu0 %v219_v0  ;;  %v206_v1 = vld [vmem:[%s266_s1] sm:$0xff]   ;;  %199 = vmatprep.mubr.msk.bf16.mxu0 %vm220_vm0, %v219_v0  ;;  %v207_v2 = vld [vmem:[%s266_s1 + $0x8] sm:$0xff]   ;;  %v208_v3 = vld [vmem:[%s266_s1 + $0x10] sm:$0xff]   ;;  %vm168_vm4 = vcmask 257024  }
   0x2   :  { %192 = vmatpush3.bf16.msra.mxu0 %v206_v1  ;;  %v209_v4 = vld [vmem:[%s266_s1 + $0x18] sm:$0xff]   ;;  %v210_v5 = vld [vmem:[%s267_s0] sm:$0xff]  }
   0x3   :  { %193 = vmatprep.subr.bf16.mxu0 %v219_v0  ;;  %v175_v6 = vld [vmem:[%s268_s2] ss:$0 sm:$0xff] }
   0x6   :  { %194 = vmatpush3.bf16.msra.mxu0 %v207_v2 }
   0x7   :  { %195 = vmatprep.subr.bf16.mxu0 %v219_v0 }
   0xa   :  { %196 = vmatpush3.bf16.msra.mxu0 %v208_v3 }
   0xb   :  { %197 = vmatprep.subr.bf16.mxu0 %v219_v0 }
   0xe   :  { %198 = vmatpush3.bf16.msra.mxu0 %v209_v4 }
  0x11   :  { %200 = vmatmul.mubr.msk.bf16.vlgmr.msra.gmra.mrb[0].mxu0 %vm61_vm1, %v210_v5 }
  0xe4   :  { %v99_v7 = vpop.f32.mrb[0].mxu0 }
  0xe5   :  { %v100_v8 = vadd.f32 %v175_v6, %v99_v7  ;;  %v201_v9 = vpop.f32.mrb[1].mxu0 }
  0xe6   :  { %v102_v10 = vpop.f32.mrb[2].mxu0 }
  0xe7   :  { %v108_v11 = vmul.f32 0.70710677, %v100_v8  ;;  %v103_v12 = vadd.f32 %v175_v6, %v102_v10  ;;  %v202_v13 = vpop.f32.mrb[3].mxu0  ;;  %v106_v56 = vmul.f32 0.5, %v100_v8 }
  0xe9   :  { %v114_v14 = vand.u32 2147483647, %v108_v11  ;;  %v109_v15 = vmul.f32 0.70710677, %v103_v12  ;;  %vm110_vm2 = vcmp.ge.f32.partialorder %v108_v11, 0.0  ;;  %v107_v61 = vmul.f32 0.5, %v103_v12 }
  0xea   :  { %v112_v52 = vsel %vm110_vm2, 1.0, %v221_v51 }
  0xeb   :  { %v116_v16 = vmul.f32 0.3275911, %v114_v14  ;;  %v115_v17 = vand.u32 2147483647, %v109_v15  ;;  %v142_v21 = vsub.f32 0.0, %v114_v14  ;;  %vm111_vm3 = vcmp.ge.f32.partialorder %v109_v15, 0.0 }
  0xec   :  { %v113_v58 = vsel %vm111_vm3, 1.0, %v221_v51 }
  0xed   :  { %v118_v18 = vadd.f32 1.0, %v116_v16  ;;  %v117_v19 = vmul.f32 0.3275911, %v115_v17  ;;  %v143_v22 = vsub.f32 0.0, %v115_v17  ;;  %v144_v24 = vmul.f32 %v142_v21, %v114_v14 }
  0xef   :  { %211 = vrcp.f32 %v118_v18  ;;  %v119_v20 = vadd.f32 1.0, %v117_v19  ;;  %v145_v28 = vmul.f32 %v143_v22, %v115_v17  ;;  %v146_v29 = vmul.f32 1.442695, %v144_v24 }
  0xf1   :  { %213 = vrcp.f32 %v119_v20  ;;  %v148_v34 = vmul.f32 1.442695, %v145_v28 }
  0xf2   :  { %215 = vpow2.f32 %v146_v29 }
  0xf3   :  { %217 = vpow2.f32 %v148_v34 }
  0xf9   :  { %v212_v23 = vpop.eup %211 }
  0xfa   :  { %v124_v25 = vmul.f32 1.0614054, %v212_v23 }
  0xfb   :  { %v214_v26 = vpop.eup %213 }
  0xfc   :  { %v126_v27 = vadd.f32 -1.4531521, %v124_v25  ;;  %v125_v30 = vmul.f32 1.0614054, %v214_v26  ;;  %v216_v45 = vpop.eup %215 }
  0xfd   :  { %v218_v49 = vpop.eup %217 }
  0xfe   :  { %v128_v31 = vmul.f32 %v212_v23, %v126_v27  ;;  %v127_v32 = vadd.f32 -1.4531521, %v125_v30 }
 0x100   :  { %v130_v33 = vadd.f32 1.4214138, %v128_v31  ;;  %v129_v35 = vmul.f32 %v214_v26, %v127_v32 }
 0x102   :  { %v132_v36 = vmul.f32 %v212_v23, %v130_v33  ;;  %v131_v37 = vadd.f32 1.4214138, %v129_v35 }
 0x104   :  { %v134_v38 = vadd.f32 -0.28449672, %v132_v36  ;;  %v133_v39 = vmul.f32 %v214_v26, %v131_v37 }
 0x106   :  { %v136_v40 = vmul.f32 %v212_v23, %v134_v38  ;;  %v135_v41 = vadd.f32 -0.28449672, %v133_v39 }
 0x108   :  { %v138_v42 = vadd.f32 0.2548296, %v136_v40  ;;  %v137_v43 = vmul.f32 %v214_v26, %v135_v41 }
 0x10a   :  { %v140_v44 = vmul.f32 %v212_v23, %v138_v42  ;;  %v139_v46 = vadd.f32 0.2548296, %v137_v43 }
 0x10c   :  { %v150_v47 = vmul.f32 %v216_v45, %v140_v44  ;;  %v141_v48 = vmul.f32 %v214_v26, %v139_v46 }
 0x10e   :  { %v152_v50 = vsub.f32 1.0, %v150_v47  ;;  %v151_v53 = vmul.f32 %v218_v49, %v141_v48 }
 0x110   :  { %v154_v54 = vmul.f32 %v152_v50, %v112_v52  ;;  %v153_v55 = vsub.f32 1.0, %v151_v53 }
 0x112   :  { %v156_v57 = vadd.f32 1.0, %v154_v54  ;;  %v155_v59 = vmul.f32 %v153_v55, %v113_v58 }
 0x114   :  { %v158_v60 = vmul.f32 %v156_v57, %v106_v56  ;;  %v157_v62 = vadd.f32 1.0, %v155_v59 }
 0x116   :  { %v184_v63 = vpack.c.bf16 %v158_v60, %v158_v60  ;;  %v159_v0 = vmul.f32 %v157_v62, %v107_v61 }
 0x118   :  { %169 = vst.msk [vmem:[%s269_s3] sm:$0xf] %vm168_vm4, %v184_v63  ;;  %v185_v1 = vpack.c.bf16 %v159_v0, %v159_v0 }
 0x11a   :  { %170 = vst.msk [vmem:[%s269_s3 + $0x4] sm:$0xf] %vm168_vm4, %v185_v1 }

// kernel: _lambda_.19
= control target key start
LH: loop header
LB: loop body
LE: loop exit
PB: predicated region body
PF: predicated region fallthrough
CT: control target
= control target key end

     0   :  { %v187_v0 = vmov 0.0   ;;  %vm188_vm0 = vmmov 0   ;;  %vm41_vm1 = vcmask 261120   ;;  %v189_v51 = vmov -1.0   ;;  %s231_s1 = inlined_call_operand.vmem [shape: bf16[32,64], index: 1, kind: input, shape index: {}]   ;;  %s232_s0 = inlined_call_operand.vmem [shape: f32[16,32], index: 0, kind: input, shape index: {}]   ;;  %s233_s2 = inlined_call_operand.vmem [shape: f32[1,64], index: 2, kind: input, shape index: {}]   ;;  %s234_s3 = inlined_call_operand.vmem [shape: bf16[16,64], index: 3, kind: output, shape index: {}]  }
   0x1   :  { %166 = vmatprep.subr.bf16.mxu0 %v187_v0  ;;  %v177_v1 = vld [vmem:[%s231_s1] sm:$0xff]   ;;  %170 = vmatprep.mubr.msk.bf16.mxu0 %vm188_vm0, %v187_v0  ;;  %v178_v2 = vld [vmem:[%s231_s1 + $0x8] sm:$0xff]   ;;  %vm148_vm4 = vcmask 519168  }
   0x2   :  { %167 = vmatpush3.bf16.msra.mxu0 %v177_v1  ;;  %v15_v3 = vld [vmem:[%s232_s0] sm:$0xff]  ;;  %v16_v4 = vld [vmem:[%s232_s0 + $0x8] sm:$0xff] }
   0x3   :  { %168 = vmatprep.subr.bf16.mxu0 %v187_v0  ;;  %v17_v5 = vpack.c.bf16 %v16_v4, %v15_v3  ;;  %v155_v6 = vld [vmem:[%s233_s2] ss:$0 sm:$0xff] }
   0x6   :  { %169 = vmatpush3.bf16.msra.mxu0 %v178_v2 }
   0x9   :  { %171 = vmatmul.mubr.msk.bf16.vlgmr.msra.gmra.mrb[0].mxu0 %vm41_vm1, %v17_v5 }
  0xdc   :  { %v79_v7 = vpop.f32.mrb[0].mxu0 }
  0xdd   :  { %v80_v8 = vadd.f32 %v155_v6, %v79_v7  ;;  %v172_v9 = vpop.f32.mrb[1].mxu0 }
  0xde   :  { %v82_v10 = vpop.f32.mrb[2].mxu0 }
  0xdf   :  { %v88_v11 = vmul.f32 0.70710677, %v80_v8  ;;  %v83_v12 = vadd.f32 %v155_v6, %v82_v10  ;;  %v173_v13 = vpop.f32.mrb[3].mxu0  ;;  %v86_v56 = vmul.f32 0.5, %v80_v8 }
  0xe1   :  { %v94_v14 = vand.u32 2147483647, %v88_v11  ;;  %v89_v15 = vmul.f32 0.70710677, %v83_v12  ;;  %vm90_vm2 = vcmp.ge.f32.partialorder %v88_v11, 0.0  ;;  %v87_v61 = vmul.f32 0.5, %v83_v12 }
  0xe2   :  { %v92_v52 = vsel %vm90_vm2, 1.0, %v189_v51 }
  0xe3   :  { %v96_v16 = vmul.f32 0.3275911, %v94_v14  ;;  %v95_v17 = vand.u32 2147483647, %v89_v15  ;;  %v122_v21 = vsub.f32 0.0, %v94_v14  ;;  %vm91_vm3 = vcmp.ge.f32.partialorder %v89_v15, 0.0 }
  0xe4   :  { %v93_v58 = vsel %vm91_vm3, 1.0, %v189_v51 }
  0xe5   :  { %v98_v18 = vadd.f32 1.0, %v96_v16  ;;  %v97_v19 = vmul.f32 0.3275911, %v95_v17  ;;  %v123_v22 = vsub.f32 0.0, %v95_v17  ;;  %v124_v24 = vmul.f32 %v122_v21, %v94_v14 }
  0xe7   :  { %179 = vrcp.f32 %v98_v18  ;;  %v99_v20 = vadd.f32 1.0, %v97_v19  ;;  %v125_v28 = vmul.f32 %v123_v22, %v95_v17  ;;  %v126_v29 = vmul.f32 1.442695, %v124_v24 }
  0xe9   :  { %181 = vrcp.f32 %v99_v20  ;;  %v128_v34 = vmul.f32 1.442695, %v125_v28 }
  0xea   :  { %183 = vpow2.f32 %v126_v29 }
  0xeb   :  { %185 = vpow2.f32 %v128_v34 }
  0xf1   :  { %v180_v23 = vpop.eup %179 }
  0xf2   :  { %v104_v25 = vmul.f32 1.0614054, %v180_v23 }
  0xf3   :  { %v182_v26 = vpop.eup %181 }
  0xf4   :  { %v106_v27 = vadd.f32 -1.4531521, %v104_v25  ;;  %v105_v30 = vmul.f32 1.0614054, %v182_v26  ;;  %v184_v45 = vpop.eup %183 }
  0xf5   :  { %v186_v49 = vpop.eup %185 }
  0xf6   :  { %v108_v31 = vmul.f32 %v180_v23, %v106_v27  ;;  %v107_v32 = vadd.f32 -1.4531521, %v105_v30 }
  0xf8   :  { %v110_v33 = vadd.f32 1.4214138, %v108_v31  ;;  %v109_v35 = vmul.f32 %v182_v26, %v107_v32 }
  0xfa   :  { %v112_v36 = vmul.f32 %v180_v23, %v110_v33  ;;  %v111_v37 = vadd.f32 1.4214138, %v109_v35 }
  0xfc   :  { %v114_v38 = vadd.f32 -0.28449672, %v112_v36  ;;  %v113_v39 = vmul.f32 %v182_v26, %v111_v37 }
  0xfe   :  { %v116_v40 = vmul.f32 %v180_v23, %v114_v38  ;;  %v115_v41 = vadd.f32 -0.28449672, %v113_v39 }
 0x100   :  { %v118_v42 = vadd.f32 0.2548296, %v116_v40  ;;  %v117_v43 = vmul.f32 %v182_v26, %v115_v41 }
 0x102   :  { %v120_v44 = vmul.f32 %v180_v23, %v118_v42  ;;  %v119_v46 = vadd.f32 0.2548296, %v117_v43 }
 0x104   :  { %v130_v47 = vmul.f32 %v184_v45, %v120_v44  ;;  %v121_v48 = vmul.f32 %v182_v26, %v119_v46 }
 0x106   :  { %v132_v50 = vsub.f32 1.0, %v130_v47  ;;  %v131_v53 = vmul.f32 %v186_v49, %v121_v48 }
 0x108   :  { %v134_v54 = vmul.f32 %v132_v50, %v92_v52  ;;  %v133_v55 = vsub.f32 1.0, %v131_v53 }
 0x10a   :  { %v136_v57 = vadd.f32 1.0, %v134_v54  ;;  %v135_v59 = vmul.f32 %v133_v55, %v93_v58 }
 0x10c   :  { %v138_v60 = vmul.f32 %v136_v57, %v86_v56  ;;  %v137_v62 = vadd.f32 1.0, %v135_v59 }
 0x10e   :  { %v161_v63 = vpack.c.bf16 %v138_v60, %v138_v60  ;;  %v139_v0 = vmul.f32 %v137_v62, %v87_v61 }
 0x110   :  { %149 = vst.msk [vmem:[%s234_s3] sm:$0xf] %vm148_vm4, %v161_v63  ;;  %v162_v1 = vpack.c.bf16 %v139_v0, %v139_v0 }
 0x112   :  { %150 = vst.msk [vmem:[%s234_s3 + $0x4] sm:$0xf] %vm148_vm4, %v162_v1 }

// kernel: _lambda_.20
= control target key start
LH: loop header
LB: loop body
LE: loop exit
PB: predicated region body
PF: predicated region fallthrough
CT: control target
= control target key end

     0   :  { %v208_v0 = vmov 0.0   ;;  %vm209_vm0 = vmmov 0   ;;  %vm70_vm1 = vcmask 523264   ;;  %vm119_vm2 = vcmask 261120   ;;  %s287_s1 = inlined_call_operand.vmem [shape: bf16[64,32], index: 1, kind: input, shape index: {}]   ;;  %s288_s0 = inlined_call_operand.vmem [shape: bf16[16,64], index: 0, kind: input, shape index: {}]   ;;  %s289_s2 = inlined_call_operand.vmem [shape: f32[1,32], index: 2, kind: input, shape index: {}, may-alias: {2,5}]   ;;  %s290_s3 = inlined_call_operand.vmem [shape: f32[16,32], index: 3, kind: input, shape index: {}]   ;;  %s291_s4 = inlined_call_operand.vmem [shape: f32[1,32], index: 4, kind: input, shape index: {}]   ;;  %s292_s5 = inlined_call_operand.vmem [shape: f32[1,32], index: 5, kind: input, shape index: {}, may-alias: {2,5}]   ;;  %s293_s6 = inlined_call_operand.vmem [shape: f32[16,32], index: 6, kind: output, shape index: {}]  }
   0x1   :  { %185 = vmatprep.subr.bf16.mxu0 %v208_v0  ;;  %v199_v1 = vld [vmem:[%s287_s1] sm:$0xff]   ;;  %193 = vmatprep.mubr.msk.bf16.mxu0 %vm209_vm0, %v208_v0  ;;  %v200_v2 = vld [vmem:[%s287_s1 + $0x8] sm:$0xff]   ;;  %v201_v3 = vld [vmem:[%s287_s1 + $0x10] sm:$0xff]  }
   0x2   :  { %186 = vmatpush3.bf16.msra.mxu0 %v199_v1  ;;  %v202_v4 = vld [vmem:[%s287_s1 + $0x18] sm:$0xff]   ;;  %v203_v5 = vld [vmem:[%s288_s0] sm:$0xff]   ;;  %v116_v12 = vld [vmem:[%s290_s3 + $0x8] sm:$0xff] }
   0x3   :  { %187 = vmatprep.subr.bf16.mxu0 %v208_v0  ;;  %v171_v6 = vld [vmem:[%s289_s2] ss:$0 sm:$0xff] }
   0x4   :  { %v115_v8 = vld [vmem:[%s290_s3] sm:$0xff] }
   0x5   :  { %v178_v36 = vld [vmem:[%s291_s4] ss:$0 sm:$0xff] }
   0x6   :  { %188 = vmatpush3.bf16.msra.mxu0 %v200_v2  ;;  %v179_v38 = vld [vmem:[%s292_s5] ss:$0 sm:$0xff] }
   0x7   :  { %189 = vmatprep.subr.bf16.mxu0 %v208_v0 }
   0xa   :  { %190 = vmatpush3.bf16.msra.mxu0 %v201_v3 }
   0xb   :  { %191 = vmatprep.subr.bf16.mxu0 %v208_v0 }
   0xe   :  { %192 = vmatpush3.bf16.msra.mxu0 %v202_v4 }
  0x11   :  { %194 = vmatmul.mubr.msk.bf16.vlgmr.msra.gmra.mrb[0].mxu0 %vm70_vm1, %v203_v5 }
  0xe4   :  { %v108_v7 = vpop.f32.mrb[0].mxu0 }
  0xe5   :  { %v109_v9 = vadd.f32 %v171_v6, %v108_v7  ;;  %v195_v10 = vpop.f32.mrb[1].mxu0 }
  0xe6   :  { %v111_v11 = vpop.f32.mrb[2].mxu0 }
  0xe7   :  { %v112_v13 = vadd.f32 %v171_v6, %v111_v11  ;;  %v196_v14 = vpop.f32.mrb[3].mxu0  ;;  %v117_v15 = vadd.f32 %v115_v8, %v109_v9 }
  0xe9   :  { %v120_v16 = vsel %vm119_vm2, %v117_v15, 0.0  ;;  %v118_v17 = vadd.f32 %v116_v12, %v112_v13 }
  0xea   :  { %121 = vadd.xlane.f32.xlu0 %v120_v16 }
  0xeb   :  { %v123_v18 = vsel %vm119_vm2, %v118_v17, 0.0 }
  0xee   :  { %124 = vadd.xlane.f32.xlu0 %v123_v18 }
 0x177   :  { %v122_v19 = vpop.xlane.xlu0 %121 }
 0x178   :  { %v127_v20 = vmul.f32 0.03125, %v122_v19 }
 0x17a   :  { %v129_v21 = vsub.f32 %v117_v15, %v127_v20 }
 0x17b   :  { %v125_v22 = vpop.xlane.xlu0 %124 }
 0x17c   :  { %v128_v23 = vmul.f32 0.03125, %v125_v22  ;;  %v131_v24 = vmul.f32 %v129_v21, %v129_v21 }
 0x17e   :  { %v130_v25 = vsub.f32 %v118_v17, %v128_v23  ;;  %v133_v26 = vsel %vm119_vm2, %v131_v24, 0.0 }
 0x17f   :  { %134 = vadd.xlane.f32.xlu1 %v133_v26 }
 0x180   :  { %v132_v27 = vmul.f32 %v130_v25, %v130_v25 }
 0x182   :  { %v136_v28 = vsel %vm119_vm2, %v132_v27, 0.0 }
 0x183   :  { %137 = vadd.xlane.f32.xlu1 %v136_v28 }
 0x20c   :  { %v135_v29 = vpop.xlane.xlu1 %134 }
 0x20d   :  { %v139_v30 = vmul.f32 0.03125, %v135_v29 }
 0x20f   :  { %v141_v31 = vadd.f32 1e-05, %v139_v30 }
 0x210   :  { %v138_v32 = vpop.xlane.xlu1 %137 }
 0x211   :  { %204 = vrsqrt.f32 %v141_v31  ;;  %v140_v33 = vmul.f32 0.03125, %v138_v32 }
 0x213   :  { %v142_v34 = vadd.f32 1e-05, %v140_v33 }
 0x215   :  { %206 = vrsqrt.f32 %v142_v34 }
 0x21b   :  { %v205_v35 = vpop.eup %204 }
 0x21c   :  { %v145_v37 = vmul.f32 %v205_v35, %v129_v21 }
 0x21e   :  { %v154_v39 = vmul.f32 %v178_v36, %v145_v37 }
 0x21f   :  { %v207_v40 = vpop.eup %206 }
 0x220   :  { %v163_v41 = vadd.f32 %v179_v38, %v154_v39  ;;  %v146_v42 = vmul.f32 %v207_v40, %v130_v25 }
 0x222   :  { %165 = vst.msk [vmem:[%s293_s6] sm:$0xff] %vm119_vm2, %v163_v41  ;;  %v155_v43 = vmul.f32 %v178_v36, %v146_v42 }
 0x224   :  { %v164_v44 = vadd.f32 %v179_v38, %v155_v43 }
 0x226   :  { %166 = vst.msk [vmem:[%s293_s6 + $0x8] sm:$0xff] %vm119_vm2, %v164_v44 }

// kernel: _lambda_.18
= control target key start
LH: loop header
LB: loop body
LE: loop exit
PB: predicated region body
PF: predicated region fallthrough
CT: control target
= control target key end

     0   :  { %v181_v0 = vmov 0.0   ;;  %vm182_vm0 = vmmov 0   ;;  %vm54_vm1 = vcmask 261120   ;;  %s255_s1 = inlined_call_operand.vmem [shape: bf16[32,32], index: 1, kind: input, shape index: {}]   ;;  %s256_s0 = inlined_call_operand.vmem [shape: bf16[16,32], index: 0, kind: input, shape index: {}]   ;;  %s257_s2 = inlined_call_operand.vmem [shape: f32[1,32], index: 2, kind: input, shape index: {}, may-alias: {2,5}]   ;;  %s258_s3 = inlined_call_operand.vmem [shape: f32[16,32], index: 3, kind: input, shape index: {}]   ;;  %s259_s4 = inlined_call_operand.vmem [shape: f32[1,32], index: 4, kind: input, shape index: {}]   ;;  %s260_s5 = inlined_call_operand.vmem [shape: f32[1,32], index: 5, kind: input, shape index: {}, may-alias: {2,5}]   ;;  %s261_s6 = inlined_call_operand.vmem [shape: f32[16,32], index: 6, kind: output, shape index: {}]  }
   0x1   :  { %164 = vmatprep.subr.bf16.mxu0 %v181_v0  ;;  %v174_v1 = vld [vmem:[%s255_s1] sm:$0xff]   ;;  %168 = vmatprep.mubr.msk.bf16.mxu0 %vm182_vm0, %v181_v0  ;;  %v175_v2 = vld [vmem:[%s255_s1 + $0x8] sm:$0xff]  }
   0x2   :  { %165 = vmatpush3.bf16.msra.mxu0 %v174_v1  ;;  %v176_v3 = vld [vmem:[%s256_s0] sm:$0xff]   ;;  %v100_v10 = vld [vmem:[%s258_s3 + $0x8] sm:$0xff] }
   0x3   :  { %166 = vmatprep.subr.bf16.mxu0 %v181_v0  ;;  %v154_v4 = vld [vmem:[%s257_s2] ss:$0 sm:$0xff] }
   0x4   :  { %v99_v6 = vld [vmem:[%s258_s3] sm:$0xff] }
   0x5   :  { %v159_v34 = vld [vmem:[%s259_s4] ss:$0 sm:$0xff] }
   0x6   :  { %167 = vmatpush3.bf16.msra.mxu0 %v175_v2  ;;  %v160_v36 = vld [vmem:[%s260_s5] ss:$0 sm:$0xff] }
   0x9   :  { %169 = vmatmul.mubr.msk.bf16.vlgmr.msra.gmra.mrb[0].mxu0 %vm54_vm1, %v176_v3 }
  0xdc   :  { %v92_v5 = vpop.f32.mrb[0].mxu0 }
  0xdd   :  { %v93_v7 = vadd.f32 %v154_v4, %v92_v5  ;;  %v170_v8 = vpop.f32.mrb[1].mxu0 }
  0xde   :  { %v95_v9 = vpop.f32.mrb[2].mxu0 }
  0xdf   :  { %v96_v11 = vadd.f32 %v154_v4, %v95_v9  ;;  %v171_v12 = vpop.f32.mrb[3].mxu0  ;;  %v101_v13 = vadd.f32 %v99_v6, %v93_v7 }
  0xe1   :  { %v103_v14 = vsel %vm54_vm1, %v101_v13, 0.0  ;;  %v102_v15 = vadd.f32 %v100_v10, %v96_v11 }
  0xe2   :  { %104 = vadd.xlane.f32.xlu0 %v103_v14 }
  0xe3   :  { %v106_v16 = vsel %vm54_vm1, %v102_v15, 0.0 }
  0xe6   :  { %107 = vadd.xlane.f32.xlu0 %v106_v16 }
 0x16f   :  { %v105_v17 = vpop.xlane.xlu0 %104 }
 0x170   :  { %v110_v18 = vmul.f32 0.03125, %v105_v17 }
 0x172   :  { %v112_v19 = vsub.f32 %v101_v13, %v110_v18 }
 0x173   :  { %v108_v20 = vpop.xlane.xlu0 %107 }
 0x174   :  { %v111_v21 = vmul.f32 0.03125, %v108_v20  ;;  %v114_v22 = vmul.f32 %v112_v19, %v112_v19 }
 0x176   :  { %v113_v23 = vsub.f32 %v102_v15, %v111_v21  ;;  %v116_v24 = vsel %vm54_vm1, %v114_v22, 0.0 }
 0x177   :  { %117 = vadd.xlane.f32.xlu1 %v116_v24 }
 0x178   :  { %v115_v25 = vmul.f32 %v113_v23, %v113_v23 }
 0x17a   :  { %v119_v26 = vsel %vm54_vm1, %v115_v25, 0.0 }
 0x17b   :  { %120 = vadd.xlane.f32.xlu1 %v119_v26 }
 0x204   :  { %v118_v27 = vpop.xlane.xlu1 %117 }
 0x205   :  { %v122_v28 = vmul.f32 0.03125, %v118_v27 }
 0x207   :  { %v124_v29 = vadd.f32 1e-05, %v122_v28 }
 0x208   :  { %v121_v30 = vpop.xlane.xlu1 %120 }
 0x209   :  { %177 = vrsqrt.f32 %v124_v29  ;;  %v123_v31 = vmul.f32 0.03125, %v121_v30 }
 0x20b   :  { %v125_v32 = vadd.f32 1e-05, %v123_v31 }
 0x20d   :  { %179 = vrsqrt.f32 %v125_v32 }
 0x213   :  { %v178_v33 = vpop.eup %177 }
 0x214   :  { %v128_v35 = vmul.f32 %v178_v33, %v112_v19 }
 0x216   :  { %v137_v37 = vmul.f32 %v159_v34, %v128_v35 }
 0x217   :  { %v180_v38 = vpop.eup %179 }
 0x218   :  { %v146_v39 = vadd.f32 %v160_v36, %v137_v37  ;;  %v129_v40 = vmul.f32 %v180_v38, %v113_v23 }
 0x21a   :  { %148 = vst.msk [vmem:[%s261_s6] sm:$0xff] %vm54_vm1, %v146_v39  ;;  %v138_v41 = vmul.f32 %v159_v34, %v129_v40 }
 0x21c   :  { %v147_v42 = vadd.f32 %v160_v36, %v138_v41 }
 0x21e   :  { %149 = vst.msk [vmem:[%s261_s6 + $0x8] sm:$0xff] %vm54_vm1, %v147_v42 }

// kernel: _lambda_.17
= control target key start
LH: loop header
LB: loop body
LE: loop exit
PB: predicated region body
PF: predicated region fallthrough
CT: control target
= control target key end

     0   :  { %vm36_vm0 = vcmask 64512   ;;  %v1382_v0 = vmov 0.0   ;;  %vm1383_vm1 = vmmov 0   ;;  %vm19_vm2 = vcmask 7168   ;;  %s1807_s1 = inlined_call_operand.vmem [shape: bf16[8,8,8], index: 1, kind: input, shape index: {}]   ;;  %s1808_s0 = inlined_call_operand.vmem [shape: bf16[8,8,8], index: 0, kind: input, shape index: {}]   ;;  %s1809_s2 = inlined_call_operand.vmem [shape: bf16[8,8,8], index: 2, kind: input, shape index: {}]   ;;  %s1810_s3 = inlined_call_operand.vmem [shape: bf16[8,8,8], index: 3, kind: output, shape index: {}]  }
   0x1   :  { %1232 = vmatprep.subr.bf16.mxu0 %v1382_v0  ;;  %v53_v1 = vld [vmem:[%s1807_s1] sm:$0xf]  ;;  %37 = vst.msk [vmem:[#allocation4] sm:$0xff] %vm36_vm0, %v1382_v0  ;;  %38 = vst.msk [vmem:[#allocation4 + $0x8] sm:$0xff] %vm36_vm0, %v1382_v0  ;;  %1238 = vmatprep.subr.bf16.mxu1 %v1382_v0  ;;  %v54_v2 = vld [vmem:[%s1807_s1 + $0x4] sm:$0xf] }
   0x2   :  { %39 = vst.msk [vmem:[#allocation4 + $0x10] sm:$0xff] %vm36_vm0, %v1382_v0  ;;  %40 = vst.msk [vmem:[#allocation4 + $0x18] sm:$0xff] %vm36_vm0, %v1382_v0  ;;  %v66_v3 = vsel %vm36_vm0, %v53_v1, 0  ;;  %v112_v4 = vsel %vm36_vm0, %v54_v2, 0  ;;  %1234 = vmatprep.mubr.msk.bf16.mxu0 %vm1383_vm1, %v1382_v0  ;;  %1240 = vmatprep.mubr.msk.bf16.mxu1 %vm1383_vm1, %v1382_v0  ;;  %v55_v5 = vld [vmem:[%s1807_s1 + $0x8] sm:$0xf] }
   0x3   :  { %41 = vst.msk [vmem:[#allocation4 + $0x20] sm:$0xff] %vm36_vm0, %v1382_v0  ;;  %42 = vst.msk [vmem:[#allocation4 + $0x28] sm:$0xff] %vm36_vm0, %v1382_v0  ;;  %1233 = vmatpush3.bf16.xpose.msra.mxu0 %v66_v3  ;;  %1239 = vmatpush3.bf16.xpose.msra.mxu1 %v112_v4  ;;  %v56_v6 = vld [vmem:[%s1807_s1 + $0xc] sm:$0xf]  ;;  %v45_v7 = vld [vmem:[%s1808_s0] sm:$0xf] }
   0x4   :  { %43 = vst.msk [vmem:[#allocation4 + $0x30] sm:$0xff] %vm36_vm0, %v1382_v0  ;;  %44 = vst.msk [vmem:[#allocation4 + $0x38] sm:$0xff] %vm36_vm0, %v1382_v0  ;;  %1244 = vmatprep.subr.bf16.mxu0 %v1382_v0  ;;  %1250 = vmatprep.subr.bf16.mxu1 %v1382_v0  ;;  %v46_v8 = vld [vmem:[%s1808_s0 + $0x4] sm:$0xf]  ;;  %v158_v9 = vsel %vm36_vm0, %v55_v5, 0  ;;  %v204_v10 = vsel %vm36_vm0, %v56_v6, 0 }
   0x5   :  { %v57_v11 = vld [vmem:[%s1807_s1 + $0x10] sm:$0xf]  ;;  %v58_v12 = vld [vmem:[%s1807_s1 + $0x14] sm:$0xf]  ;;  %v47_v13 = vld [vmem:[%s1808_s0 + $0x8] sm:$0xf] }
   0x6   :  { %v48_v14 = vld [vmem:[%s1808_s0 + $0xc] sm:$0xf]  ;;  %v250_v15 = vsel %vm36_vm0, %v57_v11, 0  ;;  %v296_v16 = vsel %vm36_vm0, %v58_v12, 0  ;;  %v59_v17 = vld [vmem:[%s1807_s1 + $0x18] sm:$0xf] }
   0x7   :  { %v60_v18 = vld [vmem:[%s1807_s1 + $0x1c] sm:$0xf]  ;;  %v49_v19 = vld [vmem:[%s1808_s0 + $0x10] sm:$0xf]  ;;  %v50_v20 = vld [vmem:[%s1808_s0 + $0x14] sm:$0xf] }
   0x8   :  { %v342_v21 = vsel %vm36_vm0, %v59_v17, 0  ;;  %v388_v22 = vsel %vm36_vm0, %v60_v18, 0  ;;  %v51_v23 = vld [vmem:[%s1808_s0 + $0x18] sm:$0xf]  ;;  %v52_v24 = vld [vmem:[%s1808_s0 + $0x1c] sm:$0xf] }
   0x9   :  { %v1384_v25 = vmov -inf   ;;  %28 = vst.msk [vmem:[#allocation3] sm:$0xff] %vm19_vm2, %v1382_v0  ;;  %29 = vst.msk [vmem:[#allocation3 + $0x8] sm:$0xff] %vm19_vm2, %v1382_v0  ;;  %v1385_v62 = vmov 0   ;;  %vm698_vm3 = vcmask 1043456   ;;  %vm1171_vm4 = vcmask 60416  }
   0xa   :  { %1235 = vmatmul.mubr.msk.bf16.vlgmr.msra.gmra.mrb[0].mxu0 %vm36_vm0, %v45_v7  ;;  %1241 = vmatmul.mubr.msk.bf16.vlgmr.msra.gmra.mrb[0].mxu1 %vm36_vm0, %v46_v8  ;;  %20 = vst.msk [vmem:[#allocation2] sm:$0xff] %vm19_vm2, %v1384_v25  ;;  %21 = vst.msk [vmem:[#allocation2 + $0x8] sm:$0xff] %vm19_vm2, %v1384_v25 }
   0xb   :  { %1245 = vmatpush3.bf16.xpose.msra.mxu0 %v158_v9  ;;  %1251 = vmatpush3.bf16.xpose.msra.mxu1 %v204_v10  ;;  %22 = vst.msk [vmem:[#allocation2 + $0x10] sm:$0xff] %vm19_vm2, %v1384_v25  ;;  %23 = vst.msk [vmem:[#allocation2 + $0x18] sm:$0xff] %vm19_vm2, %v1384_v25 }
   0xc   :  { %1246 = vmatprep.mubr.msk.bf16.mxu0 %vm1383_vm1, %v1382_v0  ;;  %1256 = vmatprep.subr.bf16.mxu0 %v1382_v0  ;;  %24 = vst.msk [vmem:[#allocation2 + $0x20] sm:$0xff] %vm19_vm2, %v1384_v25  ;;  %25 = vst.msk [vmem:[#allocation2 + $0x28] sm:$0xff] %vm19_vm2, %v1384_v25 }
   0xd   :  { %1252 = vmatprep.mubr.msk.bf16.mxu1 %vm1383_vm1, %v1382_v0  ;;  %1262 = vmatprep.subr.bf16.mxu1 %v1382_v0  ;;  %26 = vst.msk [vmem:[#allocation2 + $0x30] sm:$0xff] %vm19_vm2, %v1384_v25  ;;  %27 = vst.msk [vmem:[#allocation2 + $0x38] sm:$0xff] %vm19_vm2, %v1384_v25 }
   0xe   :  { %30 = vst.msk [vmem:[#allocation3 + $0x10] sm:$0xff] %vm19_vm2, %v1382_v0  ;;  %31 = vst.msk [vmem:[#allocation3 + $0x18] sm:$0xff] %vm19_vm2, %v1382_v0  ;;  %1332 = vset.pattern.permute.xlu0 %v1385_v62  ;;  %1333 = vset.pattern.permute.xlu1 %v1385_v62  ;;  %v693_v62 = vld [vmem:[%s1809_s2 + $0x18] sm:$0xf] }
   0xf   :  { %32 = vst.msk [vmem:[#allocation3 + $0x20] sm:$0xff] %vm19_vm2, %v1382_v0  ;;  %33 = vst.msk [vmem:[#allocation3 + $0x28] sm:$0xff] %vm19_vm2, %v1382_v0 }
  0x10   :  { %34 = vst.msk [vmem:[#allocation3 + $0x30] sm:$0xff] %vm19_vm2, %v1382_v0  ;;  %35 = vst.msk [vmem:[#allocation3 + $0x38] sm:$0xff] %vm19_vm2, %v1382_v0 }
  0x11   :  { %v1572_v12 = vld [vmem:[#allocation2] sm:$0xff] }
  0x12   :  { %1247 = vmatmul.mubr.msk.bf16.vlgmr.msra.gmra.mrb[4].mxu0 %vm36_vm0, %v47_v13  ;;  %1253 = vmatmul.mubr.msk.bf16.vlgmr.msra.gmra.mrb[4].mxu1 %vm36_vm0, %v48_v14 }
  0x13   :  { %1257 = vmatpush3.bf16.xpose.msra.mxu0 %v250_v15  ;;  %1263 = vmatpush3.bf16.xpose.msra.mxu1 %v296_v16  ;;  %v1577_v15 = vld [vmem:[#allocation2 + $0x8] sm:$0xff] }
  0x14   :  { %1258 = vmatprep.mubr.msk.bf16.mxu0 %vm1383_vm1, %v1382_v0  ;;  %1268 = vmatprep.subr.bf16.mxu0 %v1382_v0 }
  0x15   :  { %1264 = vmatprep.mubr.msk.bf16.mxu1 %vm1383_vm1, %v1382_v0  ;;  %1274 = vmatprep.subr.bf16.mxu1 %v1382_v0 }
  0x1a   :  { %1259 = vmatmul.mubr.msk.bf16.vlgmr.msra.gmra.mrb[8].mxu0 %vm36_vm0, %v49_v19  ;;  %1265 = vmatmul.mubr.msk.bf16.vlgmr.msra.gmra.mrb[8].mxu1 %vm36_vm0, %v50_v20  ;;  %v1587_v19 = vld [vmem:[#allocation2 + $0x10] sm:$0xff] }
  0x1b   :  { %1269 = vmatpush3.bf16.xpose.msra.mxu0 %v342_v21  ;;  %1275 = vmatpush3.bf16.xpose.msra.mxu1 %v388_v22 }
  0x1c   :  { %1270 = vmatprep.mubr.msk.bf16.mxu0 %vm1383_vm1, %v1382_v0  ;;  %1276 = vmatprep.mubr.msk.bf16.mxu1 %vm1383_vm1, %v1382_v0 }
  0x1d   :  { %1280 = vmatprep.subr.bf16.mxu0 %v1382_v0  ;;  %1286 = vmatprep.subr.bf16.mxu1 %v1382_v0 }
  0x22   :  { %1271 = vmatmul.mubr.msk.bf16.vlgmr.msra.gmra.mrb[12].mxu0 %vm36_vm0, %v51_v23  ;;  %1277 = vmatmul.mubr.msk.bf16.vlgmr.msra.gmra.mrb[12].mxu1 %vm36_vm0, %v52_v24  ;;  %v1597_v23 = vld [vmem:[#allocation2 + $0x18] sm:$0xff] }
  0x23   :  { %1282 = vmatprep.mubr.msk.bf16.mxu0 %vm1383_vm1, %v1382_v0  ;;  %1288 = vmatprep.mubr.msk.bf16.mxu1 %vm1383_vm1, %v1382_v0 }
  0xdd   :  { %v102_v26 = vpop.f32.mrb[0].mxu0  ;;  %v148_v27 = vpop.f32.mrb[0].mxu1 }
  0xde   :  { %v1540_v28 = vmul.f32 0.35355338, %v102_v26  ;;  %v1236_v29 = vpop.f32.mrb[1].mxu0  ;;  %v1542_v30 = vmul.f32 0.35355338, %v148_v27  ;;  %v1242_v31 = vpop.f32.mrb[1].mxu1 }
  0xdf   :  { %v105_v32 = vpop.f32.mrb[2].mxu0  ;;  %v151_v33 = vpop.f32.mrb[2].mxu1  ;;  %v1607_v27 = vld [vmem:[#allocation2 + $0x20] sm:$0xff]  ;;  %v1609_v29 = vld [vmem:[#allocation2 + $0x28] sm:$0xff] }
  0xe0   :  { %v1237_v34 = vpop.f32.mrb[3].mxu0  ;;  %v446_v35 = vsel %vm36_vm0, %v1540_v28, -inf  ;;  %v1243_v36 = vpop.f32.mrb[3].mxu1  ;;  %v449_v37 = vsel %vm36_vm0, %v1542_v30, -inf  ;;  %v687_v32 = vld [vmem:[%s1809_s2] sm:$0xf] }
  0xe1   :  { %447 = vmax.xlane.f32.xlu0 %v446_v35  ;;  %v700_v35 = vsel %vm698_vm3, %v687_v32, 0 }
  0xe2   :  { %1281 = vmatpush3.bf16.msra.mxu0 %v700_v35 }
  0xe3   :  { %1292 = vmatprep.subr.bf16.mxu0 %v1382_v0 }
  0xe5   :  { %450 = vmax.xlane.f32.xlu0 %v449_v37  ;;  %v194_v38 = vpop.f32.mrb[4].mxu0  ;;  %v240_v39 = vpop.f32.mrb[4].mxu1 }
  0xe6   :  { %v1548_v40 = vmul.f32 0.35355338, %v194_v38  ;;  %v1248_v41 = vpop.f32.mrb[5].mxu0  ;;  %v1550_v42 = vmul.f32 0.35355338, %v240_v39  ;;  %v1254_v43 = vpop.f32.mrb[5].mxu1 }
  0xe7   :  { %v197_v44 = vpop.f32.mrb[6].mxu0  ;;  %v243_v45 = vpop.f32.mrb[6].mxu1  ;;  %v688_v41 = vld [vmem:[%s1809_s2 + $0x4] sm:$0xf] }
  0xe8   :  { %v1249_v46 = vpop.f32.mrb[7].mxu0  ;;  %v452_v47 = vsel %vm36_vm0, %v1548_v40, -inf  ;;  %v1255_v48 = vpop.f32.mrb[7].mxu1  ;;  %v455_v49 = vsel %vm36_vm0, %v1550_v42, -inf  ;;  %v746_v43 = vsel %vm698_vm3, %v688_v41, 0  ;;  %v1640_v44 = vld [vmem:[#allocation2 + $0x30] sm:$0xff] }
  0xe9   :  { %453 = vmax.xlane.f32.xlu1 %v452_v47  ;;  %1287 = vmatpush3.bf16.msra.mxu1 %v746_v43  ;;  %v1642_v45 = vld [vmem:[#allocation2 + $0x38] sm:$0xff]  ;;  %v689_v46 = vld [vmem:[%s1809_s2 + $0x8] sm:$0xf] }
  0xea   :  { %1298 = vmatprep.subr.bf16.mxu1 %v1382_v0 }
  0xed   :  { %456 = vmax.xlane.f32.xlu1 %v455_v49  ;;  %v286_v50 = vpop.f32.mrb[8].mxu0  ;;  %v332_v51 = vpop.f32.mrb[8].mxu1  ;;  %v792_v49 = vsel %vm698_vm3, %v689_v46, 0 }
  0xee   :  { %v1556_v52 = vmul.f32 0.35355338, %v286_v50  ;;  %v1260_v53 = vpop.f32.mrb[9].mxu0  ;;  %v1558_v54 = vmul.f32 0.35355338, %v332_v51  ;;  %v1266_v55 = vpop.f32.mrb[9].mxu1 }
  0xef   :  { %v289_v56 = vpop.f32.mrb[10].mxu0  ;;  %v335_v57 = vpop.f32.mrb[10].mxu1 }
  0xf0   :  { %v1261_v58 = vpop.f32.mrb[11].mxu0  ;;  %v458_v59 = vsel %vm36_vm0, %v1556_v52, -inf  ;;  %v1267_v60 = vpop.f32.mrb[11].mxu1  ;;  %v461_v61 = vsel %vm36_vm0, %v1558_v54, -inf  ;;  %v690_v56 = vld [vmem:[%s1809_s2 + $0xc] sm:$0xf] }
  0xf1   :  { %459 = vmax.xlane.f32.xlu0 %v458_v59  ;;  %462 = vmax.xlane.f32.xlu1 %v461_v61  ;;  %v838_v57 = vsel %vm698_vm3, %v690_v56, 0  ;;  %v691_v58 = vld [vmem:[%s1809_s2 + $0x10] sm:$0xf]  ;;  %v692_v60 = vld [vmem:[%s1809_s2 + $0x14] sm:$0xf] }
  0xf2   :  { %v884_v59 = vsel %vm698_vm3, %v691_v58, 0  ;;  %v1678_v61 = vsel %vm698_vm3, %v692_v60, 0 }
  0xf5   :  { %v378_v63 = vpop.f32.mrb[12].mxu0  ;;  %v424_v1 = vpop.f32.mrb[12].mxu1 }
  0xf6   :  { %v1564_v2 = vmul.f32 0.35355338, %v378_v63  ;;  %v1272_v3 = vpop.f32.mrb[13].mxu0  ;;  %v1566_v4 = vmul.f32 0.35355338, %v424_v1  ;;  %v1278_v5 = vpop.f32.mrb[13].mxu1 }
  0xf7   :  { %v381_v6 = vpop.f32.mrb[14].mxu0  ;;  %v427_v7 = vpop.f32.mrb[14].mxu1  ;;  %v1684_v63 = vsel %vm698_vm3, %v693_v62, 0  ;;  %v694_v1 = vld [vmem:[%s1809_s2 + $0x1c] sm:$0xf] }
  0xf8   :  { %v1273_v8 = vpop.f32.mrb[15].mxu0  ;;  %v464_v9 = vsel %vm36_vm0, %v1564_v2, -inf  ;;  %v1279_v10 = vpop.f32.mrb[15].mxu1  ;;  %v467_v11 = vsel %vm36_vm0, %v1566_v4, -inf  ;;  %v1690_v3 = vsel %vm698_vm3, %v694_v1, 0 }
  0xf9   :  { %465 = vmax.xlane.f32.xlu0 %v464_v9  ;;  %468 = vmax.xlane.f32.xlu1 %v467_v11 }
 0x16e   :  { %v448_v13 = vpop.xlane.xlu0 %447 }
 0x16f   :  { %v1575_v14 = vmax.f32 %v1572_v12, %v448_v13 }
 0x171   :  { %v478_v16 = vsub.f32 %v1572_v12, %v1575_v14  ;;  %1080 = vst.msk [vmem:[#allocation2] sm:$0xff] %vm19_vm2, %v1575_v14  ;;  %504 = vperm.xlu0 %1332, %v1575_v14  }
 0x172   :  { %v451_v17 = vpop.xlane.xlu0 %450 }
 0x173   :  { %v1585_v18 = vmax.f32 %v1577_v15, %v451_v17 }
 0x175   :  { %v479_v20 = vsub.f32 %v1577_v15, %v1585_v18  ;;  %1081 = vst.msk [vmem:[#allocation2 + $0x8] sm:$0xff] %vm19_vm2, %v1585_v18  ;;  %509 = vperm.xlu1 %1333, %v1585_v18  }
 0x176   :  { %v454_v21 = vpop.xlane.xlu1 %453 }
 0x177   :  { %v1595_v22 = vmax.f32 %v1587_v19, %v454_v21 }
 0x179   :  { %v480_v24 = vsub.f32 %v1587_v19, %v1595_v22  ;;  %1082 = vst.msk [vmem:[#allocation2 + $0x10] sm:$0xff] %vm19_vm2, %v1595_v22  ;;  %514 = vperm.xlu1 %1333, %v1595_v22  }
 0x17a   :  { %v457_v25 = vpop.xlane.xlu1 %456 }
 0x17b   :  { %v1605_v26 = vmax.f32 %v1597_v23, %v457_v25 }
 0x17d   :  { %v481_v31 = vsub.f32 %v1597_v23, %v1605_v26  ;;  %1083 = vst.msk [vmem:[#allocation2 + $0x18] sm:$0xff] %vm19_vm2, %v1605_v26  ;;  %519 = vperm.xlu1 %1333, %v1605_v26  }
 0x17e   :  { %v460_v33 = vpop.xlane.xlu0 %459  ;;  %v463_v34 = vpop.xlane.xlu1 %462 }
 0x17f   :  { %v1621_v36 = vmax.f32 %v1607_v27, %v460_v33  ;;  %v1624_v37 = vmax.f32 %v1609_v29, %v463_v34 }
 0x181   :  { %v482_v38 = vsub.f32 %v1607_v27, %v1621_v36  ;;  %1084 = vst.msk [vmem:[#allocation2 + $0x20] sm:$0xff] %vm19_vm2, %v1621_v36  ;;  %524 = vperm.xlu1 %1333, %v1621_v36   ;;  %v483_v39 = vsub.f32 %v1609_v29, %v1624_v37  ;;  %1085 = vst.msk [vmem:[#allocation2 + $0x28] sm:$0xff] %vm19_vm2, %v1624_v37  ;;  %v566_v29 = vld [vmem:[#allocation3] sm:$0xff] }
 0x183   :  { %v494_v15 = vmul.f32 1.442695, %v482_v38  ;;  %v496_v12 = vmul.f32 1.442695, %v483_v39 }
 0x185   :  { %529 = vperm.xlu1 %1333, %v1624_v37   ;;  %v567_v37 = vld [vmem:[#allocation3 + $0x8] sm:$0xff] }
 0x186   :  { %v466_v47 = vpop.xlane.xlu0 %465  ;;  %v469_v48 = vpop.xlane.xlu1 %468 }
 0x187   :  { %v1651_v50 = vmax.f32 %v1640_v44, %v466_v47  ;;  %v1654_v51 = vmax.f32 %v1642_v45, %v469_v48 }
 0x189   :  { %v484_v53 = vsub.f32 %v1640_v44, %v1651_v50  ;;  %1086 = vst.msk [vmem:[#allocation2 + $0x30] sm:$0xff] %vm19_vm2, %v1651_v50  ;;  %534 = vperm.xlu1 %1333, %v1651_v50   ;;  %v485_v55 = vsub.f32 %v1642_v45, %v1654_v51  ;;  %1087 = vst.msk [vmem:[#allocation2 + $0x38] sm:$0xff] %vm19_vm2, %v1654_v51  ;;  %v568_v45 = vld [vmem:[#allocation3 + $0x10] sm:$0xff] }
 0x18b   :  { %v498_v14 = vmul.f32 1.442695, %v484_v53 }
 0x18d   :  { %539 = vperm.xlu1 %1333, %v1654_v51  }
 0x1f0   :  { %v505_v5 = vpop.permute.xlu0 %504 }
 0x1f1   :  { %v542_v6 = vsub.f32 %v1540_v28, %v505_v5 }
 0x1f3   :  { %v550_v7 = vmul.f32 1.442695, %v542_v6 }
 0x1f4   :  { %v510_v8 = vpop.permute.xlu1 %509 }
 0x1f5   :  { %1334 = vpow2.f32 %v550_v7  ;;  %v543_v9 = vsub.f32 %v1542_v30, %v510_v8 }
 0x1f7   :  { %v552_v10 = vmul.f32 1.442695, %v543_v9 }
 0x1f8   :  { %v515_v11 = vpop.permute.xlu1 %514 }
 0x1f9   :  { %1336 = vpow2.f32 %v552_v10  ;;  %v544_v13 = vsub.f32 %v1548_v40, %v515_v11 }
 0x1fb   :  { %v554_v17 = vmul.f32 1.442695, %v544_v13 }
 0x1fc   :  { %v520_v21 = vpop.permute.xlu1 %519 }
 0x1fd   :  { %1338 = vpow2.f32 %v554_v17  ;;  %v545_v25 = vsub.f32 %v1550_v42, %v520_v21 }
 0x1ff   :  { %v1335_v32 = vpop.eup %1334  ;;  %v556_v33 = vmul.f32 1.442695, %v545_v25  ;;  %v490_v25 = vmul.f32 1.442695, %v480_v24 }
 0x200   :  { %v525_v34 = vpop.permute.xlu1 %524  ;;  %v582_v28 = vsel %vm36_vm0, %v1335_v32, 0.0  ;;  %v679_v35 = vpack.c.bf16 %v1335_v32, %v1335_v32  ;;  %v492_v32 = vmul.f32 1.442695, %v481_v31 }
 0x201   :  { %1340 = vpow2.f32 %v556_v33  ;;  %v546_v41 = vsub.f32 %v1556_v52, %v525_v34  ;;  %583 = vadd.xlane.f32.xlu1 %v582_v28 }
 0x202   :  { %1283 = vmatmul.mubr.msk.bf16.vlgmr.msra.gmra.mrb[16].mxu0 %vm36_vm0, %v679_v35 }
 0x203   :  { %v1337_v30 = vpop.eup %1336  ;;  %v558_v43 = vmul.f32 1.442695, %v546_v41  ;;  %1293 = vmatpush3.bf16.msra.mxu0 %v792_v49  ;;  %1294 = vmatprep.mubr.msk.bf16.mxu0 %vm1383_vm1, %v1382_v0  ;;  %v570_v41 = vld [vmem:[#allocation3 + $0x20] sm:$0xff] }
 0x204   :  { %v530_v40 = vpop.permute.xlu1 %529  ;;  %v585_v42 = vsel %vm36_vm0, %v1337_v30, 0.0  ;;  %v680_v46 = vpack.c.bf16 %v1337_v30, %v1337_v30  ;;  %1304 = vmatprep.subr.bf16.mxu0 %v1382_v0 }
 0x205   :  { %1342 = vpow2.f32 %v558_v43  ;;  %v547_v47 = vsub.f32 %v1558_v54, %v530_v40  ;;  %586 = vadd.xlane.f32.xlu0 %v585_v42 }
 0x206   :  { %1289 = vmatmul.mubr.msk.bf16.vlgmr.msra.gmra.mrb[16].mxu1 %vm36_vm0, %v680_v46  ;;  %v571_v46 = vld [vmem:[#allocation3 + $0x28] sm:$0xff] }
 0x207   :  { %v1339_v52 = vpop.eup %1338  ;;  %v560_v48 = vmul.f32 1.442695, %v547_v47  ;;  %1299 = vmatpush3.bf16.msra.mxu1 %v838_v57  ;;  %1300 = vmatprep.mubr.msk.bf16.mxu1 %vm1383_vm1, %v1382_v0 }
 0x208   :  { %v535_v49 = vpop.permute.xlu1 %534  ;;  %v588_v56 = vsel %vm36_vm0, %v1339_v52, 0.0  ;;  %v681_v58 = vpack.c.bf16 %v1339_v52, %v1339_v52  ;;  %1310 = vmatprep.subr.bf16.mxu1 %v1382_v0 }
 0x209   :  { %1344 = vpow2.f32 %v560_v48  ;;  %v548_v60 = vsub.f32 %v1564_v2, %v535_v49  ;;  %589 = vadd.xlane.f32.xlu0 %v588_v56  ;;  %v572_v56 = vld [vmem:[#allocation3 + $0x30] sm:$0xff] }
 0x20a   :  { %1295 = vmatmul.mubr.msk.bf16.vlgmr.msra.gmra.mrb[20].mxu0 %vm36_vm0, %v681_v58 }
 0x20b   :  { %v1341_v54 = vpop.eup %1340  ;;  %v562_v62 = vmul.f32 1.442695, %v548_v60  ;;  %1305 = vmatpush3.bf16.msra.mxu0 %v884_v59  ;;  %1306 = vmatprep.mubr.msk.bf16.mxu0 %vm1383_vm1, %v1382_v0 }
 0x20c   :  { %v540_v57 = vpop.permute.xlu1 %539  ;;  %v591_v1 = vsel %vm36_vm0, %v1341_v54, 0.0  ;;  %v682_v5 = vpack.c.bf16 %v1341_v54, %v1341_v54  ;;  %1316 = vmatprep.subr.bf16.mxu0 %v1382_v0 }
 0x20d   :  { %1346 = vpow2.f32 %v562_v62  ;;  %v549_v6 = vsub.f32 %v1566_v4, %v540_v57  ;;  %592 = vadd.xlane.f32.xlu1 %v591_v1  ;;  %v573_v1 = vld [vmem:[#allocation3 + $0x38] sm:$0xff] }
 0x20e   :  { %1301 = vmatmul.mubr.msk.bf16.vlgmr.msra.gmra.mrb[20].mxu1 %vm36_vm0, %v682_v5 }
 0x20f   :  { %v1343_v2 = vpop.eup %1342  ;;  %v564_v7 = vmul.f32 1.442695, %v549_v6  ;;  %1311 = vmatpush3.bf16.msra.mxu1 %v1678_v61  ;;  %1312 = vmatprep.mubr.msk.bf16.mxu1 %vm1383_vm1, %v1382_v0 }
 0x210   :  { %v594_v59 = vsel %vm36_vm0, %v1343_v2, 0.0  ;;  %v683_v8 = vpack.c.bf16 %v1343_v2, %v1343_v2  ;;  %1322 = vmatprep.subr.bf16.mxu1 %v1382_v0 }
 0x211   :  { %1348 = vpow2.f32 %v564_v7  ;;  %595 = vadd.xlane.f32.xlu0 %v594_v59 }
 0x212   :  { %1307 = vmatmul.mubr.msk.bf16.vlgmr.msra.gmra.mrb[24].mxu0 %vm36_vm0, %v683_v8 }
 0x213   :  { %v1345_v4 = vpop.eup %1344  ;;  %1317 = vmatpush3.bf16.msra.mxu0 %v1684_v63  ;;  %1318 = vmatprep.mubr.msk.bf16.mxu0 %vm1383_vm1, %v1382_v0 }
 0x214   :  { %v597_v61 = vsel %vm36_vm0, %v1345_v4, 0.0  ;;  %v684_v9 = vpack.c.bf16 %v1345_v4, %v1345_v4 }
 0x215   :  { %598 = vadd.xlane.f32.xlu1 %v597_v61 }
 0x216   :  { %1313 = vmatmul.mubr.msk.bf16.vlgmr.msra.gmra.mrb[24].mxu1 %vm36_vm0, %v684_v9 }
 0x217   :  { %v1347_v10 = vpop.eup %1346  ;;  %1323 = vmatpush3.bf16.msra.mxu1 %v1690_v3  ;;  %1324 = vmatprep.mubr.msk.bf16.mxu1 %vm1383_vm1, %v1382_v0  ;;  %v488_v3 = vmul.f32 1.442695, %v479_v20  ;;  %v486_v0 = vmul.f32 1.442695, %v478_v16  ;;  %v500_v16 = vmul.f32 1.442695, %v485_v55 }
 0x218   :  { %v600_v11 = vsel %vm36_vm0, %v1347_v10, 0.0  ;;  %v685_v13 = vpack.c.bf16 %v1347_v10, %v1347_v10  ;;  %v569_v55 = vld [vmem:[#allocation3 + $0x18] sm:$0xff] }
 0x219   :  { %601 = vadd.xlane.f32.xlu0 %v600_v11  ;;  %1350 = vpow2.f32 %v488_v3  ;;  %v623_v3 = vld [vmem:[#allocation4] sm:$0xff] }
 0x21a   :  { %1319 = vmatmul.mubr.msk.bf16.vlgmr.msra.gmra.mrb[28].mxu0 %vm36_vm0, %v685_v13  ;;  %1352 = vpow2.f32 %v486_v0 }
 0x21b   :  { %v1349_v63 = vpop.eup %1348  ;;  %1354 = vpow2.f32 %v490_v25 }
 0x21c   :  { %v603_v17 = vsel %vm36_vm0, %v1349_v63, 0.0  ;;  %v686_v21 = vpack.c.bf16 %v1349_v63, %v1349_v63  ;;  %1356 = vpow2.f32 %v492_v32 }
 0x21d   :  { %604 = vadd.xlane.f32.xlu1 %v603_v17  ;;  %1358 = vpow2.f32 %v494_v15  ;;  %v624_v15 = vld [vmem:[#allocation4 + $0x8] sm:$0xff] }
 0x21e   :  { %1325 = vmatmul.mubr.msk.bf16.vlgmr.msra.gmra.mrb[28].mxu1 %vm36_vm0, %v686_v21  ;;  %1360 = vpow2.f32 %v496_v12 }
 0x21f   :  { %1362 = vpow2.f32 %v498_v14 }
 0x220   :  { %1364 = vpow2.f32 %v500_v16 }
 0x223   :  { %v1351_v18 = vpop.eup %1350 }
 0x224   :  { %v1353_v19 = vpop.eup %1352  ;;  %v575_v39 = vmul.f32 %v1351_v18, %v567_v37  ;;  %v626_v37 = vld [vmem:[#allocation4 + $0x18] sm:$0xff] }
 0x225   :  { %v1355_v20 = vpop.eup %1354  ;;  %v574_v31 = vmul.f32 %v1353_v19, %v566_v29 }
 0x226   :  { %v1357_v22 = vpop.eup %1356  ;;  %v576_v51 = vmul.f32 %v1355_v20, %v568_v45 }
 0x227   :  { %v1359_v23 = vpop.eup %1358  ;;  %v577_v28 = vmul.f32 %v1357_v22, %v569_v55  ;;  %v627_v55 = vld [vmem:[#allocation4 + $0x20] sm:$0xff] }
 0x228   :  { %v1361_v24 = vpop.eup %1360  ;;  %v578_v40 = vmul.f32 %v1359_v23, %v570_v41 }
 0x229   :  { %v1363_v26 = vpop.eup %1362  ;;  %v579_v48 = vmul.f32 %v1361_v24, %v571_v46 }
 0x22a   :  { %v1365_v27 = vpop.eup %1364  ;;  %v580_v62 = vmul.f32 %v1363_v26, %v572_v56 }
 0x22b   :  { %v581_v7 = vmul.f32 %v1365_v27, %v573_v1 }
 0x22e   :  { %638 = vperm.xlu1 %1333, %v1351_v18  }
 0x22f   :  { %633 = vperm.xlu0 %1332, %v1353_v19  }
 0x232   :  { %643 = vperm.xlu1 %1333, %v1355_v20  }
 0x233   :  { %648 = vperm.xlu0 %1332, %v1357_v22   ;;  %v625_v22 = vld [vmem:[#allocation4 + $0x10] sm:$0xff] }
 0x236   :  { %653 = vperm.xlu1 %1333, %v1359_v23  }
 0x237   :  { %658 = vperm.xlu0 %1332, %v1361_v24  }
 0x23a   :  { %663 = vperm.xlu1 %1333, %v1363_v26  }
 0x23b   :  { %668 = vperm.xlu0 %1332, %v1365_v27  }
 0x28e   :  { %v584_v36 = vpop.xlane.xlu1 %583 }
 0x28f   :  { %v606_v38 = vadd.f32 %v584_v36, %v574_v31 }
 0x291   :  { %615 = vst.msk [vmem:[#allocation3] sm:$0xff] %vm19_vm2, %v606_v38 }
 0x292   :  { %v587_v44 = vpop.xlane.xlu0 %586 }
 0x293   :  { %v607_v50 = vadd.f32 %v587_v44, %v575_v39 }
 0x295   :  { %616 = vst.msk [vmem:[#allocation3 + $0x8] sm:$0xff] %vm19_vm2, %v607_v50 }
 0x296   :  { %v590_v53 = vpop.xlane.xlu0 %589 }
 0x297   :  { %v608_v33 = vadd.f32 %v590_v53, %v576_v51 }
 0x298   :  { %v1099_v34 = vld [vmem:[#allocation3] sm:$0xff] }
 0x299   :  { %617 = vst.msk [vmem:[#allocation3 + $0x10] sm:$0xff] %vm19_vm2, %v608_v33  ;;  %1366 = vrcp.f32 %v1099_v34 }
 0x29a   :  { %v593_v35 = vpop.xlane.xlu1 %592 }
 0x29b   :  { %v609_v30 = vadd.f32 %v593_v35, %v577_v28 }
 0x29c   :  { %v1100_v43 = vld [vmem:[#allocation3 + $0x8] sm:$0xff] }
 0x29d   :  { %618 = vst.msk [vmem:[#allocation3 + $0x18] sm:$0xff] %vm19_vm2, %v609_v30  ;;  %1368 = vrcp.f32 %v1100_v43 }
 0x29e   :  { %v596_v42 = vpop.xlane.xlu0 %595 }
 0x29f   :  { %v610_v47 = vadd.f32 %v596_v42, %v578_v40  ;;  %v628_v40 = vld [vmem:[#allocation4 + $0x28] sm:$0xff] }
 0x2a0   :  { %v1101_v52 = vld [vmem:[#allocation3 + $0x10] sm:$0xff] }
 0x2a1   :  { %619 = vst.msk [vmem:[#allocation3 + $0x20] sm:$0xff] %vm19_vm2, %v610_v47  ;;  %1370 = vrcp.f32 %v1101_v52 }
 0x2a2   :  { %v599_v49 = vpop.xlane.xlu1 %598 }
 0x2a3   :  { %v1367_v58 = vpop.eup %1366  ;;  %v611_v60 = vadd.f32 %v599_v49, %v579_v48 }
 0x2a4   :  { %1117 = vperm.xlu1 %1333, %v1367_v58   ;;  %v1102_v54 = vld [vmem:[#allocation3 + $0x18] sm:$0xff]  ;;  %v629_v58 = vld [vmem:[#allocation4 + $0x30] sm:$0xff] }
 0x2a5   :  { %620 = vst.msk [vmem:[#allocation3 + $0x28] sm:$0xff] %vm19_vm2, %v611_v60  ;;  %1372 = vrcp.f32 %v1102_v54 }
 0x2a6   :  { %v602_v57 = vpop.xlane.xlu0 %601 }
 0x2a7   :  { %v1369_v5 = vpop.eup %1368  ;;  %v612_v6 = vadd.f32 %v602_v57, %v580_v62 }
 0x2a8   :  { %1122 = vperm.xlu0 %1332, %v1369_v5   ;;  %v1103_v2 = vld [vmem:[#allocation3 + $0x20] sm:$0xff] }
 0x2a9   :  { %621 = vst.msk [vmem:[#allocation3 + $0x30] sm:$0xff] %vm19_vm2, %v612_v6  ;;  %1374 = vrcp.f32 %v1103_v2  ;;  %v630_v2 = vld [vmem:[#allocation4 + $0x38] sm:$0xff] }
 0x2aa   :  { %v605_v59 = vpop.xlane.xlu1 %604 }
 0x2ab   :  { %v1371_v8 = vpop.eup %1370  ;;  %v613_v4 = vadd.f32 %v605_v59, %v581_v7 }
 0x2ac   :  { %1127 = vperm.xlu1 %1333, %v1371_v8   ;;  %v1104_v61 = vld [vmem:[#allocation3 + $0x28] sm:$0xff] }
 0x2ad   :  { %622 = vst.msk [vmem:[#allocation3 + $0x38] sm:$0xff] %vm19_vm2, %v613_v4  ;;  %1376 = vrcp.f32 %v1104_v61 }
 0x2ae   :  { %v634_v0 = vpop.permute.xlu0 %633  ;;  %v639_v25 = vpop.permute.xlu1 %638 }
 0x2af   :  { %v1373_v9 = vpop.eup %1372  ;;  %v671_v32 = vmul.f32 %v634_v0, %v623_v3  ;;  %v672_v19 = vmul.f32 %v639_v25, %v624_v15 }
 0x2b0   :  { %1132 = vperm.xlu0 %1332, %v1373_v9   ;;  %v1105_v10 = vld [vmem:[#allocation3 + $0x30] sm:$0xff] }
 0x2b1   :  { %1378 = vrcp.f32 %v1105_v10 }
 0x2b2   :  { %v644_v23 = vpop.permute.xlu1 %643  ;;  %v649_v38 = vpop.permute.xlu0 %648 }
 0x2b3   :  { %v1375_v11 = vpop.eup %1374  ;;  %v673_v31 = vmul.f32 %v644_v23, %v625_v22  ;;  %v674_v51 = vmul.f32 %v649_v38, %v626_v37 }
 0x2b4   :  { %1137 = vperm.xlu1 %1333, %v1375_v11   ;;  %v1106_v13 = vld [vmem:[#allocation3 + $0x38] sm:$0xff] }
 0x2b5   :  { %1380 = vrcp.f32 %v1106_v13 }
 0x2b6   :  { %v654_v33 = vpop.permute.xlu1 %653  ;;  %v659_v42 = vpop.permute.xlu0 %658 }
 0x2b7   :  { %v1377_v63 = vpop.eup %1376  ;;  %v675_v30 = vmul.f32 %v654_v33, %v627_v55  ;;  %v676_v49 = vmul.f32 %v659_v42, %v628_v40 }
 0x2b8   :  { %1142 = vperm.xlu0 %1332, %v1377_v63  }
 0x2ba   :  { %v664_v60 = vpop.permute.xlu1 %663  ;;  %v669_v7 = vpop.permute.xlu0 %668 }
 0x2bb   :  { %v1379_v17 = vpop.eup %1378  ;;  %v677_v5 = vmul.f32 %v664_v60, %v629_v58  ;;  %v678_v9 = vmul.f32 %v669_v7, %v630_v2 }
 0x2bc   :  { %1147 = vperm.xlu1 %1333, %v1379_v17  }
 0x2bf   :  { %v1381_v21 = vpop.eup %1380 }
 0x2c0   :  { %1152 = vperm.xlu0 %1332, %v1381_v21  }
 0x2d5   :  { %v736_v12 = vpop.f32.mrb[16].mxu0 }
 0x2d6   :  { %v1064_v14 = vadd.f32 %v736_v12, %v671_v32  ;;  %v1284_v16 = vpop.f32.mrb[17].mxu0 }
 0x2d7   :  { %v739_v18 = vpop.f32.mrb[18].mxu0 }
 0x2d8   :  { %1072 = vst.msk [vmem:[#allocation4] sm:$0xff] %vm36_vm0, %v1064_v14  ;;  %v1285_v20 = vpop.f32.mrb[19].mxu0 }
 0x2d9   :  { %v782_v24 = vpop.f32.mrb[16].mxu1 }
 0x2da   :  { %v1065_v26 = vadd.f32 %v782_v24, %v672_v19  ;;  %v1290_v27 = vpop.f32.mrb[17].mxu1 }
 0x2db   :  { %v785_v29 = vpop.f32.mrb[18].mxu1 }
 0x2dc   :  { %1073 = vst.msk [vmem:[#allocation4 + $0x8] sm:$0xff] %vm36_vm0, %v1065_v26  ;;  %v1291_v36 = vpop.f32.mrb[19].mxu1 }
 0x2dd   :  { %v828_v39 = vpop.f32.mrb[20].mxu0 }
 0x2de   :  { %v1066_v44 = vadd.f32 %v828_v39, %v673_v31  ;;  %v1296_v45 = vpop.f32.mrb[21].mxu0 }
 0x2df   :  { %v831_v50 = vpop.f32.mrb[22].mxu0  ;;  %v1091_v0 = vld [vmem:[#allocation4] sm:$0xff] }
 0x2e0   :  { %1074 = vst.msk [vmem:[#allocation4 + $0x10] sm:$0xff] %vm36_vm0, %v1066_v44  ;;  %v1297_v53 = vpop.f32.mrb[23].mxu0 }
 0x2e1   :  { %v874_v34 = vpop.f32.mrb[20].mxu1 }
 0x2e2   :  { %v1067_v28 = vadd.f32 %v874_v34, %v674_v51  ;;  %v1302_v35 = vpop.f32.mrb[21].mxu1 }
 0x2e3   :  { %v877_v41 = vpop.f32.mrb[22].mxu1  ;;  %v1092_v15 = vld [vmem:[#allocation4 + $0x8] sm:$0xff] }
 0x2e4   :  { %1075 = vst.msk [vmem:[#allocation4 + $0x18] sm:$0xff] %vm36_vm0, %v1067_v28  ;;  %v1303_v43 = vpop.f32.mrb[23].mxu1 }
 0x2e5   :  { %v920_v46 = vpop.f32.mrb[24].mxu0 }
 0x2e6   :  { %v1068_v47 = vadd.f32 %v920_v46, %v675_v30  ;;  %v1308_v52 = vpop.f32.mrb[25].mxu0 }
 0x2e7   :  { %v923_v48 = vpop.f32.mrb[26].mxu0  ;;  %v1093_v19 = vld [vmem:[#allocation4 + $0x10] sm:$0xff] }
 0x2e8   :  { %1076 = vst.msk [vmem:[#allocation4 + $0x20] sm:$0xff] %vm36_vm0, %v1068_v47  ;;  %v1309_v56 = vpop.f32.mrb[27].mxu0 }
 0x2e9   :  { %v966_v54 = vpop.f32.mrb[24].mxu1 }
 0x2ea   :  { %v1069_v62 = vadd.f32 %v966_v54, %v676_v49  ;;  %v1314_v57 = vpop.f32.mrb[25].mxu1 }
 0x2eb   :  { %v969_v1 = vpop.f32.mrb[26].mxu1  ;;  %v1094_v23 = vld [vmem:[#allocation4 + $0x18] sm:$0xff] }
 0x2ec   :  { %1077 = vst.msk [vmem:[#allocation4 + $0x28] sm:$0xff] %vm36_vm0, %v1069_v62  ;;  %v1315_v6 = vpop.f32.mrb[27].mxu1 }
 0x2ed   :  { %v1012_v59 = vpop.f32.mrb[28].mxu0 }
 0x2ee   :  { %v1070_v8 = vadd.f32 %v1012_v59, %v677_v5  ;;  %v1320_v4 = vpop.f32.mrb[29].mxu0 }
 0x2ef   :  { %v1015_v61 = vpop.f32.mrb[30].mxu0  ;;  %v1095_v31 = vld [vmem:[#allocation4 + $0x20] sm:$0xff] }
 0x2f0   :  { %1078 = vst.msk [vmem:[#allocation4 + $0x30] sm:$0xff] %vm36_vm0, %v1070_v8  ;;  %v1321_v10 = vpop.f32.mrb[31].mxu0 }
 0x2f1   :  { %v1058_v11 = vpop.f32.mrb[28].mxu1 }
 0x2f2   :  { %v1071_v13 = vadd.f32 %v1058_v11, %v678_v9  ;;  %v1326_v63 = vpop.f32.mrb[29].mxu1 }
 0x2f3   :  { %v1061_v17 = vpop.f32.mrb[30].mxu1  ;;  %v1096_v38 = vld [vmem:[#allocation4 + $0x28] sm:$0xff] }
 0x2f4   :  { %1079 = vst.msk [vmem:[#allocation4 + $0x38] sm:$0xff] %vm36_vm0, %v1071_v13  ;;  %v1327_v21 = vpop.f32.mrb[31].mxu1 }
 0x2f7   :  { %v1097_v51 = vld [vmem:[#allocation4 + $0x30] sm:$0xff] }
 0x2fb   :  { %v1098_v33 = vld [vmem:[#allocation4 + $0x38] sm:$0xff] }
 0x323   :  { %v1118_v3 = vpop.permute.xlu1 %1117 }
 0x324   :  { %v1155_v25 = vmul.f32 %v1118_v3, %v1091_v0 }
 0x326   :  { %v1163_v32 = vpack.c.bf16 %v1155_v25, %v1155_v25 }
 0x327   :  { %v1123_v12 = vpop.permute.xlu0 %1122 }
 0x328   :  { %1172 = vst.msk [vmem:[%s1810_s3] sm:$0xf] %vm1171_vm4, %v1163_v32  ;;  %v1156_v14 = vmul.f32 %v1123_v12, %v1092_v15 }
 0x32a   :  { %v1164_v16 = vpack.c.bf16 %v1156_v14, %v1156_v14 }
 0x32b   :  { %v1128_v18 = vpop.permute.xlu1 %1127 }
 0x32c   :  { %1173 = vst.msk [vmem:[%s1810_s3 + $0x4] sm:$0xf] %vm1171_vm4, %v1164_v16  ;;  %v1157_v20 = vmul.f32 %v1128_v18, %v1093_v19 }
 0x32e   :  { %v1165_v22 = vpack.c.bf16 %v1157_v20, %v1157_v20 }
 0x32f   :  { %v1133_v24 = vpop.permute.xlu0 %1132 }
 0x330   :  { %1174 = vst.msk [vmem:[%s1810_s3 + $0x8] sm:$0xf] %vm1171_vm4, %v1165_v22  ;;  %v1158_v26 = vmul.f32 %v1133_v24, %v1094_v23 }
 0x332   :  { %v1166_v27 = vpack.c.bf16 %v1158_v26, %v1158_v26 }
 0x333   :  { %v1138_v29 = vpop.permute.xlu1 %1137 }
 0x334   :  { %1175 = vst.msk [vmem:[%s1810_s3 + $0xc] sm:$0xf] %vm1171_vm4, %v1166_v27  ;;  %v1159_v36 = vmul.f32 %v1138_v29, %v1095_v31 }
 0x336   :  { %v1167_v37 = vpack.c.bf16 %v1159_v36, %v1159_v36 }
 0x337   :  { %v1143_v39 = vpop.permute.xlu0 %1142 }
 0x338   :  { %1176 = vst.msk [vmem:[%s1810_s3 + $0x10] sm:$0xf] %vm1171_vm4, %v1167_v37  ;;  %v1160_v44 = vmul.f32 %v1143_v39, %v1096_v38 }
 0x33a   :  { %v1168_v45 = vpack.c.bf16 %v1160_v44, %v1160_v44 }
 0x33b   :  { %v1148_v50 = vpop.permute.xlu1 %1147 }
 0x33c   :  { %1177 = vst.msk [vmem:[%s1810_s3 + $0x14] sm:$0xf] %vm1171_vm4, %v1168_v45  ;;  %v1161_v53 = vmul.f32 %v1148_v50, %v1097_v51 }
 0x33e   :  { %v1169_v55 = vpack.c.bf16 %v1161_v53, %v1161_v53 }
 0x33f   :  { %v1153_v34 = vpop.permute.xlu0 %1152 }
 0x340   :  { %1178 = vst.msk [vmem:[%s1810_s3 + $0x18] sm:$0xf] %vm1171_vm4, %v1169_v55  ;;  %v1162_v28 = vmul.f32 %v1153_v34, %v1098_v33 }
 0x342   :  { %v1170_v35 = vpack.c.bf16 %v1162_v28, %v1162_v28 }
 0x344   :  { %1179 = vst.msk [vmem:[%s1810_s3 + $0x1c] sm:$0xf] %vm1171_vm4, %v1170_v35 }

// kernel: _lambda_.25
= control target key start
LH: loop header
LB: loop body
LE: loop exit
PB: predicated region body
PF: predicated region fallthrough
CT: control target
= control target key end

     0   :  { %v248_v1 = vmov 0.0   ;;  %vm249_vm0 = vmmov 0   ;;  %s336_s0 = inlined_call_operand.vmem [shape: bf16[16,64], index: 0, kind: input, shape index: {}]   ;;  %s337_s1 = inlined_call_operand.vmem [shape: bf16[64,32], index: 1, kind: input, shape index: {}]   ;;  %s338_s2 = inlined_call_operand.vmem [shape: f32[1,32], index: 2, kind: input, shape index: {}, may-alias: {2,5}]   ;;  %s339_s3 = inlined_call_operand.vmem [shape: f32[16,32], index: 3, kind: input, shape index: {}]   ;;  %s340_s4 = inlined_call_operand.vmem [shape: f32[1,32], index: 4, kind: input, shape index: {}]   ;;  %s341_s5 = inlined_call_operand.vmem [shape: f32[1,32], index: 5, kind: input, shape index: {}, may-alias: {2,5}]   ;;  %s342_s6 = inlined_call_operand.hbm [shape: f32[16,32], index: 6, kind: output, shape index: {}]  }
   0x1   :  { %v215_v0 = vld [vmem:[%s337_s1] sm:$0xff]   ;;  %198 = vmatprep.subr.bf16.mxu0 %v248_v1  ;;  %v216_v2 = vld [vmem:[%s337_s1 + $0x8] sm:$0xff]   ;;  %206 = vmatprep.mubr.msk.bf16.mxu0 %vm249_vm0, %v248_v1 }
   0x2   :  { %199 = vmatpush3.bf16.msra.mxu0 %v215_v0 }
   0x3   :  { %200 = vmatprep.subr.bf16.mxu0 %v248_v1 }
   0x4   :  { %11 = vsyncpa [#allocation3], 0  ;;  %v217_v3 = vld [vmem:[%s337_s1 + $0x10] sm:$0xff]   ;;  %v218_v4 = vld [vmem:[%s337_s1 + $0x18] sm:$0xff]   ;;  %vm71_vm1 = vcmask 523264   ;;  %vm120_vm2 = vcmask 261120  }
   0x5   :  { %v219_v5 = vld [vmem:[%s336_s0] sm:$0xff]   ;;  %v117_v12 = vld [vmem:[%s339_s3 + $0x8] sm:$0xff]  ;;  %s250_s13 = smov [#allocation2]  }
   0x6   :  { %201 = vmatpush3.bf16.msra.mxu0 %v216_v2  ;;  %v184_v6 = vld [vmem:[%s338_s2] ss:$0 sm:$0xff]  ;;  %s173_s14 = sshll.u32 %s250_s13, 4  ;;  %s174_s14 = int_to_ptr.vmem [resolvable:$true] %s173_s14 }
   0x7   :  { %202 = vmatprep.subr.bf16.mxu0 %v248_v1  ;;  %v116_v8 = vld [vmem:[%s339_s3] sm:$0xff]  ;;  %s224_s15 = scalar_lea.vmem %s174_s14, 256  ;;  %p229_p1 = scmp.lt.s32.totalorder %s174_s14, %s174_s14 }
   0x8   :  { %v191_v36 = vld [vmem:[%s340_s4] ss:$0 sm:$0xff]  ;;  %p225_p0 = scmp.ne.s32.totalorder %s174_s14, %s224_s15  ;;  %p230_p2 = scmp.lt.s32.totalorder %s224_s15, %s224_s15 }
   0x9   :  { %v192_v38 = vld [vmem:[%s341_s5] ss:$0 sm:$0xff] }
   0xa   :  { %203 = vmatpush3.bf16.msra.mxu0 %v217_v3  ;;  %p231_p3 = por %p230_p2, %p229_p1 }
   0xb   :  { %204 = vmatprep.subr.bf16.mxu0 %v248_v1 }
   0xc   :  { %p232_p4 = pnand %p231_p3, %p225_p0 }
   0xe   :  { %205 = vmatpush3.bf16.msra.mxu0 %v218_v4 }
  0x11   :  { %207 = vmatmul.mubr.msk.bf16.vlgmr.msra.gmra.mrb[0].mxu0 %vm71_vm1, %v219_v5 }
  0xe4   :  { %v109_v7 = vpop.f32.mrb[0].mxu0 }
  0xe5   :  { %v110_v9 = vadd.f32 %v184_v6, %v109_v7  ;;  %v208_v10 = vpop.f32.mrb[1].mxu0 }
  0xe6   :  { %v112_v11 = vpop.f32.mrb[2].mxu0 }
  0xe7   :  { %v113_v13 = vadd.f32 %v184_v6, %v112_v11  ;;  %v209_v14 = vpop.f32.mrb[3].mxu0  ;;  %v118_v15 = vadd.f32 %v116_v8, %v110_v9 }
  0xe9   :  { %v121_v16 = vsel %vm120_vm2, %v118_v15, 0.0  ;;  %v119_v17 = vadd.f32 %v117_v12, %v113_v13 }
  0xea   :  { %122 = vadd.xlane.f32.xlu0 %v121_v16 }
  0xeb   :  { %v124_v18 = vsel %vm120_vm2, %v119_v17, 0.0 }
  0xee   :  { %125 = vadd.xlane.f32.xlu0 %v124_v18 }
 0x177   :  { %v123_v19 = vpop.xlane.xlu0 %122 }
 0x178   :  { %v128_v20 = vmul.f32 0.03125, %v123_v19 }
 0x17a   :  { %v130_v21 = vsub.f32 %v118_v15, %v128_v20 }
 0x17b   :  { %v126_v22 = vpop.xlane.xlu0 %125 }
 0x17c   :  { %v129_v23 = vmul.f32 0.03125, %v126_v22  ;;  %v132_v24 = vmul.f32 %v130_v21, %v130_v21 }
 0x17e   :  { %v131_v25 = vsub.f32 %v119_v17, %v129_v23  ;;  %v134_v26 = vsel %vm120_vm2, %v132_v24, 0.0 }
 0x17f   :  { %135 = vadd.xlane.f32.xlu1 %v134_v26 }
 0x180   :  { %v133_v27 = vmul.f32 %v131_v25, %v131_v25 }
 0x182   :  { %v137_v28 = vsel %vm120_vm2, %v133_v27, 0.0 }
 0x183   :  { %138 = vadd.xlane.f32.xlu1 %v137_v28 }
 0x20c   :  { %v136_v29 = vpop.xlane.xlu1 %135 }
 0x20d   :  { %v140_v30 = vmul.f32 0.03125, %v136_v29 }
 0x20f   :  { %v142_v31 = vadd.f32 1e-05, %v140_v30 }
 0x210   :  { %v139_v32 = vpop.xlane.xlu1 %138 }
 0x211   :  { %220 = vrsqrt.f32 %v142_v31  ;;  %v141_v33 = vmul.f32 0.03125, %v139_v32 }
 0x213   :  { %v143_v34 = vadd.f32 1e-05, %v141_v33 }
 0x215   :  { %222 = vrsqrt.f32 %v143_v34 }
 0x21b   :  { %v221_v35 = vpop.eup %220 }
 0x21c   :  { %v146_v37 = vmul.f32 %v221_v35, %v130_v21 }
 0x21e   :  { %v155_v39 = vmul.f32 %v191_v36, %v146_v37 }
 0x21f   :  { %v223_v40 = vpop.eup %222 }
 0x220   :  { %v147_v41 = vmul.f32 %v223_v40, %v131_v25  ;;  %v164_v42 = vadd.f32 %v192_v38, %v155_v39 }
 0x222   :  { %v156_v43 = vmul.f32 %v191_v36, %v147_v41  ;;  %166 = vst.msk [vmem:[#allocation2] sm:$0xff] %vm120_vm2, %v164_v42 }
 0x224   :  { %v165_v44 = vadd.f32 %v192_v38, %v156_v43 }
 0x226   :  { %167 = vst.msk [vmem:[#allocation2 + $0x8] sm:$0xff] %vm120_vm2, %v165_v44 }
 0x227   :  { %235 = shalt.err (!%p232_p4)
}
 0x228   :  { %s236_s16 = scalar_lea.hbm %s342_s6, 256 }
 0x229   :  { %p237_p5 = scmp.ne.s32.totalorder %s342_s6, %s236_s16  ;;  %p240_p6 = scmp.lt.u32.totalorder %s236_s16, %s342_s6 }
 0x22b   :  { %p242_p7 = pnand %p240_p6, %p237_p5 }
 0x22d   :  { %245 = shalt.err (!%p242_p7)
}
 0x22e   :  { %s251_s21 = smov 128   ;;  %s252_s22 = smov 8  }
 0x22f   :  { %179 = dma.vmem_to_hbm [thread:$0]  %s174_s14, 256, %s342_s6, [#allocation3], %s251_s21, %s251_s21, %s252_s22  }
 0x230   :  { %246 = dma.done.wait [#allocation3], 256  }
 0x231   :  { %247 = vsyncadd [#allocation3], 4294967040 }
 0x232   :  { %183 = vsyncpa [#allocation3], 1 }

</bundles_post_ra>
